<compile_context>
chip_gen: v7x
topology: tpu7x:2x2x1
jax: 0.10.0
libtpu: 0.0.40
codegen_flags: <defaults>
</compile_context>

<pallas_src>
import functools

import jax
import jax.numpy as jnp
from jax.experimental import pallas as pl
from jax.experimental.pallas import tpu as pltpu

# Layer sizes of the PyTorch module.
ENC_DIMS = [28 * 28, 128, 64, 12, 3]
DEC_DIMS = [3, 12, 64, 128, 28 * 28]

D_IN = 28 * 28        # 784  true input / decoded width
ENC_DIM = 3           # true encoded width
ENC_PAD = 128         # internal lane-padded encoded width (exact: zero-padded weights)


def autoencoder_kernel(x_ref,
                       # encoder params (bf16; ew3/eb3 lane-padded to 128)
                       ew0, eb0, ew1, eb1, ew2, eb2, ew3, eb3,
                       # decoder params (bf16; dw0 row-padded to 128)
                       dw0, db0, dw1, db1, dw2, db2, dw3, db3,
                       # outputs
                       enc_ref, dec_ref):
    def linear(h, w_ref, b_ref):
        # bf16 x bf16 matmul with f32 accumulation on the MXU.
        return (jnp.dot(h, w_ref[...], preferred_element_type=jnp.float32)
                + b_ref[...].astype(jnp.float32))

    # f32 -> bf16 cast in-kernel (saves a separate wrapper-side pad/cast HBM pass).
    x = x_ref[...].astype(jnp.bfloat16)                       # (tile, 784)

    # Encoder: Linear+Tanh x3, then Linear (no activation).
    h = jnp.tanh(linear(x, ew0, eb0)).astype(jnp.bfloat16)    # (tile, 128)
    h = jnp.tanh(linear(h, ew1, eb1)).astype(jnp.bfloat16)    # (tile, 64)
    h = jnp.tanh(linear(h, ew2, eb2)).astype(jnp.bfloat16)    # (tile, 12)
    enc = linear(h, ew3, eb3)                                  # (tile, 128) f32; lanes >= 3 are exactly 0

    # Decoder: Linear+Tanh x3, then Linear+Sigmoid.
    g = jnp.tanh(linear(enc.astype(jnp.bfloat16), dw0, db0)).astype(jnp.bfloat16)
    g = jnp.tanh(linear(g, dw1, db1)).astype(jnp.bfloat16)
    g = jnp.tanh(linear(g, dw2, db2)).astype(jnp.bfloat16)
    dec = jax.nn.sigmoid(linear(g, dw3, db3))                  # (tile, 784) f32

    enc_ref[...] = enc[:, :ENC_DIM].astype(enc_ref.dtype)      # (tile, 3)  f32
    dec_ref[...] = dec.astype(dec_ref.dtype)                   # (tile, 784) bf16


def init_params(key):
    """Deterministic PyTorch-style (uniform +/- 1/sqrt(fan_in)) init.

    Weights are stored (in_features, out_features); biases as (1, out_features).
    (x @ W + b here == x @ weight.T + bias in PyTorch for weight of shape (out, in).)
    """
    params = []
    for dims in (ENC_DIMS, DEC_DIMS):
        for fan_in, fan_out in zip(dims[:-1], dims[1:]):
            key, kw, kb = jax.random.split(key, 3)
            bound = 1.0 / jnp.sqrt(fan_in)
            w = jax.random.uniform(kw, (fan_in, fan_out), jnp.float32, -bound, bound)
            b = jax.random.uniform(kb, (1, fan_out), jnp.float32, -bound, bound)
            params += [w, b]
    return params  # [ew0, eb0, ..., ew3, eb3, dw0, db0, ..., dw3, db3]


def _prepare_params(params):
    """Cast params to bf16; zero-pad only the 3-wide bottleneck to 128 lanes.

    Zero padding keeps the math exact: padded encoded lanes are exactly 0
    (zero weight cols + zero bias) and are consumed by zero rows padded onto dw0.
    The padded lanes are sliced off before the enc store.
    """
    (ew0, eb0, ew1, eb1, ew2, eb2, ew3, eb3,
     dw0, db0, dw1, db1, dw2, db2, dw3, db3) = params

    def pad_to(a, rows, cols):
        return jnp.pad(a, ((0, rows - a.shape[0]), (0, cols - a.shape[1])))

    ew3 = pad_to(ew3, 12, ENC_PAD)     # (12, 128)
    eb3 = pad_to(eb3, 1, ENC_PAD)      # (1, 128)
    dw0 = pad_to(dw0, ENC_PAD, 12)     # (128, 12)

    padded = (ew0, eb0, ew1, eb1, ew2, eb2, ew3, eb3,
              dw0, db0, dw1, db1, dw2, db2, dw3, db3)
    return tuple(p.astype(jnp.bfloat16) for p in padded)


@functools.partial(jax.jit, static_argnames=("batch_tile",))
def autoencoder_forward(x, params, batch_tile=128):
    """Returns (encoded f32 (B, 3), decoded bf16 (B, 784)).

    For large batches, raise batch_tile toward 512-1024 but keep n_tiles >= 4 so each
    TensorCore still pipelines >= 2 grid steps (DMA/compute overlap).
    """
    B, D = x.shape
    assert D == D_IN
    n_tiles = (B + batch_tile - 1) // batch_tile
    B_pad = n_tiles * batch_tile

    # Only pad the batch dim (and only if needed) — no lane padding, no cast pass.
    x_p = x if B_pad == B else jnp.pad(x, ((0, B_pad - B), (0, 0)))
    params_p = _prepare_params(params)

    # Params are small (~0.4 MB bf16) full-array resident blocks. Single-buffering them
    # (pipeline_mode=pl.Buffered(1)) only matters if batch_tile is pushed toward 1024.
    param_specs = [pl.BlockSpec(p.shape, lambda i: (0, 0)) for p in params_p]

    enc_out = jax.ShapeDtypeStruct((B_pad, ENC_DIM), jnp.float32)   # keep enc f32 (precision)
    dec_out = jax.ShapeDtypeStruct((B_pad, D_IN), jnp.bfloat16)     # bf16 halves the big writeback

    enc_p, dec_p = pl.pallas_call(
        autoencoder_kernel,
        out_shape=(enc_out, dec_out),
        grid_spec=pltpu.PrefetchScalarGridSpec(
            num_scalar_prefetch=0,
            grid=(n_tiles,),
            in_specs=[pl.BlockSpec((batch_tile, D_IN), lambda i: (i, 0))] + param_specs,
            out_specs=[
                pl.BlockSpec((batch_tile, ENC_DIM), lambda i: (i, 0)),
                pl.BlockSpec((batch_tile, D_IN), lambda i: (i, 0)),
            ],
        ),
        compiler_params=pltpu.CompilerParams(
            dimension_semantics=("parallel",)),
    )(x_p, *params_p)

    if B_pad != B:  # slice off batch padding only when it exists (demo: it doesn't)
        enc_p = enc_p[:B]
        dec_p = dec_p[:B]
    return enc_p, dec_p


def reference_forward(x, params):
    """Pure-JAX f32 reference for correctness checking."""
    (ew0, eb0, ew1, eb1, ew2, eb2, ew3, eb3,
     dw0, db0, dw1, db1, dw2, db2, dw3, db3) = params
    h = jnp.tanh(x @ ew0 + eb0)
    h = jnp.tanh(h @ ew1 + eb1)
    h = jnp.tanh(h @ ew2 + eb2)
    enc = h @ ew3 + eb3
    g = jnp.tanh(enc @ dw0 + db0)
    g = jnp.tanh(g @ dw1 + db1)
    g = jnp.tanh(g @ dw2 + db2)
    dec = jax.nn.sigmoid(g @ dw3 + db3)
    return enc, dec


if __name__ == "__main__":
    key = jax.random.PRNGKey(0)
    kx, kp = jax.random.split(key)

    # 512 rows of flattened 28x28 images; batch_tile=128 -> 4 grid steps
    # (>= 2 pipelined steps per TensorCore on v7x's 2-core chips).
    B = 512
    x = jax.random.uniform(kx, (B, D_IN), jnp.float32)
    params = init_params(kp)

    encoded, decoded = autoencoder_forward(x, params, batch_tile=128)
    jax.block_until_ready((encoded, decoded))

    enc_ref, dec_ref = reference_forward(x, params)
    assert encoded.shape == (B, ENC_DIM) and decoded.shape == (B, D_IN)
    # bf16 compute (and bf16 decoded output) vs f32 reference: loosened tolerance.
    assert jnp.allclose(encoded, enc_ref, atol=2e-2, rtol=2e-2), \
        float(jnp.max(jnp.abs(encoded - enc_ref)))
    assert jnp.allclose(decoded.astype(jnp.float32), dec_ref, atol=2e-2, rtol=2e-2), \
        float(jnp.max(jnp.abs(decoded.astype(jnp.float32) - dec_ref)))

    print("KERNEL_OK")
</pallas_src>

<mosaic_0001>
module attributes {stable_mosaic.version = 11 : i64} {
  func.func @autoencoder_kernel(%arg0: i32, %arg1: memref<128x784xf32, #tpu.memory_space<vmem>>, %arg2: memref<784x128xbf16, #tpu.memory_space<vmem>>, %arg3: memref<1x128xbf16, #tpu.memory_space<vmem>>, %arg4: memref<128x64xbf16, #tpu.memory_space<vmem>>, %arg5: memref<1x64xbf16, #tpu.memory_space<vmem>>, %arg6: memref<64x12xbf16, #tpu.memory_space<vmem>>, %arg7: memref<1x12xbf16, #tpu.memory_space<vmem>>, %arg8: memref<12x128xbf16, #tpu.memory_space<vmem>>, %arg9: memref<1x128xbf16, #tpu.memory_space<vmem>>, %arg10: memref<128x12xbf16, #tpu.memory_space<vmem>>, %arg11: memref<1x12xbf16, #tpu.memory_space<vmem>>, %arg12: memref<12x64xbf16, #tpu.memory_space<vmem>>, %arg13: memref<1x64xbf16, #tpu.memory_space<vmem>>, %arg14: memref<64x128xbf16, #tpu.memory_space<vmem>>, %arg15: memref<1x128xbf16, #tpu.memory_space<vmem>>, %arg16: memref<128x784xbf16, #tpu.memory_space<vmem>>, %arg17: memref<1x784xbf16, #tpu.memory_space<vmem>>, %arg18: memref<128x3xf32, #tpu.memory_space<vmem>>, %arg19: memref<128x784xbf16, #tpu.memory_space<vmem>>) attributes {dimension_semantics = [#tpu.dimension_semantics<parallel>], iteration_bounds = array<i64: 4>, scalar_prefetch = 0 : i64, scratch_operands = 0 : i64, tpu.core_type = #tpu.core_type<tc>, window_params = [{transform_indices = @transform_0, window_bounds = array<i64: 128, 784>}, {pipeline_mode = #tpu.pipeline_mode<synchronous>, transform_indices = @transform_1, window_bounds = array<i64: 784, 128>}, {pipeline_mode = #tpu.pipeline_mode<synchronous>, transform_indices = @transform_2, window_bounds = array<i64: 1, 128>}, {pipeline_mode = #tpu.pipeline_mode<synchronous>, transform_indices = @transform_3, window_bounds = array<i64: 128, 64>}, {pipeline_mode = #tpu.pipeline_mode<synchronous>, transform_indices = @transform_4, window_bounds = array<i64: 1, 64>}, {pipeline_mode = #tpu.pipeline_mode<synchronous>, transform_indices = @transform_5, window_bounds = array<i64: 64, 12>}, {pipeline_mode = #tpu.pipeline_mode<synchronous>, transform_indices = @transform_6, window_bounds = array<i64: 1, 12>}, {pipeline_mode = #tpu.pipeline_mode<synchronous>, transform_indices = @transform_7, window_bounds = array<i64: 12, 128>}, {pipeline_mode = #tpu.pipeline_mode<synchronous>, transform_indices = @transform_8, window_bounds = array<i64: 1, 128>}, {pipeline_mode = #tpu.pipeline_mode<synchronous>, transform_indices = @transform_9, window_bounds = array<i64: 128, 12>}, {pipeline_mode = #tpu.pipeline_mode<synchronous>, transform_indices = @transform_10, window_bounds = array<i64: 1, 12>}, {pipeline_mode = #tpu.pipeline_mode<synchronous>, transform_indices = @transform_11, window_bounds = array<i64: 12, 64>}, {pipeline_mode = #tpu.pipeline_mode<synchronous>, transform_indices = @transform_12, window_bounds = array<i64: 1, 64>}, {pipeline_mode = #tpu.pipeline_mode<synchronous>, transform_indices = @transform_13, window_bounds = array<i64: 64, 128>}, {pipeline_mode = #tpu.pipeline_mode<synchronous>, transform_indices = @transform_14, window_bounds = array<i64: 1, 128>}, {pipeline_mode = #tpu.pipeline_mode<synchronous>, transform_indices = @transform_15, window_bounds = array<i64: 128, 784>}, {pipeline_mode = #tpu.pipeline_mode<synchronous>, transform_indices = @transform_16, window_bounds = array<i64: 1, 784>}, {transform_indices = @transform_17, window_bounds = array<i64: 128, 3>}, {transform_indices = @transform_18, window_bounds = array<i64: 128, 784>}]} {
    %c0 = arith.constant 0 : index
    %c0_0 = arith.constant 0 : index
    %0 = vector.load %arg1[%c0, %c0_0] : memref<128x784xf32, #tpu.memory_space<vmem>>, vector<128x784xf32>
    %1 = arith.truncf %0 : vector<128x784xf32> to vector<128x784xbf16>
    %c0_1 = arith.constant 0 : index
    %c0_2 = arith.constant 0 : index
    %2 = vector.load %arg2[%c0_1, %c0_2] : memref<784x128xbf16, #tpu.memory_space<vmem>>, vector<784x128xbf16>
    %cst = arith.constant dense<0.000000e+00> : vector<128x128xf32>
    %3 = tpu.matmul %1, %2, %cst {dimension_numbers = #tpu.dot_dimension_numbers<[1], [0], [0], [1], [0, 0, 1, 1], [], []>} : vector<128x784xbf16>, vector<784x128xbf16>, vector<128x128xf32> -> vector<128x128xf32>
    %c0_3 = arith.constant 0 : index
    %c0_4 = arith.constant 0 : index
    %4 = vector.load %arg3[%c0_3, %c0_4] : memref<1x128xbf16, #tpu.memory_space<vmem>>, vector<1x128xbf16>
    %5 = arith.extf %4 : vector<1x128xbf16> to vector<1x128xf32>
    %6 = vector.broadcast %5 : vector<1x128xf32> to vector<128x128xf32>
    %7 = arith.addf %3, %6 : vector<128x128xf32>
    %8 = math.tanh %7 : vector<128x128xf32>
    %9 = arith.truncf %8 : vector<128x128xf32> to vector<128x128xbf16>
    %c0_5 = arith.constant 0 : index
    %c0_6 = arith.constant 0 : index
    %10 = vector.load %arg4[%c0_5, %c0_6] : memref<128x64xbf16, #tpu.memory_space<vmem>>, vector<128x64xbf16>
    %cst_7 = arith.constant dense<0.000000e+00> : vector<128x64xf32>
    %11 = tpu.matmul %9, %10, %cst_7 {dimension_numbers = #tpu.dot_dimension_numbers<[1], [0], [0], [1], [0, 0, 1, 1], [], []>} : vector<128x128xbf16>, vector<128x64xbf16>, vector<128x64xf32> -> vector<128x64xf32>
    %c0_8 = arith.constant 0 : index
    %c0_9 = arith.constant 0 : index
    %12 = vector.load %arg5[%c0_8, %c0_9] : memref<1x64xbf16, #tpu.memory_space<vmem>>, vector<1x64xbf16>
    %13 = arith.extf %12 : vector<1x64xbf16> to vector<1x64xf32>
    %14 = vector.broadcast %13 : vector<1x64xf32> to vector<128x64xf32>
    %15 = arith.addf %11, %14 : vector<128x64xf32>
    %16 = math.tanh %15 : vector<128x64xf32>
    %17 = arith.truncf %16 : vector<128x64xf32> to vector<128x64xbf16>
    %c0_10 = arith.constant 0 : index
    %c0_11 = arith.constant 0 : index
    %18 = vector.load %arg6[%c0_10, %c0_11] : memref<64x12xbf16, #tpu.memory_space<vmem>>, vector<64x12xbf16>
    %cst_12 = arith.constant dense<0.000000e+00> : vector<128x12xf32>
    %19 = tpu.matmul %17, %18, %cst_12 {dimension_numbers = #tpu.dot_dimension_numbers<[1], [0], [0], [1], [0, 0, 1, 1], [], []>} : vector<128x64xbf16>, vector<64x12xbf16>, vector<128x12xf32> -> vector<128x12xf32>
    %c0_13 = arith.constant 0 : index
    %c0_14 = arith.constant 0 : index
    %20 = vector.load %arg7[%c0_13, %c0_14] : memref<1x12xbf16, #tpu.memory_space<vmem>>, vector<1x12xbf16>
    %21 = arith.extf %20 : vector<1x12xbf16> to vector<1x12xf32>
    %22 = vector.broadcast %21 : vector<1x12xf32> to vector<128x12xf32>
    %23 = arith.addf %19, %22 : vector<128x12xf32>
    %24 = math.tanh %23 : vector<128x12xf32>
    %25 = arith.truncf %24 : vector<128x12xf32> to vector<128x12xbf16>
    %c0_15 = arith.constant 0 : index
    %c0_16 = arith.constant 0 : index
    %26 = vector.load %arg8[%c0_15, %c0_16] : memref<12x128xbf16, #tpu.memory_space<vmem>>, vector<12x128xbf16>
    %cst_17 = arith.constant dense<0.000000e+00> : vector<128x128xf32>
    %27 = tpu.matmul %25, %26, %cst_17 {dimension_numbers = #tpu.dot_dimension_numbers<[1], [0], [0], [1], [0, 0, 1, 1], [], []>} : vector<128x12xbf16>, vector<12x128xbf16>, vector<128x128xf32> -> vector<128x128xf32>
    %c0_18 = arith.constant 0 : index
    %c0_19 = arith.constant 0 : index
    %28 = vector.load %arg9[%c0_18, %c0_19] : memref<1x128xbf16, #tpu.memory_space<vmem>>, vector<1x128xbf16>
    %29 = arith.extf %28 : vector<1x128xbf16> to vector<1x128xf32>
    %30 = vector.broadcast %29 : vector<1x128xf32> to vector<128x128xf32>
    %31 = arith.addf %27, %30 : vector<128x128xf32>
    %32 = arith.truncf %31 : vector<128x128xf32> to vector<128x128xbf16>
    %c0_20 = arith.constant 0 : index
    %c0_21 = arith.constant 0 : index
    %33 = vector.load %arg10[%c0_20, %c0_21] : memref<128x12xbf16, #tpu.memory_space<vmem>>, vector<128x12xbf16>
    %cst_22 = arith.constant dense<0.000000e+00> : vector<128x12xf32>
    %34 = tpu.matmul %32, %33, %cst_22 {dimension_numbers = #tpu.dot_dimension_numbers<[1], [0], [0], [1], [0, 0, 1, 1], [], []>} : vector<128x128xbf16>, vector<128x12xbf16>, vector<128x12xf32> -> vector<128x12xf32>
    %c0_23 = arith.constant 0 : index
    %c0_24 = arith.constant 0 : index
    %35 = vector.load %arg11[%c0_23, %c0_24] : memref<1x12xbf16, #tpu.memory_space<vmem>>, vector<1x12xbf16>
    %36 = arith.extf %35 : vector<1x12xbf16> to vector<1x12xf32>
    %37 = vector.broadcast %36 : vector<1x12xf32> to vector<128x12xf32>
    %38 = arith.addf %34, %37 : vector<128x12xf32>
    %39 = math.tanh %38 : vector<128x12xf32>
    %40 = arith.truncf %39 : vector<128x12xf32> to vector<128x12xbf16>
    %c0_25 = arith.constant 0 : index
    %c0_26 = arith.constant 0 : index
    %41 = vector.load %arg12[%c0_25, %c0_26] : memref<12x64xbf16, #tpu.memory_space<vmem>>, vector<12x64xbf16>
    %cst_27 = arith.constant dense<0.000000e+00> : vector<128x64xf32>
    %42 = tpu.matmul %40, %41, %cst_27 {dimension_numbers = #tpu.dot_dimension_numbers<[1], [0], [0], [1], [0, 0, 1, 1], [], []>} : vector<128x12xbf16>, vector<12x64xbf16>, vector<128x64xf32> -> vector<128x64xf32>
    %c0_28 = arith.constant 0 : index
    %c0_29 = arith.constant 0 : index
    %43 = vector.load %arg13[%c0_28, %c0_29] : memref<1x64xbf16, #tpu.memory_space<vmem>>, vector<1x64xbf16>
    %44 = arith.extf %43 : vector<1x64xbf16> to vector<1x64xf32>
    %45 = vector.broadcast %44 : vector<1x64xf32> to vector<128x64xf32>
    %46 = arith.addf %42, %45 : vector<128x64xf32>
    %47 = math.tanh %46 : vector<128x64xf32>
    %48 = arith.truncf %47 : vector<128x64xf32> to vector<128x64xbf16>
    %c0_30 = arith.constant 0 : index
    %c0_31 = arith.constant 0 : index
    %49 = vector.load %arg14[%c0_30, %c0_31] : memref<64x128xbf16, #tpu.memory_space<vmem>>, vector<64x128xbf16>
    %cst_32 = arith.constant dense<0.000000e+00> : vector<128x128xf32>
    %50 = tpu.matmul %48, %49, %cst_32 {dimension_numbers = #tpu.dot_dimension_numbers<[1], [0], [0], [1], [0, 0, 1, 1], [], []>} : vector<128x64xbf16>, vector<64x128xbf16>, vector<128x128xf32> -> vector<128x128xf32>
    %c0_33 = arith.constant 0 : index
    %c0_34 = arith.constant 0 : index
    %51 = vector.load %arg15[%c0_33, %c0_34] : memref<1x128xbf16, #tpu.memory_space<vmem>>, vector<1x128xbf16>
    %52 = arith.extf %51 : vector<1x128xbf16> to vector<1x128xf32>
    %53 = vector.broadcast %52 : vector<1x128xf32> to vector<128x128xf32>
    %54 = arith.addf %50, %53 : vector<128x128xf32>
    %55 = math.tanh %54 : vector<128x128xf32>
    %56 = arith.truncf %55 : vector<128x128xf32> to vector<128x128xbf16>
    %c0_35 = arith.constant 0 : index
    %c0_36 = arith.constant 0 : index
    %57 = vector.load %arg16[%c0_35, %c0_36] : memref<128x784xbf16, #tpu.memory_space<vmem>>, vector<128x784xbf16>
    %cst_37 = arith.constant dense<0.000000e+00> : vector<128x784xf32>
    %58 = tpu.matmul %56, %57, %cst_37 {dimension_numbers = #tpu.dot_dimension_numbers<[1], [0], [0], [1], [0, 0, 1, 1], [], []>} : vector<128x128xbf16>, vector<128x784xbf16>, vector<128x784xf32> -> vector<128x784xf32>
    %c0_38 = arith.constant 0 : index
    %c0_39 = arith.constant 0 : index
    %59 = vector.load %arg17[%c0_38, %c0_39] : memref<1x784xbf16, #tpu.memory_space<vmem>>, vector<1x784xbf16>
    %60 = arith.extf %59 : vector<1x784xbf16> to vector<1x784xf32>
    %61 = vector.broadcast %60 : vector<1x784xf32> to vector<128x784xf32>
    %62 = arith.addf %58, %61 : vector<128x784xf32>
    %63 = arith.negf %62 : vector<128x784xf32>
    %64 = math.exp %63 : vector<128x784xf32>
    %cst_40 = arith.constant 1.000000e+00 : f32
    %65 = vector.broadcast %cst_40 : f32 to vector<128x784xf32>
    %66 = arith.addf %65, %64 : vector<128x784xf32>
    %67 = arith.divf %65, %66 : vector<128x784xf32>
    %68 = vector.extract_strided_slice %31 {offsets = [0, 0], sizes = [128, 3], strides = [1, 1]} : vector<128x128xf32> to vector<128x3xf32>
    %c0_41 = arith.constant 0 : index
    %c0_42 = arith.constant 0 : index
    %69 = vector.load %arg18[%c0_41, %c0_42] : memref<128x3xf32, #tpu.memory_space<vmem>>, vector<128x3xf32>
    tpu.vector_store %arg18[%c0_41, %c0_42], %68 {strides = array<i32>} : memref<128x3xf32, #tpu.memory_space<vmem>>, vector<128x3xf32>,
    %70 = arith.truncf %67 : vector<128x784xf32> to vector<128x784xbf16>
    %c0_43 = arith.constant 0 : index
    %c0_44 = arith.constant 0 : index
    %71 = vector.load %arg19[%c0_43, %c0_44] : memref<128x784xbf16, #tpu.memory_space<vmem>>, vector<128x784xbf16>
    tpu.vector_store %arg19[%c0_43, %c0_44], %70 {strides = array<i32>} : memref<128x784xbf16, #tpu.memory_space<vmem>>, vector<128x784xbf16>,
    return
  }
  func.func @transform_0(%arg0: i32) -> (i32, i32) {
    %c0_i32 = arith.constant 0 : i32
    %c0_i32_0 = arith.constant 0 : i32
    return %arg0, %c0_i32 : i32, i32
  }
  func.func @transform_1(%arg0: i32) -> (i32, i32) {
    %c0_i32 = arith.constant 0 : i32
    %c0_i32_0 = arith.constant 0 : i32
    %c0_i32_1 = arith.constant 0 : i32
    return %c0_i32, %c0_i32_0 : i32, i32
  }
  func.func @transform_2(%arg0: i32) -> (i32, i32) {
    %c0_i32 = arith.constant 0 : i32
    %c0_i32_0 = arith.constant 0 : i32
    %c0_i32_1 = arith.constant 0 : i32
    return %c0_i32, %c0_i32_0 : i32, i32
  }
  func.func @transform_3(%arg0: i32) -> (i32, i32) {
    %c0_i32 = arith.constant 0 : i32
    %c0_i32_0 = arith.constant 0 : i32
    %c0_i32_1 = arith.constant 0 : i32
    return %c0_i32, %c0_i32_0 : i32, i32
  }
  func.func @transform_4(%arg0: i32) -> (i32, i32) {
    %c0_i32 = arith.constant 0 : i32
    %c0_i32_0 = arith.constant 0 : i32
    %c0_i32_1 = arith.constant 0 : i32
    return %c0_i32, %c0_i32_0 : i32, i32
  }
  func.func @transform_5(%arg0: i32) -> (i32, i32) {
    %c0_i32 = arith.constant 0 : i32
    %c0_i32_0 = arith.constant 0 : i32
    %c0_i32_1 = arith.constant 0 : i32
    return %c0_i32, %c0_i32_0 : i32, i32
  }
  func.func @transform_6(%arg0: i32) -> (i32, i32) {
    %c0_i32 = arith.constant 0 : i32
    %c0_i32_0 = arith.constant 0 : i32
    %c0_i32_1 = arith.constant 0 : i32
    return %c0_i32, %c0_i32_0 : i32, i32
  }
  func.func @transform_7(%arg0: i32) -> (i32, i32) {
    %c0_i32 = arith.constant 0 : i32
    %c0_i32_0 = arith.constant 0 : i32
    %c0_i32_1 = arith.constant 0 : i32
    return %c0_i32, %c0_i32_0 : i32, i32
  }
  func.func @transform_8(%arg0: i32) -> (i32, i32) {
    %c0_i32 = arith.constant 0 : i32
    %c0_i32_0 = arith.constant 0 : i32
    %c0_i32_1 = arith.constant 0 : i32
    return %c0_i32, %c0_i32_0 : i32, i32
  }
  func.func @transform_9(%arg0: i32) -> (i32, i32) {
    %c0_i32 = arith.constant 0 : i32
    %c0_i32_0 = arith.constant 0 : i32
    %c0_i32_1 = arith.constant 0 : i32
    return %c0_i32, %c0_i32_0 : i32, i32
  }
  func.func @transform_10(%arg0: i32) -> (i32, i32) {
    %c0_i32 = arith.constant 0 : i32
    %c0_i32_0 = arith.constant 0 : i32
    %c0_i32_1 = arith.constant 0 : i32
    return %c0_i32, %c0_i32_0 : i32, i32
  }
  func.func @transform_11(%arg0: i32) -> (i32, i32) {
    %c0_i32 = arith.constant 0 : i32
    %c0_i32_0 = arith.constant 0 : i32
    %c0_i32_1 = arith.constant 0 : i32
    return %c0_i32, %c0_i32_0 : i32, i32
  }
  func.func @transform_12(%arg0: i32) -> (i32, i32) {
    %c0_i32 = arith.constant 0 : i32
    %c0_i32_0 = arith.constant 0 : i32
    %c0_i32_1 = arith.constant 0 : i32
    return %c0_i32, %c0_i32_0 : i32, i32
  }
  func.func @transform_13(%arg0: i32) -> (i32, i32) {
    %c0_i32 = arith.constant 0 : i32
    %c0_i32_0 = arith.constant 0 : i32
    %c0_i32_1 = arith.constant 0 : i32
    return %c0_i32, %c0_i32_0 : i32, i32
  }
  func.func @transform_14(%arg0: i32) -> (i32, i32) {
    %c0_i32 = arith.constant 0 : i32
    %c0_i32_0 = arith.constant 0 : i32
    %c0_i32_1 = arith.constant 0 : i32
    return %c0_i32, %c0_i32_0 : i32, i32
  }
  func.func @transform_15(%arg0: i32) -> (i32, i32) {
    %c0_i32 = arith.constant 0 : i32
    %c0_i32_0 = arith.constant 0 : i32
    %c0_i32_1 = arith.constant 0 : i32
    return %c0_i32, %c0_i32_0 : i32, i32
  }
  func.func @transform_16(%arg0: i32) -> (i32, i32) {
    %c0_i32 = arith.constant 0 : i32
    %c0_i32_0 = arith.constant 0 : i32
    %c0_i32_1 = arith.constant 0 : i32
    return %c0_i32, %c0_i32_0 : i32, i32
  }
  func.func @transform_17(%arg0: i32) -> (i32, i32) {
    %c0_i32 = arith.constant 0 : i32
    %c0_i32_0 = arith.constant 0 : i32
    return %arg0, %c0_i32 : i32, i32
  }
  func.func @transform_18(%arg0: i32) -> (i32, i32) {
    %c0_i32 = arith.constant 0 : i32
    %c0_i32_0 = arith.constant 0 : i32
    return %arg0, %c0_i32 : i32, i32
  }
}

</mosaic_0001>

<bundles_post_ra>
// kernel: autoencoder_forward.1
= control target key start
LH: loop header
LB: loop body
LE: loop exit
PB: predicated region body
PF: predicated region fallthrough
CT: control target
= control target key end

     0   :  { %s6538_s27 = smov 0   ;;  %s7924_s0 = inlined_call_operand.vmem [shape: f32[512,784], index: 0, kind: input, shape index: {}]   ;;  %s7925_s1 = inlined_call_operand.vmem [shape: bf16[784,128], index: 1, kind: input, shape index: {}]   ;;  %s7926_s2 = inlined_call_operand.vmem [shape: bf16[1,128], index: 2, kind: input, shape index: {}]   ;;  %s7927_s3 = inlined_call_operand.vmem [shape: bf16[128,64], index: 3, kind: input, shape index: {}]   ;;  %s7928_s4 = inlined_call_operand.vmem [shape: bf16[1,64], index: 4, kind: input, shape index: {}]   ;;  %s7929_s5 = inlined_call_operand.vmem [shape: bf16[64,12], index: 5, kind: input, shape index: {}]   ;;  %s7930_s6 = inlined_call_operand.vmem [shape: bf16[1,12], index: 6, kind: input, shape index: {}]   ;;  %s7931_s7 = inlined_call_operand.vmem [shape: bf16[12,128], index: 7, kind: input, shape index: {}]   ;;  %s7932_s8 = inlined_call_operand.vmem [shape: bf16[1,128], index: 8, kind: input, shape index: {}]   ;;  %s7933_s9 = inlined_call_operand.vmem [shape: bf16[128,12], index: 9, kind: input, shape index: {}]   ;;  %s7934_s10 = inlined_call_operand.vmem [shape: bf16[1,12], index: 10, kind: input, shape index: {}]   ;;  %s7935_s11 = inlined_call_operand.vmem [shape: bf16[12,64], index: 11, kind: input, shape index: {}]   ;;  %s7936_s12 = inlined_call_operand.vmem [shape: bf16[1,64], index: 12, kind: input, shape index: {}]   ;;  %s7937_s13 = inlined_call_operand.vmem [shape: bf16[64,128], index: 13, kind: input, shape index: {}]   ;;  %s7938_s14 = inlined_call_operand.vmem [shape: bf16[1,128], index: 14, kind: input, shape index: {}]   ;;  %s7939_s15 = inlined_call_operand.vmem [shape: bf16[128,784], index: 15, kind: input, shape index: {}]   ;;  %s7940_s16 = inlined_call_operand.vmem [shape: bf16[1,784], index: 16, kind: input, shape index: {}]   ;;  %s7941_s17 = inlined_call_operand.vmem [shape: f32[512,3], index: 17, kind: output, shape index: {0}]   ;;  %s7942_s18 = inlined_call_operand.vmem [shape: bf16[512,784], index: 18, kind: output, shape index: {1}]  }
   0x1   :  { %7946 = sst [smem:[#allocation8_spill]] %s7924_s0 }
   0x2   :  { %7947 = sst [smem:[#allocation9_spill]] %s7925_s1 }
   0x3   :  { %7948 = sst [smem:[#allocation10_spill]] %s7926_s2 }
   0x4 LB: > { %s4713_s28 = sadd.s32 4294967295, %s6440_s27   ;;  %p4717_p0 = scmp.ge.s32.totalorder %s6440_s27, 1  ;;  %s6440_s27 = sphi %s6538_s27, %s29_s27  }
   0x5   : > { %p517_p1 = scmp.lt.s32.totalorder %s6440_s27, 5 }
   0x7   : > { %p518_p2 = pnand %p4717_p0, %p517_p1 }
   0x9   : > { %521 = sbr.rel (%p518_p2) target bundleno = 2196 (0x894), region = 88 }
  0x10   : > { %s7949_s0 = sld [smem:[#allocation9_spill]]  ;;  %s4718_s20 = sshll.u32 %s4713_s28, 4  ;;  %vm1165_vm0 = vcmask 130048   ;;  %vm2015_vm1 = vcmask 1045504   ;;  %vm1831_vm2 = vcmask 523264   ;;  %vm1990_vm3 = vcmask 97280  }
  0x11   : > { %p579_p3 = scmp.lt.s32.totalorder %s4718_s20, 63  ;;  %s7950_s30 = sld [smem:[#allocation8_spill]]  ;;  %vm4187_vm4 = vcmask 23552   ;;  %vm4559_vm5 = vcmask 125952  }
  0x13   : > { %s7967_s20 = smov (!%p579_p3, %s4718_s20), 63 }
  0x14   : > { %s5628_s19 = smul.u32 56, %s7967_s20  ;;  %s4721_s22 = sshll.u32 %s7967_s20, 3 }
  0x15   : > { %s7042_s23 = scalar_lea.vmem %s7941_s17, %s4721_s22  ;;  %s5629_s22 = smul.u32 28, %s7967_s20 }
  0x16   : > { %v5639_v0 = vld [vmem:[%s7949_s0 + $0x40] sm:$0xff]   ;;  %v5643_v4 = vld [vmem:[%s7949_s0 + $0x48] sm:$0xff]   ;;  %v5647_v8 = vld [vmem:[%s7949_s0 + $0x50] sm:$0xff]  }
  0x17   : > { %v5640_v1 = vld [vmem:[%s7949_s0] sm:$0xff]   ;;  %5137 = vmatprep.subr.bf16.mxu0 %v5639_v0  ;;  %v5644_v5 = vld [vmem:[%s7949_s0 + $0x8] sm:$0xff]   ;;  %v5648_v9 = vld [vmem:[%s7949_s0 + $0x10] sm:$0xff]   ;;  %s6641_s1 = scalar_lea.vmem %s7950_s30, %s5628_s19  ;;  %s7454_s2 = scalar_lea.vmem %s7942_s18, %s5629_s22 }
  0x18   : > { %v5641_v2 = vld [vmem:[%s7949_s0 + $0xc0] sm:$0xff]   ;;  %5138 = vmatpush3.bf16.msra.mxu0 %v5640_v1  ;;  %v5645_v6 = vld [vmem:[%s7949_s0 + $0xc8] sm:$0xff]   ;;  %v5649_v10 = vld [vmem:[%s7949_s0 + $0xd0] sm:$0xff]  }
  0x19   : > { %v5642_v3 = vld [vmem:[%s7949_s0 + $0x80] sm:$0xff]   ;;  %5201 = vmatprep.subr.bf16.mxu1 %v5641_v2  ;;  %5139 = vmatprep.subr.bf16.mxu0 %v5643_v4  ;;  %v5646_v7 = vld [vmem:[%s7949_s0 + $0x88] sm:$0xff]   ;;  %v5650_v11 = vld [vmem:[%s7949_s0 + $0x90] sm:$0xff]  }
  0x1a   : > { %5202 = vmatpush3.bf16.msra.mxu1 %v5642_v3  ;;  %v5651_v12 = vld [vmem:[%s7949_s0 + $0x58] sm:$0xff]   ;;  %v5655_v16 = vld [vmem:[%s7949_s0 + $0x60] sm:$0xff]   ;;  %v5659_v20 = vld [vmem:[%s7949_s0 + $0x68] sm:$0xff]  }
  0x1b   : > { %5203 = vmatprep.subr.bf16.mxu1 %v5645_v6  ;;  %v5652_v13 = vld [vmem:[%s7949_s0 + $0x18] sm:$0xff]   ;;  %v5656_v17 = vld [vmem:[%s7949_s0 + $0x20] sm:$0xff]   ;;  %v5660_v21 = vld [vmem:[%s7949_s0 + $0x28] sm:$0xff]  }
  0x1c   : > { %5140 = vmatpush3.bf16.msra.mxu0 %v5644_v5  ;;  %v5653_v14 = vld [vmem:[%s7949_s0 + $0xd8] sm:$0xff]   ;;  %v5657_v18 = vld [vmem:[%s7949_s0 + $0xe0] sm:$0xff]   ;;  %v5661_v22 = vld [vmem:[%s7949_s0 + $0xe8] sm:$0xff]  }
  0x1d   : > { %5141 = vmatprep.subr.bf16.mxu0 %v5647_v8  ;;  %v5654_v15 = vld [vmem:[%s7949_s0 + $0x98] sm:$0xff]   ;;  %v5658_v19 = vld [vmem:[%s7949_s0 + $0xa0] sm:$0xff]   ;;  %v5662_v23 = vld [vmem:[%s7949_s0 + $0xa8] sm:$0xff]  }
  0x1e   : > { %5204 = vmatpush3.bf16.msra.mxu1 %v5646_v7  ;;  %v5663_v24 = vld [vmem:[%s7949_s0 + $0x70] sm:$0xff]   ;;  %v5667_v28 = vld [vmem:[%s7949_s0 + $0x78] sm:$0xff]   ;;  %v600_v31 = vld [vmem:[%s6641_s1 + $0x8] sm:$0xff] }
  0x1f   : > { %5205 = vmatprep.subr.bf16.mxu1 %v5649_v10  ;;  %v5664_v25 = vld [vmem:[%s7949_s0 + $0x30] sm:$0xff]   ;;  %v5668_v29 = vld [vmem:[%s7949_s0 + $0x38] sm:$0xff]   ;;  %v607_v32 = vld [vmem:[%s6641_s1 + $0x40] sm:$0xff] }
  0x20   : > { %5142 = vmatpush3.bf16.msra.mxu0 %v5648_v9  ;;  %v5665_v26 = vld [vmem:[%s7949_s0 + $0xf0] sm:$0xff]   ;;  %v5669_v30 = vld [vmem:[%s7949_s0 + $0xf8] sm:$0xff]   ;;  %v712_v33 = vpack.c.bf16 %v607_v32, %v600_v31  ;;  %v599_v35 = vld [vmem:[%s6641_s1] sm:$0xff] }
  0x21   : > { %5143 = vmatprep.subr.bf16.mxu0 %v5651_v12  ;;  %v5666_v27 = vld [vmem:[%s7949_s0 + $0xb0] sm:$0xff]   ;;  %v5670_v34 = vld [vmem:[%s7949_s0 + $0xb8] sm:$0xff]   ;;  %v5671_v38 = vld [vmem:[%s7949_s0 + $0x140] sm:$0xff]  }
  0x22   : > { %5206 = vmatpush3.bf16.msra.mxu1 %v5650_v11  ;;  %v606_v36 = vld [vmem:[%s6641_s1 + $0x38] sm:$0xff]  ;;  %1222 = vmatprep.mubr.bf16.mxu0 %v712_v33  ;;  %v609_v40 = vld [vmem:[%s6641_s1 + $0x50] sm:$0xff]  ;;  %v5672_v42 = vld [vmem:[%s7949_s0 + $0x100] sm:$0xff]  }
  0x23   : > { %5207 = vmatprep.subr.bf16.mxu1 %v5653_v14  ;;  %v711_v37 = vpack.c.bf16 %v606_v36, %v599_v35  ;;  %v602_v39 = vld [vmem:[%s6641_s1 + $0x18] sm:$0xff]  ;;  %v601_v43 = vld [vmem:[%s6641_s1 + $0x10] sm:$0xff]  ;;  %v608_v44 = vld [vmem:[%s6641_s1 + $0x48] sm:$0xff] }
  0x24   : > { %5144 = vmatpush3.bf16.msra.mxu0 %v5652_v13  ;;  %v714_v41 = vpack.c.bf16 %v609_v40, %v602_v39  ;;  %v614_v45 = vld [vmem:[%s6641_s1 + $0x78] sm:$0xff]  ;;  %v713_v46 = vpack.c.bf16 %v608_v44, %v601_v43  ;;  %v621_v47 = vld [vmem:[%s6641_s1 + $0xb0] sm:$0xff]  ;;  %v620_v49 = vld [vmem:[%s6641_s1 + $0xa8] sm:$0xff] }
  0x25   : > { %5145 = vmatprep.subr.bf16.mxu0 %v5655_v16  ;;  %v613_v48 = vld [vmem:[%s6641_s1 + $0x70] sm:$0xff]  ;;  %v719_v50 = vpack.c.bf16 %v621_v47, %v614_v45  ;;  %v5673_v51 = vld [vmem:[%s7949_s0 + $0x148] sm:$0xff]   ;;  %v623_v53 = vld [vmem:[%s6641_s1 + $0xc0] sm:$0xff] }
  0x26   : > { %5208 = vmatpush3.bf16.msra.mxu1 %v5654_v15  ;;  %1319 = vmatprep.mubr.bf16.mxu1 %v714_v41  ;;  %v616_v52 = vld [vmem:[%s6641_s1 + $0x88] sm:$0xff]  ;;  %v718_v54 = vpack.c.bf16 %v620_v49, %v613_v48  ;;  %v615_v57 = vld [vmem:[%s6641_s1 + $0x80] sm:$0xff]  ;;  %v622_v58 = vld [vmem:[%s6641_s1 + $0xb8] sm:$0xff] }
  0x27   : > { %5209 = vmatprep.subr.bf16.mxu1 %v5657_v18  ;;  %v721_v55 = vpack.c.bf16 %v623_v53, %v616_v52  ;;  %v5674_v56 = vld [vmem:[%s7949_s0 + $0x108] sm:$0xff]   ;;  %v5675_v59 = vld [vmem:[%s7949_s0 + $0x180] sm:$0xff]   ;;  %v720_v62 = vpack.c.bf16 %v622_v58, %v615_v57  ;;  %v634_v1 = vld [vmem:[%s6641_s1 + $0x118] sm:$0xff] }
  0x28   : > { %5146 = vmatpush3.bf16.msra.mxu0 %v5656_v17  ;;  %v628_v60 = vld [vmem:[%s6641_s1 + $0xe8] sm:$0xff]  ;;  %v635_v61 = vld [vmem:[%s6641_s1 + $0x120] sm:$0xff]  ;;  %v5676_v2 = vld [vmem:[%s7949_s0 + $0x150] sm:$0xff]  }
  0x29   : > { %5147 = vmatprep.subr.bf16.mxu0 %v5659_v20  ;;  %v726_v63 = vpack.c.bf16 %v635_v61, %v628_v60  ;;  %v627_v0 = vld [vmem:[%s6641_s1 + $0xe0] sm:$0xff]  ;;  %v630_v3 = vld [vmem:[%s6641_s1 + $0xf8] sm:$0xff]  ;;  %v637_v4 = vld [vmem:[%s6641_s1 + $0x130] sm:$0xff] }
  0x2a   : > { %5210 = vmatpush3.bf16.msra.mxu1 %v5658_v19  ;;  %v728_v5 = vpack.c.bf16 %v637_v4, %v630_v3  ;;  %v5677_v6 = vld [vmem:[%s7949_s0 + $0x110] sm:$0xff]   ;;  %v642_v8 = vld [vmem:[%s6641_s1 + $0x158] sm:$0xff]  ;;  %v725_v10 = vpack.c.bf16 %v634_v1, %v627_v0  ;;  %v636_v11 = vld [vmem:[%s6641_s1 + $0x128] sm:$0xff] }
  0x2b   : > { %5211 = vmatprep.subr.bf16.mxu1 %v5661_v22  ;;  %v629_v7 = vld [vmem:[%s6641_s1 + $0xf0] sm:$0xff]  ;;  %v5678_v13 = vld [vmem:[%s7949_s0 + $0x158] sm:$0xff]   ;;  %v644_v14 = vld [vmem:[%s6641_s1 + $0x168] sm:$0xff] }
  0x2c   : > { %5148 = vmatpush3.bf16.msra.mxu0 %v5660_v21  ;;  %v649_v9 = vld [vmem:[%s6641_s1 + $0x190] sm:$0xff]  ;;  %v651_v15 = vld [vmem:[%s6641_s1 + $0x1a0] sm:$0xff]  ;;  %v5679_v16 = vld [vmem:[%s7949_s0 + $0x118] sm:$0xff]   ;;  %v727_v17 = vpack.c.bf16 %v636_v11, %v629_v7 }
  0x2d   : > { %5149 = vmatprep.subr.bf16.mxu0 %v5663_v24  ;;  %v733_v12 = vpack.c.bf16 %v649_v9, %v642_v8  ;;  %v641_v18 = vld [vmem:[%s6641_s1 + $0x150] sm:$0xff]  ;;  %v648_v19 = vld [vmem:[%s6641_s1 + $0x188] sm:$0xff]  ;;  %v735_v20 = vpack.c.bf16 %v651_v15, %v644_v14  ;;  %v5680_v21 = vld [vmem:[%s7949_s0 + $0x160] sm:$0xff]  }
  0x2e   : > { %5212 = vmatpush3.bf16.msra.mxu1 %v5662_v23  ;;  %v656_v22 = vld [vmem:[%s6641_s1 + $0x1c8] sm:$0xff]  ;;  %v663_v23 = vld [vmem:[%s6641_s1 + $0x200] sm:$0xff]  ;;  %v662_v36 = vld [vmem:[%s6641_s1 + $0x1f8] sm:$0xff] }
  0x2f   : > { %5213 = vmatprep.subr.bf16.mxu1 %v5665_v26  ;;  %v5681_v24 = vld [vmem:[%s7949_s0 + $0x120] sm:$0xff]   ;;  %v5682_v31 = vld [vmem:[%s7949_s0 + $0x168] sm:$0xff]   ;;  %v657_v39 = vld [vmem:[%s6641_s1 + $0x1d0] sm:$0xff] }
  0x30   : > { %5150 = vmatpush3.bf16.msra.mxu0 %v5664_v25  ;;  %v732_v25 = vpack.c.bf16 %v648_v19, %v641_v18  ;;  %v643_v26 = vld [vmem:[%s6641_s1 + $0x160] sm:$0xff]  ;;  %v664_v40 = vld [vmem:[%s6641_s1 + $0x208] sm:$0xff]  ;;  %v5684_v41 = vld [vmem:[%s7949_s0 + $0x170] sm:$0xff]  }
  0x31   : > { %5151 = vmatprep.subr.bf16.mxu0 %v5667_v28  ;;  %v740_v28 = vpack.c.bf16 %v663_v23, %v656_v22  ;;  %v655_v35 = vld [vmem:[%s6641_s1 + $0x1c0] sm:$0xff]  ;;  %v5685_v43 = vld [vmem:[%s7949_s0 + $0x130] sm:$0xff]   ;;  %v672_v45 = vld [vmem:[%s6641_s1 + $0x248] sm:$0xff]  ;;  %v741_v47 = vpack.c.bf16 %v664_v40, %v657_v39 }
  0x32   : > { %5214 = vmatpush3.bf16.msra.mxu1 %v5666_v27  ;;  %v650_v27 = vld [vmem:[%s6641_s1 + $0x198] sm:$0xff]  ;;  %v669_v49 = vld [vmem:[%s6641_s1 + $0x230] sm:$0xff]  ;;  %v684_v53 = vld [vmem:[%s6641_s1 + $0x2a8] sm:$0xff] }
  0x33   : > { %5215 = vmatprep.subr.bf16.mxu1 %v5669_v30  ;;  %v665_v30 = vld [vmem:[%s6641_s1 + $0x210] sm:$0xff]  ;;  %v734_v32 = vpack.c.bf16 %v650_v27, %v643_v26  ;;  %v5686_v48 = vld [vmem:[%s7949_s0 + $0x178] sm:$0xff]   ;;  %v700_v7 = vld [vmem:[%s6641_s1 + $0x328] sm:$0xff] }
  0x34   : > { %5152 = vmatpush3.bf16.msra.mxu0 %v5668_v29  ;;  %v658_v29 = vld [vmem:[%s6641_s1 + $0x1d8] sm:$0xff]  ;;  %v693_v60 = vld [vmem:[%s6641_s1 + $0x2f0] sm:$0xff]  ;;  %v707_v8 = vld [vmem:[%s6641_s1 + $0x360] sm:$0xff] }
  0x35   : > { %5265 = vmatprep.subr.bf16.mxu0 %v5671_v38  ;;  %v742_v33 = vpack.c.bf16 %v665_v30, %v658_v29  ;;  %v677_v38 = vld [vmem:[%s6641_s1 + $0x270] sm:$0xff]  ;;  %v5687_v52 = vld [vmem:[%s7949_s0 + $0x138] sm:$0xff]   ;;  %v699_v14 = vld [vmem:[%s6641_s1 + $0x320] sm:$0xff] }
  0x36   : > { %5216 = vmatpush3.bf16.msra.mxu1 %v5670_v34  ;;  %v5683_v34 = vld [vmem:[%s7949_s0 + $0x128] sm:$0xff]   ;;  %v678_v57 = vld [vmem:[%s6641_s1 + $0x278] sm:$0xff]  ;;  %v685_v4 = vld [vmem:[%s6641_s1 + $0x2b0] sm:$0xff] }
  0x37   : > { %1223 = vmatmul.mubr.bf16.vlgmr.msra.gmra.mrb[0].mxu0 %v711_v37  ;;  %5428 = vmatprep.subr.bf16.mxu1 %v5675_v59  ;;  %v670_v37 = vld [vmem:[%s6641_s1 + $0x238] sm:$0xff]  ;;  %v697_v11 = vld [vmem:[%s6641_s1 + $0x310] sm:$0xff]  ;;  %v612_v18 = vld [vmem:[%s6641_s1 + $0x68] sm:$0xff] }
  0x38   : > { %5266 = vmatpush3.bf16.msra.mxu0 %v5672_v42  ;;  %1230 = vmatprep.mubr.bf16.mxu0 %v719_v50  ;;  %v739_v42 = vpack.c.bf16 %v662_v36, %v655_v35  ;;  %v747_v44 = vpack.c.bf16 %v677_v38, %v670_v37  ;;  %v690_v0 = vld [vmem:[%s6641_s1 + $0x2d8] sm:$0xff]  ;;  %v603_v22 = vld [vmem:[%s6641_s1 + $0x20] sm:$0xff]  ;;  %v625_v26 = vld [vmem:[%s6641_s1 + $0xd0] sm:$0xff] }
  0x39   : > { %1320 = vmatmul.mubr.bf16.vlgmr.msra.gmra.mrb[0].mxu1 %v713_v46  ;;  %5267 = vmatprep.subr.bf16.mxu0 %v5673_v51  ;;  %v679_v46 = vld [vmem:[%s6641_s1 + $0x280] sm:$0xff]  ;;  %v676_v51 = vld [vmem:[%s6641_s1 + $0x268] sm:$0xff]  ;;  %v698_v1 = vld [vmem:[%s6641_s1 + $0x318] sm:$0xff] }
  0x3a   : > { %1327 = vmatprep.mubr.bf16.mxu1 %v721_v55  ;;  %5429 = vmatpush3.bf16.msra.mxu1 %v5675_v59  ;;  %v749_v50 = vpack.c.bf16 %v679_v46, %v672_v45  ;;  %v746_v55 = vpack.c.bf16 %v676_v51, %v669_v49  ;;  %v686_v59 = vld [vmem:[%s6641_s1 + $0x2b8] sm:$0xff]  ;;  %v619_v27 = vld [vmem:[%s6641_s1 + $0xa0] sm:$0xff]  ;;  %v633_v29 = vld [vmem:[%s6641_s1 + $0x110] sm:$0xff] }
  0x3b   : > { %v706_v15 = vld [vmem:[%s6641_s1 + $0x358] sm:$0xff]  ;;  %v640_v30 = vld [vmem:[%s6641_s1 + $0x148] sm:$0xff]  ;;  %v639_v37 = vld [vmem:[%s6641_s1 + $0x140] sm:$0xff] }
  0x3c   : > { %5268 = vmatpush3.bf16.msra.mxu0 %v5674_v56  ;;  %v671_v56 = vld [vmem:[%s6641_s1 + $0x240] sm:$0xff]  ;;  %v610_v23 = vld [vmem:[%s6641_s1 + $0x58] sm:$0xff]  ;;  %v624_v35 = vld [vmem:[%s6641_s1 + $0xc8] sm:$0xff]  ;;  %v731_v38 = vpack.c.bf16 %v640_v30, %v633_v29 }
  0x3d   : > { %5269 = vmatprep.subr.bf16.mxu0 %v5676_v2  ;;  %v748_v61 = vpack.c.bf16 %v678_v57, %v671_v56  ;;  %v705_v2 = vld [vmem:[%s6641_s1 + $0x350] sm:$0xff]  ;;  %v632_v36 = vld [vmem:[%s6641_s1 + $0x108] sm:$0xff]  ;;  %v647_v39 = vld [vmem:[%s6641_s1 + $0x180] sm:$0xff] }
  0x3e   : > { %v654_v40 = vld [vmem:[%s6641_s1 + $0x1b8] sm:$0xff]  ;;  %v631_v45 = vld [vmem:[%s6641_s1 + $0x100] sm:$0xff]  ;;  %v653_v49 = vld [vmem:[%s6641_s1 + $0x1b0] sm:$0xff] }
  0x3f   : > { %1231 = vmatmul.mubr.bf16.gmra.mrb[4].mxu0 %v718_v54  ;;  %v691_v54 = vld [vmem:[%s6641_s1 + $0x2e0] sm:$0xff]  ;;  %v638_v46 = vld [vmem:[%s6641_s1 + $0x138] sm:$0xff]  ;;  %v645_v57 = vld [vmem:[%s6641_s1 + $0x170] sm:$0xff] }
  0x40   : > { %1238 = vmatprep.mubr.bf16.mxu0 %v726_v63  ;;  %5270 = vmatpush3.bf16.msra.mxu0 %v5677_v6  ;;  %v754_v58 = vpack.c.bf16 %v691_v54, %v684_v53  ;;  %v683_v63 = vld [vmem:[%s6641_s1 + $0x2a0] sm:$0xff]  ;;  %v761_v6 = vpack.c.bf16 %v705_v2, %v698_v1  ;;  %v689_v53 = vld [vmem:[%s6641_s1 + $0x2d0] sm:$0xff]  ;;  %v696_v54 = vld [vmem:[%s6641_s1 + $0x308] sm:$0xff] }
  0x41   : > { %1328 = vmatmul.mubr.bf16.gmra.mrb[4].mxu1 %v720_v62  ;;  %5271 = vmatprep.subr.bf16.mxu0 %v5678_v13  ;;  %v756_v62 = vpack.c.bf16 %v693_v60, %v686_v59  ;;  %v753_v3 = vpack.c.bf16 %v690_v0, %v683_v63  ;;  %v604_v13 = vld [vmem:[%s6641_s1 + $0x28] sm:$0xff]  ;;  %v675_v51 = vld [vmem:[%s6641_s1 + $0x260] sm:$0xff]  ;;  %v710_v0 = vld [vmem:[%s6641_s1 + $0x378] sm:$0xff] }
  0x42   : > { %1335 = vmatprep.mubr.bf16.mxu1 %v728_v5  ;;  %v692_v5 = vld [vmem:[%s6641_s1 + $0x2e8] sm:$0xff]  ;;  %v703_v63 = vld [vmem:[%s6641_s1 + $0x340] sm:$0xff] }
  0x43   : > { %v755_v9 = vpack.c.bf16 %v692_v5, %v685_v4  ;;  %v660_v60 = vld [vmem:[%s6641_s1 + $0x1e8] sm:$0xff]  ;;  %v659_v4 = vld [vmem:[%s6641_s1 + $0x1e0] sm:$0xff]  ;;  %v666_v5 = vld [vmem:[%s6641_s1 + $0x218] sm:$0xff] }
  0x44   : > { %5272 = vmatpush3.bf16.msra.mxu0 %v5679_v16  ;;  %v611_v16 = vld [vmem:[%s6641_s1 + $0x60] sm:$0xff]  ;;  %v5693_v30 = vld [vmem:[%s7927_s3 + $0x28] sm:$0xff]  }
  0x45   : > { %5273 = vmatprep.subr.bf16.mxu0 %v5680_v21  ;;  %v762_v21 = vpack.c.bf16 %v706_v15, %v699_v14  ;;  %v5692_v29 = vld [vmem:[%s7927_s3 + $0x20] sm:$0xff]  }
  0x47   : > { %1239 = vmatmul.mubr.bf16.gmra.mrb[8].mxu0 %v725_v10  ;;  %v763_v10 = vpack.c.bf16 %v707_v8, %v700_v7  ;;  %v681_v7 = vld [vmem:[%s6641_s1 + $0x290] sm:$0xff]  ;;  %v743_v8 = vpack.c.bf16 %v666_v5, %v659_v4 }
  0x48   : > { %1246 = vmatprep.mubr.bf16.mxu0 %v733_v12  ;;  %5274 = vmatpush3.bf16.msra.mxu0 %v5681_v24  ;;  %v704_v12 = vld [vmem:[%s6641_s1 + $0x348] sm:$0xff] }
  0x49   : > { %1336 = vmatmul.mubr.bf16.gmra.mrb[8].mxu1 %v727_v17  ;;  %5275 = vmatprep.subr.bf16.mxu0 %v5682_v31  ;;  %v605_v17 = vld [vmem:[%s6641_s1 + $0x30] sm:$0xff]  ;;  %v760_v19 = vpack.c.bf16 %v704_v12, %v697_v11  ;;  %v715_v31 = vpack.c.bf16 %v610_v23, %v603_v22  ;;  %v680_v11 = vld [vmem:[%s6641_s1 + $0x288] sm:$0xff] }
  0x4a   : > { %1343 = vmatprep.mubr.bf16.mxu1 %v735_v20  ;;  %v716_v20 = vpack.c.bf16 %v611_v16, %v604_v13  ;;  %v717_v24 = vpack.c.bf16 %v612_v18, %v605_v17  ;;  %v688_v12 = vld [vmem:[%s6641_s1 + $0x2c8] sm:$0xff]  ;;  %v695_v13 = vld [vmem:[%s6641_s1 + $0x300] sm:$0xff]  ;;  %v694_v17 = vld [vmem:[%s6641_s1 + $0x2f8] sm:$0xff] }
  0x4b   : > { %v758_v15 = vpack.c.bf16 %v695_v13, %v688_v12  ;;  %v687_v16 = vld [vmem:[%s6641_s1 + $0x2c0] sm:$0xff]  ;;  %v702_v18 = vld [vmem:[%s6641_s1 + $0x338] sm:$0xff]  ;;  %v701_v22 = vld [vmem:[%s6641_s1 + $0x330] sm:$0xff] }
  0x4c   : > { %5276 = vmatpush3.bf16.msra.mxu0 %v5683_v34  ;;  %v617_v34 = vld [vmem:[%s6641_s1 + $0x90] sm:$0xff]  ;;  %v708_v23 = vld [vmem:[%s6641_s1 + $0x368] sm:$0xff] }
  0x4d   : > { %5277 = vmatprep.subr.bf16.mxu0 %v5684_v41  ;;  %v661_v41 = vld [vmem:[%s6641_s1 + $0x1f0] sm:$0xff] }
  0x4f   : > { %1247 = vmatmul.mubr.bf16.gmra.mrb[12].mxu0 %v732_v25  ;;  %v618_v25 = vld [vmem:[%s6641_s1 + $0x98] sm:$0xff] }
  0x50   : > { %1254 = vmatprep.mubr.bf16.mxu0 %v740_v28  ;;  %5278 = vmatpush3.bf16.msra.mxu0 %v5685_v43  ;;  %v626_v28 = vld [vmem:[%s6641_s1 + $0xd8] sm:$0xff]  ;;  %v722_v43 = vpack.c.bf16 %v624_v35, %v617_v34 }
  0x51   : > { %1344 = vmatmul.mubr.bf16.gmra.mrb[12].mxu1 %v734_v32  ;;  %5279 = vmatprep.subr.bf16.mxu0 %v5686_v48  ;;  %v723_v32 = vpack.c.bf16 %v625_v26, %v618_v25  ;;  %v646_v48 = vld [vmem:[%s6641_s1 + $0x178] sm:$0xff]  ;;  %v5688_v25 = vld [vmem:[%s7927_s3] sm:$0xff]   ;;  %v5689_v26 = vld [vmem:[%s7927_s3 + $0x8] sm:$0xff]  }
  0x52   : > { %1351 = vmatprep.mubr.bf16.mxu1 %v742_v33  ;;  %v724_v33 = vpack.c.bf16 %v626_v28, %v619_v27  ;;  %v737_v56 = vpack.c.bf16 %v653_v49, %v646_v48  ;;  %5446 = vmatprep.subr.bf16.mxu1 %v5688_v25  ;;  %v5690_v27 = vld [vmem:[%s7927_s3 + $0x10] sm:$0xff]   ;;  %v5691_v28 = vld [vmem:[%s7927_s3 + $0x18] sm:$0xff]  }
  0x54   : > { %5280 = vmatpush3.bf16.msra.mxu0 %v5687_v52  ;;  %v682_v52 = vld [vmem:[%s6641_s1 + $0x298] sm:$0xff] }
  0x55   : > { %v752_v59 = vpack.c.bf16 %v682_v52, %v675_v51 }
  0x57   : > { %1255 = vmatmul.mubr.bf16.gmra.mrb[16].mxu0 %v739_v42  ;;  %v668_v42 = vld [vmem:[%s6641_s1 + $0x228] sm:$0xff] }
  0x58   : > { %1262 = vmatprep.mubr.bf16.mxu0 %v747_v44  ;;  %v730_v44 = vpack.c.bf16 %v639_v37, %v632_v36 }
  0x59   : > { %1352 = vmatmul.mubr.bf16.gmra.mrb[16].mxu1 %v741_v47  ;;  %v738_v47 = vpack.c.bf16 %v654_v40, %v647_v39 }
  0x5a   : > { %1359 = vmatprep.mubr.bf16.mxu1 %v749_v50  ;;  %v745_v50 = vpack.c.bf16 %v668_v42, %v661_v41 }
  0x5f   : > { %1263 = vmatmul.mubr.bf16.gmra.mrb[20].mxu0 %v746_v55  ;;  %v729_v55 = vpack.c.bf16 %v638_v46, %v631_v45 }
  0x60   : > { %1270 = vmatprep.mubr.bf16.mxu0 %v754_v58  ;;  %v652_v58 = vld [vmem:[%s6641_s1 + $0x1a8] sm:$0xff] }
  0x61   : > { %1360 = vmatmul.mubr.bf16.gmra.mrb[20].mxu1 %v748_v61  ;;  %v667_v61 = vld [vmem:[%s6641_s1 + $0x220] sm:$0xff]  ;;  %v736_v1 = vpack.c.bf16 %v652_v58, %v645_v57 }
  0x62   : > { %1367 = vmatprep.mubr.bf16.mxu1 %v756_v62  ;;  %v759_v62 = vpack.c.bf16 %v696_v54, %v689_v53  ;;  %v744_v2 = vpack.c.bf16 %v667_v61, %v660_v60 }
  0x67   : > { %1271 = vmatmul.mubr.bf16.gmra.mrb[24].mxu0 %v753_v3  ;;  %v766_v3 = vpack.c.bf16 %v710_v0, %v703_v63 }
  0x68   : > { %1278 = vmatprep.mubr.bf16.mxu0 %v761_v6  ;;  %v674_v6 = vld [vmem:[%s6641_s1 + $0x258] sm:$0xff] }
  0x69   : > { %1368 = vmatmul.mubr.bf16.gmra.mrb[24].mxu1 %v755_v9  ;;  %v751_v9 = vpack.c.bf16 %v681_v7, %v674_v6  ;;  %v5696_v6 = vld [vmem:[%s7929_s5] sm:$0xff]   ;;  %v5697_v7 = vld [vmem:[%s7929_s5 + $0x8] sm:$0xff]  }
  0x6a   : > { %1375 = vmatprep.mubr.bf16.mxu1 %v763_v10  ;;  %v673_v10 = vld [vmem:[%s6641_s1 + $0x250] sm:$0xff]  ;;  %5478 = vmatprep.subr.bf16.mxu0 %v5696_v6 }
  0x6b   : > { %v750_v14 = vpack.c.bf16 %v680_v11, %v673_v10 }
  0x6f   : > { %1279 = vmatmul.mubr.bf16.gmra.mrb[28].mxu0 %v760_v19  ;;  %v709_v19 = vld [vmem:[%s6641_s1 + $0x370] sm:$0xff]  ;;  %s7951_s1 = sld [smem:[#allocation10_spill]] }
  0x70   : > { %1416 = vmatprep.mubr.bf16.mxu0 %v716_v20  ;;  %v757_v20 = vpack.c.bf16 %v694_v17, %v687_v16 }
  0x71   : > { %1376 = vmatmul.mubr.bf16.gmra.mrb[28].mxu1 %v762_v21  ;;  %v765_v21 = vpack.c.bf16 %v709_v19, %v702_v18 }
  0x72   : > { %5430 = vmatprep.mubr.msk.bf16.mxu1 %vm1165_vm0, %v717_v24  ;;  %v764_v24 = vpack.c.bf16 %v708_v23, %v701_v22 }
  0x75   : > { %v865_v35 = vld [vmem:[%s7951_s1] sm:$0x1] }
  0x76   : > { %v866_v36 = vunpack.c.l.bf16 %v865_v35 }
  0x77   : > { %1417 = vmatmul.mubr.bf16.vlgmr.msra.gmra.mrb[32].mxu0 %v715_v31  ;;  %v5694_v31 = vld [vmem:[%s7927_s3 + $0x30] sm:$0xff]  }
  0x78   : > { %1424 = vmatprep.mubr.bf16.mxu0 %v723_v32  ;;  %v5695_v32 = vld [vmem:[%s7927_s3 + $0x38] sm:$0xff]   ;;  %5479 = vmatpush3.bf16.msra.mxu0 %v5696_v6 }
  0x79   : > { %5431 = vmatmul.mubr.msk.bf16.vlgmr.msra.gmra.mrb[32].mxu1 %vm1165_vm0, %v724_v33  ;;  %v867_v33 = vlaneseq  ;;  %5480 = vmatprep.subr.bf16.mxu0 %v5697_v7 }
  0x7a   : > { %5434 = vmatprep.mubr.msk.bf16.mxu1 %vm1165_vm0, %v731_v38  ;;  %5447 = vmatpush3.bf16.msra.mxu1 %v5688_v25 }
  0x7b   : > { %5448 = vmatprep.subr.bf16.mxu1 %v5689_v26  ;;  %v6847_v34 = vshrl.u32 %v867_v33, 7 }
  0x7c   : > { %5481 = vmatpush3.bf16.msra.mxu0 %v5697_v7 }
  0x7d   : > { %v6853_v37 = vsub.s32 0, %v6847_v34 }
  0x7e   : > { %5449 = vmatpush3.bf16.msra.mxu1 %v5689_v26 }
  0x7f   : > { %1425 = vmatmul.mubr.bf16.gmra.mrb[36].mxu0 %v722_v43  ;;  %5450 = vmatprep.subr.bf16.mxu1 %v5690_v27  ;;  %v6856_v39 = vrot.slane %v866_v36, %v6853_v37 }
  0x80   : > { %1432 = vmatprep.mubr.bf16.mxu0 %v730_v44 }
  0x81   : > { %5435 = vmatmul.mubr.msk.bf16.gmra.mrb[36].mxu1 %vm1165_vm0, %v738_v47 }
  0x82   : > { %5438 = vmatprep.mubr.msk.bf16.mxu1 %vm1165_vm0, %v745_v50  ;;  %5451 = vmatpush3.bf16.msra.mxu1 %v5690_v27 }
  0x83   : > { %5452 = vmatprep.subr.bf16.mxu1 %v5691_v28 }
  0x86   : > { %5453 = vmatpush3.bf16.msra.mxu1 %v5691_v28 }
  0x87   : > { %1433 = vmatmul.mubr.bf16.gmra.mrb[40].mxu0 %v729_v55  ;;  %5454 = vmatprep.subr.bf16.mxu1 %v5692_v29 }
  0x88   : > { %1440 = vmatprep.mubr.bf16.mxu0 %v737_v56 }
  0x89   : > { %5439 = vmatmul.mubr.msk.bf16.gmra.mrb[40].mxu1 %vm1165_vm0, %v752_v59 }
  0x8a   : > { %5442 = vmatprep.mubr.msk.bf16.mxu1 %vm1165_vm0, %v759_v62  ;;  %5455 = vmatpush3.bf16.msra.mxu1 %v5692_v29 }
  0x8b   : > { %5456 = vmatprep.subr.bf16.mxu1 %v5693_v30 }
  0x8e   : > { %5457 = vmatpush3.bf16.msra.mxu1 %v5693_v30 }
  0x8f   : > { %1441 = vmatmul.mubr.bf16.gmra.mrb[44].mxu0 %v736_v1  ;;  %5458 = vmatprep.subr.bf16.mxu1 %v5694_v31 }
  0x90   : > { %1448 = vmatprep.mubr.bf16.mxu0 %v744_v2 }
  0x91   : > { %5443 = vmatmul.mubr.msk.bf16.gmra.mrb[44].mxu1 %vm1165_vm0, %v766_v3 }
  0x92   : > { %5459 = vmatpush3.bf16.msra.mxu1 %v5694_v31 }
  0x93   : > { %5460 = vmatprep.subr.bf16.mxu1 %v5695_v32 }
  0x96   : > { %5461 = vmatpush3.bf16.msra.mxu1 %v5695_v32 }
  0x97   : > { %1449 = vmatmul.mubr.bf16.gmra.mrb[48].mxu0 %v743_v8 }
  0x98   : > { %1456 = vmatprep.mubr.bf16.mxu0 %v751_v9 }
  0x9f   : > { %1457 = vmatmul.mubr.bf16.gmra.mrb[52].mxu0 %v750_v14 }
  0xa0   : > { %1464 = vmatprep.mubr.bf16.mxu0 %v758_v15  ;;  %v5698_v15 = vld [vmem:[%s7929_s5 + $0x10] sm:$0xff]  }
  0xa1   : > { %5482 = vmatprep.subr.bf16.mxu0 %v5698_v15 }
  0xa2   : > { %5483 = vmatpush3.bf16.msra.mxu0 %v5698_v15 }
  0xa7   : > { %1465 = vmatmul.mubr.bf16.gmra.mrb[56].mxu0 %v757_v20 }
  0xa8   : > { %1472 = vmatprep.mubr.bf16.mxu0 %v765_v21 }
  0xaf   : > { %1473 = vmatmul.mubr.bf16.gmra.mrb[60].mxu0 %v764_v24 }
 0x10a   : > { %v5153_v38 = vpop.f32.mrb[0].mxu0 }
 0x10b   : > { %v5154_v40 = vpop.f32.mrb[1].mxu0 }
 0x10c   : > { %v5155_v41 = vadd.f32 %v5154_v40, %v5153_v38  ;;  %v5156_v42 = vpop.f32.mrb[2].mxu0  ;;  %v5217_v43 = vpop.f32.mrb[0].mxu1 }
 0x10d   : > { %v5157_v44 = vpop.f32.mrb[3].mxu0  ;;  %v5218_v47 = vpop.f32.mrb[1].mxu1 }
 0x10e   : > { %v1225_v45 = vadd.f32 %v5155_v41, %v6856_v39  ;;  %v5158_v46 = vadd.f32 %v5157_v44, %v5156_v42  ;;  %v5219_v48 = vadd.f32 %v5218_v47, %v5217_v43  ;;  %v5220_v49 = vpop.f32.mrb[2].mxu1 }
 0x10f   : > { %v5221_v51 = vpop.f32.mrb[3].mxu1 }
 0x110   : > { %v1228_v50 = vadd.f32 %v5158_v46, %v6856_v39  ;;  %v6860_v52 = vadd.f32 %v5219_v48, %v1225_v45  ;;  %v5222_v53 = vadd.f32 %v5221_v51, %v5220_v49 }
 0x112   : > { %v5159_v54 = vpop.f32.mrb[4].mxu0  ;;  %v6862_v55 = vadd.f32 %v5222_v53, %v1228_v50 }
 0x113   : > { %v5160_v56 = vpop.f32.mrb[5].mxu0 }
 0x114   : > { %v5161_v57 = vadd.f32 %v5160_v56, %v5159_v54  ;;  %v5162_v58 = vpop.f32.mrb[6].mxu0  ;;  %v5223_v59 = vpop.f32.mrb[4].mxu1 }
 0x115   : > { %v5163_v60 = vpop.f32.mrb[7].mxu0  ;;  %v5224_v63 = vpop.f32.mrb[5].mxu1 }
 0x116   : > { %v1233_v61 = vadd.f32 %v5161_v57, %v6856_v39  ;;  %v5164_v62 = vadd.f32 %v5163_v60, %v5162_v58  ;;  %v5225_v0 = vadd.f32 %v5224_v63, %v5223_v59  ;;  %v5226_v1 = vpop.f32.mrb[6].mxu1 }
 0x117   : > { %v5227_v3 = vpop.f32.mrb[7].mxu1 }
 0x118   : > { %v1236_v2 = vadd.f32 %v5164_v62, %v6856_v39  ;;  %v6866_v4 = vadd.f32 %v5225_v0, %v1233_v61  ;;  %v5228_v5 = vadd.f32 %v5227_v3, %v5226_v1 }
 0x11a   : > { %v5165_v8 = vpop.f32.mrb[8].mxu0  ;;  %v6874_v9 = vadd.f32 %v5228_v5, %v1236_v2 }
 0x11b   : > { %v5166_v10 = vpop.f32.mrb[9].mxu0 }
 0x11c   : > { %v5167_v11 = vadd.f32 %v5166_v10, %v5165_v8  ;;  %v5168_v12 = vpop.f32.mrb[10].mxu0  ;;  %v5229_v13 = vpop.f32.mrb[8].mxu1 }
 0x11d   : > { %v5169_v14 = vpop.f32.mrb[11].mxu0  ;;  %v5230_v18 = vpop.f32.mrb[9].mxu1 }
 0x11e   : > { %v1241_v16 = vadd.f32 %v5167_v11, %v6856_v39  ;;  %v5170_v17 = vadd.f32 %v5169_v14, %v5168_v12  ;;  %v5231_v19 = vadd.f32 %v5230_v18, %v5229_v13  ;;  %v5232_v20 = vpop.f32.mrb[10].mxu1 }
 0x11f   : > { %v5233_v22 = vpop.f32.mrb[11].mxu1 }
 0x120   : > { %v1244_v21 = vadd.f32 %v5170_v17, %v6856_v39  ;;  %v6881_v23 = vadd.f32 %v5231_v19, %v1241_v16  ;;  %v5234_v24 = vadd.f32 %v5233_v22, %v5232_v20 }
 0x122   : > { %v5171_v25 = vpop.f32.mrb[12].mxu0  ;;  %v6883_v26 = vadd.f32 %v5234_v24, %v1244_v21 }
 0x123   : > { %v5172_v27 = vpop.f32.mrb[13].mxu0 }
 0x124   : > { %v5173_v28 = vadd.f32 %v5172_v27, %v5171_v25  ;;  %v5174_v29 = vpop.f32.mrb[14].mxu0  ;;  %v5235_v30 = vpop.f32.mrb[12].mxu1 }
 0x125   : > { %v5175_v31 = vpop.f32.mrb[15].mxu0  ;;  %v5236_v35 = vpop.f32.mrb[13].mxu1 }
 0x126   : > { %v1249_v32 = vadd.f32 %v5173_v28, %v6856_v39  ;;  %v5176_v33 = vadd.f32 %v5175_v31, %v5174_v29  ;;  %v5237_v36 = vadd.f32 %v5236_v35, %v5235_v30  ;;  %v5238_v38 = vpop.f32.mrb[14].mxu1 }
 0x127   : > { %v5239_v41 = vpop.f32.mrb[15].mxu1 }
 0x128   : > { %v1252_v40 = vadd.f32 %v5176_v33, %v6856_v39  ;;  %v6887_v42 = vadd.f32 %v5237_v36, %v1249_v32  ;;  %v5240_v43 = vadd.f32 %v5239_v41, %v5238_v38 }
 0x12a   : > { %v5177_v44 = vpop.f32.mrb[16].mxu0  ;;  %v6889_v45 = vadd.f32 %v5240_v43, %v1252_v40 }
 0x12b   : > { %v5178_v46 = vpop.f32.mrb[17].mxu0 }
 0x12c   : > { %v5179_v47 = vadd.f32 %v5178_v46, %v5177_v44  ;;  %v5180_v48 = vpop.f32.mrb[18].mxu0  ;;  %v5241_v49 = vpop.f32.mrb[16].mxu1 }
 0x12d   : > { %v5181_v50 = vpop.f32.mrb[19].mxu0  ;;  %v5242_v54 = vpop.f32.mrb[17].mxu1 }
 0x12e   : > { %v1257_v51 = vadd.f32 %v5179_v47, %v6856_v39  ;;  %v5182_v53 = vadd.f32 %v5181_v50, %v5180_v48  ;;  %v5243_v56 = vadd.f32 %v5242_v54, %v5241_v49  ;;  %v5244_v57 = vpop.f32.mrb[18].mxu1 }
 0x12f   : > { %v5245_v59 = vpop.f32.mrb[19].mxu1 }
 0x130   : > { %v1260_v58 = vadd.f32 %v5182_v53, %v6856_v39  ;;  %v6893_v60 = vadd.f32 %v5243_v56, %v1257_v51  ;;  %v5246_v61 = vadd.f32 %v5245_v59, %v5244_v57 }
 0x132   : > { %v5183_v62 = vpop.f32.mrb[20].mxu0  ;;  %v6895_v63 = vadd.f32 %v5246_v61, %v1260_v58 }
 0x133   : > { %v5184_v0 = vpop.f32.mrb[21].mxu0 }
 0x134   : > { %v5185_v1 = vadd.f32 %v5184_v0, %v5183_v62  ;;  %v5186_v2 = vpop.f32.mrb[22].mxu0  ;;  %v5247_v3 = vpop.f32.mrb[20].mxu1 }
 0x135   : > { %v5187_v5 = vpop.f32.mrb[23].mxu0  ;;  %v5248_v8 = vpop.f32.mrb[21].mxu1 }
 0x136   : > { %v1265_v6 = vadd.f32 %v5185_v1, %v6856_v39  ;;  %v5188_v7 = vadd.f32 %v5187_v5, %v5186_v2  ;;  %v5249_v10 = vadd.f32 %v5248_v8, %v5247_v3  ;;  %v5250_v11 = vpop.f32.mrb[22].mxu1 }
 0x137   : > { %v5251_v13 = vpop.f32.mrb[23].mxu1 }
 0x138   : > { %v1268_v12 = vadd.f32 %v5188_v7, %v6856_v39  ;;  %v6899_v14 = vadd.f32 %v5249_v10, %v1265_v6  ;;  %v5252_v15 = vadd.f32 %v5251_v13, %v5250_v11 }
 0x13a   : > { %v5189_v16 = vpop.f32.mrb[24].mxu0  ;;  %v6901_v17 = vadd.f32 %v5252_v15, %v1268_v12 }
 0x13b   : > { %v5190_v18 = vpop.f32.mrb[25].mxu0 }
 0x13c   : > { %v5191_v19 = vadd.f32 %v5190_v18, %v5189_v16  ;;  %v5192_v20 = vpop.f32.mrb[26].mxu0  ;;  %v5253_v21 = vpop.f32.mrb[24].mxu1 }
 0x13d   : > { %v5193_v22 = vpop.f32.mrb[27].mxu0  ;;  %v5254_v27 = vpop.f32.mrb[25].mxu1 }
 0x13e   : > { %v1273_v24 = vadd.f32 %v5191_v19, %v6856_v39  ;;  %v5194_v25 = vadd.f32 %v5193_v22, %v5192_v20  ;;  %v5255_v28 = vadd.f32 %v5254_v27, %v5253_v21  ;;  %v5256_v29 = vpop.f32.mrb[26].mxu1 }
 0x13f   : > { %v5257_v31 = vpop.f32.mrb[27].mxu1 }
 0x140   : > { %v1276_v30 = vadd.f32 %v5194_v25, %v6856_v39  ;;  %v6905_v32 = vadd.f32 %v5255_v28, %v1273_v24  ;;  %v5258_v33 = vadd.f32 %v5257_v31, %v5256_v29 }
 0x142   : > { %v5195_v35 = vpop.f32.mrb[28].mxu0  ;;  %v6907_v36 = vadd.f32 %v5258_v33, %v1276_v30 }
 0x143   : > { %v5196_v38 = vpop.f32.mrb[29].mxu0 }
 0x144   : > { %v5197_v40 = vadd.f32 %v5196_v38, %v5195_v35  ;;  %v5198_v41 = vpop.f32.mrb[30].mxu0  ;;  %v5259_v43 = vpop.f32.mrb[28].mxu1 }
 0x145   : > { %v5199_v44 = vpop.f32.mrb[31].mxu0  ;;  %v5260_v48 = vpop.f32.mrb[29].mxu1 }
 0x146   : > { %v1281_v46 = vadd.f32 %v5197_v40, %v6856_v39  ;;  %v5200_v47 = vadd.f32 %v5199_v44, %v5198_v41  ;;  %v5261_v49 = vadd.f32 %v5260_v48, %v5259_v43  ;;  %v5262_v50 = vpop.f32.mrb[30].mxu1 }
 0x147   : > { %v5263_v53 = vpop.f32.mrb[31].mxu1 }
 0x148   : > { %v1284_v51 = vadd.f32 %v5200_v47, %v6856_v39  ;;  %v6911_v54 = vadd.f32 %v5261_v49, %v1281_v46  ;;  %v5264_v56 = vadd.f32 %v5263_v53, %v5262_v50 }
 0x14a   : > { %v5281_v57 = vpop.f32.mrb[32].mxu0  ;;  %v6913_v58 = vadd.f32 %v5264_v56, %v1284_v51 }
 0x14b   : > { %v5282_v59 = vpop.f32.mrb[33].mxu0 }
 0x14c   : > { %v5283_v61 = vadd.f32 %v5282_v59, %v5281_v57  ;;  %v5284_v62 = vpop.f32.mrb[34].mxu0  ;;  %v5432_v1 = vpop.f32.mrb[32].mxu1 }
 0x14d   : > { %v5285_v0 = vpop.f32.mrb[35].mxu0  ;;  %v1515_v5 = vpop.f32.mrb[33].mxu1 }
 0x14e   : > { %v5286_v2 = vadd.f32 %v5285_v0, %v5284_v62  ;;  %v1419_v3 = vadd.f32 %v5283_v61, %v6860_v52  ;;  %v5433_v6 = vpop.f32.mrb[34].mxu1 }
 0x14f   : > { %v1518_v8 = vpop.f32.mrb[35].mxu1 }
 0x150   : > { %v1516_v7 = vadd.f32 %v1515_v5, %v1419_v3  ;;  %v1422_v39 = vadd.f32 %v5286_v2, %v6862_v55 }
 0x152   : > { %v1519_v10 = vadd.f32 %v1518_v8, %v1422_v39  ;;  %v5287_v11 = vpop.f32.mrb[36].mxu0  ;;  %5794 = vtanh.f32 %v1516_v7 }
 0x153   : > { %v5288_v12 = vpop.f32.mrb[37].mxu0 }
 0x154   : > { %5796 = vtanh.f32 %v1519_v10  ;;  %v5289_v13 = vadd.f32 %v5288_v12, %v5287_v11  ;;  %v5290_v15 = vpop.f32.mrb[38].mxu0  ;;  %v5436_v18 = vpop.f32.mrb[36].mxu1 }
 0x155   : > { %v5291_v16 = vpop.f32.mrb[39].mxu0  ;;  %v1531_v21 = vpop.f32.mrb[37].mxu1 }
 0x156   : > { %v1427_v19 = vadd.f32 %v5289_v13, %v6866_v4  ;;  %v5292_v20 = vadd.f32 %v5291_v16, %v5290_v15  ;;  %v5437_v52 = vpop.f32.mrb[38].mxu1 }
 0x157   : > { %v1534_v25 = vpop.f32.mrb[39].mxu1 }
 0x158   : > { %v1524_v22 = vadd.f32 %v5432_v1, %v1427_v19  ;;  %v1430_v24 = vadd.f32 %v5292_v20, %v6874_v9 }
 0x15a   : > { %v1527_v55 = vadd.f32 %v5433_v6, %v1430_v24  ;;  %v5293_v27 = vpop.f32.mrb[40].mxu0  ;;  %5798 = vtanh.f32 %v1524_v22 }
 0x15b   : > { %v5294_v28 = vpop.f32.mrb[41].mxu0 }
 0x15c   : > { %5800 = vtanh.f32 %v1527_v55  ;;  %v5295_v29 = vadd.f32 %v5294_v28, %v5293_v27  ;;  %v5296_v30 = vpop.f32.mrb[42].mxu0  ;;  %v5795_v31 = vpop.eup %5794 }
 0x15d   : > { %v5297_v33 = vpop.f32.mrb[43].mxu0  ;;  %v5440_v35 = vpop.f32.mrb[40].mxu1 }
 0x15e   : > { %v5797_v38 = vpop.eup %5796  ;;  %v5298_v40 = vadd.f32 %v5297_v33, %v5296_v30  ;;  %v1435_v4 = vadd.f32 %v5295_v29, %v6881_v23  ;;  %v1547_v41 = vpop.f32.mrb[41].mxu1 }
 0x15f   : > { %v1594_v43 = vpack.c.bf16 %v5797_v38, %v5795_v31  ;;  %v5441_v44 = vpop.f32.mrb[42].mxu1 }
 0x160   : > { %v1532_v46 = vadd.f32 %v1531_v21, %v1435_v4  ;;  %v1438_v9 = vadd.f32 %v5298_v40, %v6883_v26  ;;  %v1550_v47 = vpop.f32.mrb[43].mxu1 }
 0x161   : > { %5462 = vmatprep.mubr.bf16.mxu1 %v1594_v43 }
 0x162   : > { %v1535_v48 = vadd.f32 %v1534_v25, %v1438_v9  ;;  %v5299_v49 = vpop.f32.mrb[44].mxu0  ;;  %5802 = vtanh.f32 %v1532_v46 }
 0x163   : > { %v5300_v50 = vpop.f32.mrb[45].mxu0 }
 0x164   : > { %5804 = vtanh.f32 %v1535_v48  ;;  %v5301_v51 = vadd.f32 %v5300_v50, %v5299_v49  ;;  %v5302_v53 = vpop.f32.mrb[46].mxu0  ;;  %v5799_v56 = vpop.eup %5798 }
 0x165   : > { %v5303_v57 = vpop.f32.mrb[47].mxu0  ;;  %v6921_v59 = vpop.f32.mrb[44].mxu1 }
 0x166   : > { %v5801_v23 = vpop.eup %5800  ;;  %v1443_v61 = vadd.f32 %v5301_v51, %v6887_v42  ;;  %v5304_v62 = vadd.f32 %v5303_v57, %v5302_v53  ;;  %v1563_v0 = vpop.f32.mrb[45].mxu1 }
 0x167   : > { %v1595_v1 = vpack.c.bf16 %v5801_v23, %v5799_v56  ;;  %v6924_v26 = vpop.f32.mrb[46].mxu1 }
 0x168   : > { %v1540_v2 = vadd.f32 %v5436_v18, %v1443_v61  ;;  %v1446_v3 = vadd.f32 %v5304_v62, %v6889_v45  ;;  %v1566_v5 = vpop.f32.mrb[47].mxu1 }
 0x169   : > { %5463 = vmatmul.mubr.bf16.vlgmr.msra.gmra.mrb[48].mxu1 %v1595_v1 }
 0x16a   : > { %v1543_v6 = vadd.f32 %v5437_v52, %v1446_v3  ;;  %v5305_v7 = vpop.f32.mrb[48].mxu0  ;;  %5806 = vtanh.f32 %v1540_v2 }
 0x16b   : > { %v5306_v39 = vpop.f32.mrb[49].mxu0 }
 0x16c   : > { %5808 = vtanh.f32 %v1543_v6  ;;  %v5307_v8 = vadd.f32 %v5306_v39, %v5305_v7  ;;  %v5308_v10 = vpop.f32.mrb[50].mxu0  ;;  %v5803_v11 = vpop.eup %5802 }
 0x16d   : > { %v5309_v12 = vpop.f32.mrb[51].mxu0 }
 0x16e   : > { %v5805_v42 = vpop.eup %5804  ;;  %v5310_v13 = vadd.f32 %v5309_v12, %v5308_v10  ;;  %v1451_v15 = vadd.f32 %v5307_v8, %v6893_v60 }
 0x16f   : > { %v1596_v16 = vpack.c.bf16 %v5805_v42, %v5803_v11 }
 0x170   : > { %v1548_v19 = vadd.f32 %v1547_v41, %v1451_v15  ;;  %v1454_v18 = vadd.f32 %v5310_v13, %v6895_v63 }
 0x171   : > { %5466 = vmatprep.mubr.bf16.mxu1 %v1596_v16 }
 0x172   : > { %v1551_v45 = vadd.f32 %v1550_v47, %v1454_v18  ;;  %v5311_v20 = vpop.f32.mrb[52].mxu0  ;;  %5810 = vtanh.f32 %v1548_v19 }
 0x173   : > { %v5312_v21 = vpop.f32.mrb[53].mxu0 }
 0x174   : > { %5812 = vtanh.f32 %v1551_v45  ;;  %v5313_v52 = vadd.f32 %v5312_v21, %v5311_v20  ;;  %v5314_v22 = vpop.f32.mrb[54].mxu0  ;;  %v5807_v24 = vpop.eup %5806 }
 0x175   : > { %v5315_v25 = vpop.f32.mrb[55].mxu0 }
 0x176   : > { %v5809_v55 = vpop.eup %5808  ;;  %v1459_v27 = vadd.f32 %v5313_v52, %v6899_v14  ;;  %v5316_v28 = vadd.f32 %v5315_v25, %v5314_v22 }
 0x177   : > { %v1597_v29 = vpack.c.bf16 %v5809_v55, %v5807_v24 }
 0x178   : > { %v1556_v60 = vadd.f32 %v5440_v35, %v1459_v27  ;;  %v1462_v30 = vadd.f32 %v5316_v28, %v6901_v17 }
 0x179   : > { %5467 = vmatmul.mubr.bf16.gmra.mrb[52].mxu1 %v1597_v29 }
 0x17a   : > { %v1559_v63 = vadd.f32 %v5441_v44, %v1462_v30  ;;  %v5317_v31 = vpop.f32.mrb[56].mxu0  ;;  %5814 = vtanh.f32 %v1556_v60 }
 0x17b   : > { %v5318_v33 = vpop.f32.mrb[57].mxu0 }
 0x17c   : > { %5816 = vtanh.f32 %v1559_v63  ;;  %v5319_v38 = vadd.f32 %v5318_v33, %v5317_v31  ;;  %v5320_v40 = vpop.f32.mrb[58].mxu0  ;;  %v5811_v4 = vpop.eup %5810 }
 0x17d   : > { %v5321_v41 = vpop.f32.mrb[59].mxu0 }
 0x17e   : > { %v5813_v43 = vpop.eup %5812  ;;  %v5322_v46 = vadd.f32 %v5321_v41, %v5320_v40  ;;  %v1467_v9 = vadd.f32 %v5319_v38, %v6905_v32 }
 0x17f   : > { %v1598_v14 = vpack.c.bf16 %v5813_v43, %v5811_v4 }
 0x180   : > { %v1564_v47 = vadd.f32 %v1563_v0, %v1467_v9  ;;  %v1470_v35 = vadd.f32 %v5322_v46, %v6907_v36 }
 0x181   : > { %5470 = vmatprep.mubr.bf16.mxu1 %v1598_v14 }
 0x182   : > { %v1567_v17 = vadd.f32 %v1566_v5, %v1470_v35  ;;  %v5323_v48 = vpop.f32.mrb[60].mxu0  ;;  %5818 = vtanh.f32 %v1564_v47 }
 0x183   : > { %v5324_v44 = vpop.f32.mrb[61].mxu0 }
 0x184   : > { %5820 = vtanh.f32 %v1567_v17  ;;  %v5325_v49 = vadd.f32 %v5324_v44, %v5323_v48  ;;  %v5326_v50 = vpop.f32.mrb[62].mxu0  ;;  %v5815_v51 = vpop.eup %5814 }
 0x185   : > { %v5327_v53 = vpop.f32.mrb[63].mxu0 }
 0x186   : > { %v5817_v56 = vpop.eup %5816  ;;  %v1475_v57 = vadd.f32 %v5325_v49, %v6911_v54  ;;  %v5328_v23 = vadd.f32 %v5327_v53, %v5326_v50  ;;  %v5699_v54 = vld [vmem:[%s7929_s5 + $0x18] sm:$0xff]  }
 0x187   : > { %v1599_v61 = vpack.c.bf16 %v5817_v56, %v5815_v51  ;;  %5484 = vmatprep.subr.bf16.mxu0 %v5699_v54 }
 0x188   : > { %v1572_v32 = vadd.f32 %v6921_v59, %v1475_v57  ;;  %v1478_v62 = vadd.f32 %v5328_v23, %v6913_v58  ;;  %5485 = vmatpush3.bf16.msra.mxu0 %v5699_v54  ;;  %v5700_v58 = vld [vmem:[%s7931_s7] sm:$0x3f]  }
 0x189   : > { %5471 = vmatmul.mubr.bf16.gmra.mrb[56].mxu1 %v1599_v61  ;;  %5626 = vmatprep.subr.msk.bf16.mxu1 %vm2015_vm1, %v5700_v58  ;;  %v2017_v59 = vsel %vm2015_vm1, %v5700_v58, 0  ;;  %v5701_v54 = vld [vmem:[%s7933_s9] sm:$0xff]   ;;  %v5702_v58 = vld [vmem:[%s7933_s9 + $0x8] sm:$0xff]  }
 0x18a   : > { %v1575_v36 = vadd.f32 %v6924_v26, %v1478_v62  ;;  %5822 = vtanh.f32 %v1572_v32  ;;  %5503 = vmatpush3.bf16.msra.mxu1 %v2017_v59  ;;  %v1618_v26 = vld [vmem:[%s7928_s4] sm:$0x1]  ;;  %5520 = vmatprep.subr.bf16.mxu0 %v5701_v54  ;;  %v5703_v59 = vld [vmem:[%s7933_s9 + $0x10] sm:$0xff]  }
 0x18b   : > { %v1619_v7 = vunpack.c.l.bf16 %v1618_v26  ;;  %v5704_v26 = vld [vmem:[%s7933_s9 + $0x18] sm:$0xff]  }
 0x18c   : > { %5824 = vtanh.f32 %v1575_v36  ;;  %v5819_v0 = vpop.eup %5818 }
 0x18d   : > { %v6949_v39 = vrot.slane %v1619_v7, %v6853_v37  ;;  %v5705_v7 = vld [vmem:[%s7933_s9 + $0x20] sm:$0xff]  }
 0x18e   : > { %v5821_v1 = vpop.eup %5820 }
 0x18f   : > { %v1600_v2 = vpack.c.bf16 %v5821_v1, %v5819_v0 }
 0x191   : > { %5474 = vmatprep.mubr.bf16.mxu1 %v1600_v2 }
 0x194   : > { %v5823_v3 = vpop.eup %5822 }
 0x196   : > { %v5825_v5 = vpop.eup %5824 }
 0x197   : > { %v1601_v6 = vpack.c.bf16 %v5825_v5, %v5823_v3 }
 0x199   : > { %5475 = vmatmul.mubr.bf16.gmra.mrb[60].mxu1 %v1601_v6 }
 0x23c   : > { %v5464_v8 = vpop.f32.mrb[48].mxu1 }
 0x23d   : > { %v1715_v10 = vadd.f32 %v5464_v8, %v6949_v39  ;;  %v1706_v11 = vpop.f32.mrb[49].mxu1  ;;  %v1801_v8 = vld [vmem:[%s7930_s6] sm:$0x1] }
 0x23e   : > { %v1707_v12 = vadd.f32 %v1706_v11, %v6949_v39  ;;  %v5465_v42 = vpop.f32.mrb[50].mxu1 }
 0x23f   : > { %5826 = vtanh.f32 %v1715_v10  ;;  %v1718_v13 = vadd.f32 %v5465_v42, %v6949_v39  ;;  %v1709_v15 = vpop.f32.mrb[51].mxu1  ;;  %v1802_v10 = vunpack.c.l.bf16 %v1801_v8 }
 0x240   : > { %5828 = vtanh.f32 %v1707_v12  ;;  %v1710_v16 = vadd.f32 %v1709_v15, %v6949_v39 }
 0x241   : > { %5830 = vtanh.f32 %v1718_v13  ;;  %v6997_v11 = vrot.slane %v1802_v10, %v6853_v37  ;;  %v1979_v10 = vld [vmem:[%s7932_s8] sm:$0x1] }
 0x242   : > { %5832 = vtanh.f32 %v1710_v16 }
 0x249   : > { %v5827_v19 = vpop.eup %5826 }
 0x24a   : > { %v5829_v18 = vpop.eup %5828 }
 0x24b   : > { %v5831_v45 = vpop.eup %5830 }
 0x24c   : > { %v5833_v20 = vpop.eup %5832  ;;  %v1786_v21 = vpack.c.bf16 %v5831_v45, %v5827_v19  ;;  %v5468_v52 = vpop.f32.mrb[52].mxu1 }
 0x24d   : > { %v1731_v22 = vadd.f32 %v5468_v52, %v6949_v39  ;;  %v1722_v24 = vpop.f32.mrb[53].mxu1  ;;  %v1785_v25 = vpack.c.bf16 %v5833_v20, %v5829_v18 }
 0x24e   : > { %v1723_v55 = vadd.f32 %v1722_v24, %v6949_v39  ;;  %v5469_v27 = vpop.f32.mrb[54].mxu1 }
 0x24f   : > { %5834 = vtanh.f32 %v1731_v22  ;;  %v1734_v28 = vadd.f32 %v5469_v27, %v6949_v39  ;;  %v1725_v29 = vpop.f32.mrb[55].mxu1  ;;  %5486 = vmatprep.mubr.msk.bf16.mxu0 %vm1831_vm2, %v1785_v25 }
 0x250   : > { %5836 = vtanh.f32 %v1723_v55  ;;  %v1726_v60 = vadd.f32 %v1725_v29, %v6949_v39  ;;  %5487 = vmatmul.mubr.msk.bf16.vlgmr.msra.gmra.mrb[64].mxu0 %vm1831_vm2, %v1786_v21 }
 0x251   : > { %5838 = vtanh.f32 %v1734_v28  ;;  %5521 = vmatpush3.bf16.msra.mxu0 %v5701_v54 }
 0x252   : > { %5840 = vtanh.f32 %v1726_v60  ;;  %5522 = vmatprep.subr.bf16.mxu0 %v5702_v58 }
 0x255   : > { %5523 = vmatpush3.bf16.msra.mxu0 %v5702_v58 }
 0x256   : > { %5524 = vmatprep.subr.bf16.mxu0 %v5703_v59 }
 0x259   : > { %v5835_v30 = vpop.eup %5834  ;;  %5525 = vmatpush3.bf16.msra.mxu0 %v5703_v59 }
 0x25a   : > { %v5837_v63 = vpop.eup %5836  ;;  %5526 = vmatprep.subr.bf16.mxu0 %v5704_v26 }
 0x25b   : > { %v5839_v31 = vpop.eup %5838 }
 0x25c   : > { %v5841_v33 = vpop.eup %5840  ;;  %v5472_v38 = vpop.f32.mrb[56].mxu1  ;;  %v1788_v40 = vpack.c.bf16 %v5839_v31, %v5835_v30 }
 0x25d   : > { %v1747_v4 = vadd.f32 %v5472_v38, %v6949_v39  ;;  %v1738_v41 = vpop.f32.mrb[57].mxu1  ;;  %v1787_v43 = vpack.c.bf16 %v5841_v33, %v5837_v63  ;;  %5527 = vmatpush3.bf16.msra.mxu0 %v5704_v26  ;;  %v5707_v26 = vld [vmem:[%s7933_s9 + $0x30] sm:$0xff]  }
 0x25e   : > { %v1739_v46 = vadd.f32 %v1738_v41, %v6949_v39  ;;  %v5473_v9 = vpop.f32.mrb[58].mxu1  ;;  %5528 = vmatprep.subr.bf16.mxu0 %v5705_v7 }
 0x25f   : > { %5842 = vtanh.f32 %v1747_v4  ;;  %v1750_v14 = vadd.f32 %v5473_v9, %v6949_v39  ;;  %v1741_v47 = vpop.f32.mrb[59].mxu1  ;;  %5490 = vmatprep.mubr.msk.bf16.mxu0 %vm1831_vm2, %v1787_v43 }
 0x260   : > { %5844 = vtanh.f32 %v1739_v46  ;;  %v1742_v35 = vadd.f32 %v1741_v47, %v6949_v39  ;;  %5491 = vmatmul.mubr.msk.bf16.gmra.mrb[68].mxu0 %vm1831_vm2, %v1788_v40 }
 0x261   : > { %5846 = vtanh.f32 %v1750_v14  ;;  %5529 = vmatpush3.bf16.msra.mxu0 %v5705_v7  ;;  %v5708_v7 = vld [vmem:[%s7933_s9 + $0x38] sm:$0xff]  }
 0x262   : > { %5848 = vtanh.f32 %v1742_v35 }
 0x269   : > { %v5843_v17 = vpop.eup %5842 }
 0x26a   : > { %v5845_v48 = vpop.eup %5844 }
 0x26b   : > { %v5847_v44 = vpop.eup %5846 }
 0x26c   : > { %v5849_v49 = vpop.eup %5848  ;;  %v5476_v50 = vpop.f32.mrb[60].mxu1  ;;  %v1790_v51 = vpack.c.bf16 %v5847_v44, %v5843_v17 }
 0x26d   : > { %v1763_v53 = vadd.f32 %v5476_v50, %v6949_v39  ;;  %v1754_v56 = vpop.f32.mrb[61].mxu1  ;;  %v1789_v57 = vpack.c.bf16 %v5849_v49, %v5845_v48 }
 0x26e   : > { %v1755_v23 = vadd.f32 %v1754_v56, %v6949_v39  ;;  %v5477_v61 = vpop.f32.mrb[62].mxu1 }
 0x26f   : > { %5850 = vtanh.f32 %v1763_v53  ;;  %v1766_v32 = vadd.f32 %v5477_v61, %v6949_v39  ;;  %v1757_v62 = vpop.f32.mrb[63].mxu1  ;;  %5494 = vmatprep.mubr.msk.bf16.mxu0 %vm1831_vm2, %v1789_v57 }
 0x270   : > { %5852 = vtanh.f32 %v1755_v23  ;;  %v1758_v36 = vadd.f32 %v1757_v62, %v6949_v39  ;;  %5495 = vmatmul.mubr.msk.bf16.gmra.mrb[72].mxu0 %vm1831_vm2, %v1790_v51  ;;  %v5706_v39 = vld [vmem:[%s7933_s9 + $0x28] sm:$0xff]  }
 0x271   : > { %5854 = vtanh.f32 %v1766_v32  ;;  %5530 = vmatprep.subr.bf16.mxu0 %v5706_v39 }
 0x272   : > { %5856 = vtanh.f32 %v1758_v36  ;;  %5531 = vmatpush3.bf16.msra.mxu0 %v5706_v39  ;;  %v5709_v39 = vld [vmem:[%s7935_s11] sm:$0x3f]  }
 0x273   : > { %5532 = vmatprep.subr.bf16.mxu0 %v5707_v26  ;;  %5627 = vmatprep.subr.msk.bf16.mxu1 %vm2015_vm1, %v5709_v39  ;;  %v2353_v8 = vsel %vm2015_vm1, %v5709_v39, 0 }
 0x276   : > { %5533 = vmatpush3.bf16.msra.mxu0 %v5707_v26 }
 0x277   : > { %5534 = vmatprep.subr.bf16.mxu0 %v5708_v7 }
 0x279   : > { %v5851_v0 = vpop.eup %5850 }
 0x27a   : > { %v5853_v1 = vpop.eup %5852  ;;  %5535 = vmatpush3.bf16.msra.mxu0 %v5708_v7 }
 0x27b   : > { %v5855_v2 = vpop.eup %5854 }
 0x27c   : > { %v5857_v3 = vpop.eup %5856  ;;  %v1792_v5 = vpack.c.bf16 %v5855_v2, %v5851_v0 }
 0x27d   : > { %v1791_v6 = vpack.c.bf16 %v5857_v3, %v5853_v1 }
 0x27f   : > { %5498 = vmatprep.mubr.msk.bf16.mxu0 %vm1831_vm2, %v1791_v6 }
 0x280   : > { %5499 = vmatmul.mubr.msk.bf16.gmra.mrb[76].mxu0 %vm1831_vm2, %v1792_v5 }
 0x323   : > { %v5488_v12 = vpop.f32.mrb[64].mxu0 }
 0x324   : > { %v1899_v42 = vadd.f32 %v5488_v12, %v6997_v11  ;;  %v1890_v13 = vpop.f32.mrb[65].mxu0 }
 0x325   : > { %v1891_v15 = vadd.f32 %v1890_v13, %v6997_v11  ;;  %v5489_v16 = vpop.f32.mrb[66].mxu0 }
 0x326   : > { %5858 = vtanh.f32 %v1899_v42  ;;  %v1902_v19 = vadd.f32 %v5489_v16, %v6997_v11  ;;  %v1893_v18 = vpop.f32.mrb[67].mxu0 }
 0x327   : > { %5860 = vtanh.f32 %v1891_v15  ;;  %v1894_v45 = vadd.f32 %v1893_v18, %v6997_v11 }
 0x328   : > { %5862 = vtanh.f32 %v1902_v19 }
 0x329   : > { %5864 = vtanh.f32 %v1894_v45 }
 0x330   : > { %v5859_v20 = vpop.eup %5858 }
 0x331   : > { %v5861_v21 = vpop.eup %5860 }
 0x332   : > { %v5863_v52 = vpop.eup %5862 }
 0x333   : > { %v5865_v22 = vpop.eup %5864  ;;  %v1970_v24 = vpack.c.bf16 %v5863_v52, %v5859_v20  ;;  %v5492_v25 = vpop.f32.mrb[68].mxu0 }
 0x334   : > { %v1915_v55 = vadd.f32 %v5492_v25, %v6997_v11  ;;  %v1906_v27 = vpop.f32.mrb[69].mxu0  ;;  %v1969_v28 = vpack.c.bf16 %v5865_v22, %v5861_v21 }
 0x335   : > { %v1907_v29 = vadd.f32 %v1906_v27, %v6997_v11  ;;  %v5493_v60 = vpop.f32.mrb[70].mxu0 }
 0x336   : > { %5866 = vtanh.f32 %v1915_v55  ;;  %v1918_v30 = vadd.f32 %v5493_v60, %v6997_v11  ;;  %v1909_v63 = vpop.f32.mrb[71].mxu0  ;;  %5504 = vmatprep.mubr.msk.bf16.mxu1 %vm1990_vm3, %v1969_v28 }
 0x337   : > { %5868 = vtanh.f32 %v1907_v29  ;;  %v1910_v31 = vadd.f32 %v1909_v63, %v6997_v11  ;;  %5505 = vmatmul.mubr.msk.bf16.vlgmr.msra.gmra.mrb[64].mxu1 %vm1990_vm3, %v1970_v24 }
 0x338   : > { %5870 = vtanh.f32 %v1918_v30  ;;  %5553 = vmatpush3.bf16.msra.mxu1 %v2353_v8 }
 0x339   : > { %5872 = vtanh.f32 %v1910_v31 }
 0x340   : > { %v5867_v33 = vpop.eup %5866 }
 0x341   : > { %v5869_v38 = vpop.eup %5868 }
 0x342   : > { %v5871_v40 = vpop.eup %5870 }
 0x343   : > { %v5873_v4 = vpop.eup %5872  ;;  %v5496_v41 = vpop.f32.mrb[72].mxu0  ;;  %v1972_v43 = vpack.c.bf16 %v5871_v40, %v5867_v33 }
 0x344   : > { %v1931_v46 = vadd.f32 %v5496_v41, %v6997_v11  ;;  %v1922_v9 = vpop.f32.mrb[73].mxu0  ;;  %v1971_v14 = vpack.c.bf16 %v5873_v4, %v5869_v38 }
 0x345   : > { %v1923_v47 = vadd.f32 %v1922_v9, %v6997_v11  ;;  %v5497_v35 = vpop.f32.mrb[74].mxu0 }
 0x346   : > { %5874 = vtanh.f32 %v1931_v46  ;;  %v1934_v17 = vadd.f32 %v5497_v35, %v6997_v11  ;;  %v1925_v48 = vpop.f32.mrb[75].mxu0  ;;  %5508 = vmatprep.mubr.msk.bf16.mxu1 %vm1990_vm3, %v1971_v14 }
 0x347   : > { %5876 = vtanh.f32 %v1923_v47  ;;  %v1926_v44 = vadd.f32 %v1925_v48, %v6997_v11  ;;  %5509 = vmatmul.mubr.msk.bf16.gmra.mrb[68].mxu1 %vm1990_vm3, %v1972_v43 }
 0x348   : > { %5878 = vtanh.f32 %v1934_v17 }
 0x349   : > { %5880 = vtanh.f32 %v1926_v44 }
 0x350   : > { %v5875_v49 = vpop.eup %5874 }
 0x351   : > { %v5877_v50 = vpop.eup %5876 }
 0x352   : > { %v5879_v51 = vpop.eup %5878 }
 0x353   : > { %v5881_v53 = vpop.eup %5880  ;;  %v5500_v56 = vpop.f32.mrb[76].mxu0  ;;  %v1974_v57 = vpack.c.bf16 %v5879_v51, %v5875_v49 }
 0x354   : > { %v1947_v23 = vadd.f32 %v5500_v56, %v6997_v11  ;;  %v1938_v61 = vpop.f32.mrb[77].mxu0  ;;  %v1973_v32 = vpack.c.bf16 %v5881_v53, %v5877_v50 }
 0x355   : > { %v1939_v62 = vadd.f32 %v1938_v61, %v6997_v11  ;;  %v5501_v36 = vpop.f32.mrb[78].mxu0  ;;  %v2140_v61 = vld [vmem:[%s7934_s10] sm:$0x1] }
 0x356   : > { %5882 = vtanh.f32 %v1947_v23  ;;  %v1950_v0 = vadd.f32 %v5501_v36, %v6997_v11  ;;  %v1941_v1 = vpop.f32.mrb[79].mxu0  ;;  %5512 = vmatprep.mubr.msk.bf16.mxu1 %vm1990_vm3, %v1973_v32  ;;  %v5711_v23 = vld [vmem:[%s7937_s13 + $0x8] sm:$0xff]   ;;  %v2141_v32 = vunpack.c.l.bf16 %v2140_v61  ;;  %v5716_v61 = vld [vmem:[%s7939_s15 + $0x4] ss:$28 sps:$4 sm:$0xff]  }
 0x357   : > { %5884 = vtanh.f32 %v1939_v62  ;;  %v1942_v2 = vadd.f32 %v1941_v1, %v6997_v11  ;;  %5513 = vmatmul.mubr.msk.bf16.gmra.mrb[72].mxu1 %vm1990_vm3, %v1974_v57  ;;  %v1980_v11 = vunpack.c.l.bf16 %v1979_v10  ;;  %v5710_v57 = vld [vmem:[%s7937_s13] sm:$0xff]   ;;  %3079 = vmatprep.subr.bf16.mxu1 %v5716_v61 }
 0x358   : > { %5886 = vtanh.f32 %v1950_v0  ;;  %5570 = vmatprep.subr.bf16.mxu0 %v5710_v57  ;;  %v7086_v62 = vrot.slane %v2141_v32, %v6853_v37  ;;  %v5719_v32 = vld [vmem:[%s7939_s15 + $0xc] ss:$28 sps:$4 sm:$0xff]  }
 0x359   : > { %5888 = vtanh.f32 %v1942_v2  ;;  %v1984_v12 = vrot.slane %v1980_v11, %v6853_v37 }
 0x360   : > { %v5883_v3 = vpop.eup %5882 }
 0x361   : > { %v5885_v5 = vpop.eup %5884 }
 0x362   : > { %v5887_v6 = vpop.eup %5886 }
 0x363   : > { %v5889_v54 = vpop.eup %5888  ;;  %v1976_v58 = vpack.c.bf16 %v5887_v6, %v5883_v3 }
 0x364   : > { %v1975_v59 = vpack.c.bf16 %v5889_v54, %v5885_v5 }
 0x366   : > { %5516 = vmatprep.mubr.msk.bf16.mxu1 %vm1990_vm3, %v1975_v59 }
 0x367   : > { %5517 = vmatmul.mubr.msk.bf16.gmra.mrb[76].mxu1 %vm1990_vm3, %v1976_v58 }
 0x40a   : > { %v5506_v42 = vpop.f32.mrb[64].mxu1 }
 0x40b   : > { %v2062_v13 = vadd.f32 %v5506_v42, %v1984_v12  ;;  %v2053_v15 = vpop.f32.mrb[65].mxu1 }
 0x40c   : > { %v2054_v16 = vadd.f32 %v2053_v15, %v1984_v12  ;;  %v5507_v19 = vpop.f32.mrb[66].mxu1 }
 0x40d   : > { %4190 = vst.msk [vmem:[%s7042_s23 + $0x10] sm:$0xff] %vm4187_vm4, %v2062_v13  ;;  %v2065_v18 = vadd.f32 %v5507_v19, %v1984_v12  ;;  %v2056_v45 = vpop.f32.mrb[67].mxu1 }
 0x40e   : > { %4188 = vst.msk [vmem:[%s7042_s23] sm:$0xff] %vm4187_vm4, %v2054_v16  ;;  %v2057_v20 = vadd.f32 %v2056_v45, %v1984_v12 }
 0x40f   : > { %v2117_v21 = vpack.c.bf16 %v2065_v18, %v2062_v13  ;;  %4191 = vst.msk [vmem:[%s7042_s23 + $0x18] sm:$0xff] %vm4187_vm4, %v2065_v18 }
 0x410   : > { %v2116_v52 = vpack.c.bf16 %v2057_v20, %v2054_v16  ;;  %4189 = vst.msk [vmem:[%s7042_s23 + $0x8] sm:$0xff] %vm4187_vm4, %v2057_v20 }
 0x412   : > { %5536 = vmatprep.mubr.bf16.mxu0 %v2116_v52 }
 0x413   : > { %5537 = vmatmul.mubr.bf16.vlgmr.msra.gmra.mrb[80].mxu0 %v2117_v21 }
 0x414   : > { %5571 = vmatpush3.bf16.msra.mxu0 %v5710_v57  ;;  %v5713_v57 = vld [vmem:[%s7937_s13 + $0x18] sm:$0xff]  }
 0x415   : > { %5572 = vmatprep.subr.bf16.mxu0 %v5711_v23 }
 0x418   : > { %5573 = vmatpush3.bf16.msra.mxu0 %v5711_v23  ;;  %v5714_v23 = vld [vmem:[%s7939_s15] ss:$28 sps:$4 sm:$0xff]  }
 0x41a   : > { %v5510_v22 = vpop.f32.mrb[68].mxu1 }
 0x41b   : > { %v2078_v24 = vadd.f32 %v5510_v22, %v1984_v12  ;;  %v2069_v25 = vpop.f32.mrb[69].mxu1 }
 0x41c   : > { %v2070_v55 = vadd.f32 %v2069_v25, %v1984_v12  ;;  %v5511_v27 = vpop.f32.mrb[70].mxu1 }
 0x41d   : > { %4194 = vst.msk [vmem:[%s7042_s23 + $0x30] sm:$0xff] %vm4187_vm4, %v2078_v24  ;;  %v2081_v28 = vadd.f32 %v5511_v27, %v1984_v12  ;;  %v2072_v29 = vpop.f32.mrb[71].mxu1 }
 0x41e   : > { %4192 = vst.msk [vmem:[%s7042_s23 + $0x20] sm:$0xff] %vm4187_vm4, %v2070_v55  ;;  %v2073_v60 = vadd.f32 %v2072_v29, %v1984_v12 }
 0x41f   : > { %v2119_v30 = vpack.c.bf16 %v2081_v28, %v2078_v24  ;;  %4195 = vst.msk [vmem:[%s7042_s23 + $0x38] sm:$0xff] %vm4187_vm4, %v2081_v28 }
 0x420   : > { %v2118_v63 = vpack.c.bf16 %v2073_v60, %v2070_v55  ;;  %4193 = vst.msk [vmem:[%s7042_s23 + $0x28] sm:$0xff] %vm4187_vm4, %v2073_v60 }
 0x422   : > { %5540 = vmatprep.mubr.bf16.mxu0 %v2118_v63 }
 0x423   : > { %5541 = vmatmul.mubr.bf16.gmra.mrb[84].mxu0 %v2119_v30 }
 0x42a   : > { %v5514_v31 = vpop.f32.mrb[72].mxu1 }
 0x42b   : > { %v2094_v33 = vadd.f32 %v5514_v31, %v1984_v12  ;;  %v2085_v38 = vpop.f32.mrb[73].mxu1 }
 0x42c   : > { %v2086_v40 = vadd.f32 %v2085_v38, %v1984_v12  ;;  %v5515_v4 = vpop.f32.mrb[74].mxu1 }
 0x42d   : > { %4198 = vst.msk [vmem:[%s7042_s23 + $0x50] sm:$0xff] %vm4187_vm4, %v2094_v33  ;;  %v2097_v41 = vadd.f32 %v5515_v4, %v1984_v12  ;;  %v2088_v43 = vpop.f32.mrb[75].mxu1 }
 0x42e   : > { %4196 = vst.msk [vmem:[%s7042_s23 + $0x40] sm:$0xff] %vm4187_vm4, %v2086_v40  ;;  %v2089_v46 = vadd.f32 %v2088_v43, %v1984_v12 }
 0x42f   : > { %v2121_v9 = vpack.c.bf16 %v2097_v41, %v2094_v33  ;;  %4199 = vst.msk [vmem:[%s7042_s23 + $0x58] sm:$0xff] %vm4187_vm4, %v2097_v41 }
 0x430   : > { %v2120_v14 = vpack.c.bf16 %v2089_v46, %v2086_v40  ;;  %4197 = vst.msk [vmem:[%s7042_s23 + $0x48] sm:$0xff] %vm4187_vm4, %v2089_v46 }
 0x432   : > { %5544 = vmatprep.mubr.bf16.mxu0 %v2120_v14 }
 0x433   : > { %5545 = vmatmul.mubr.bf16.gmra.mrb[88].mxu0 %v2121_v9 }
 0x43a   : > { %v5518_v47 = vpop.f32.mrb[76].mxu1 }
 0x43b   : > { %v2110_v35 = vadd.f32 %v5518_v47, %v1984_v12  ;;  %v2101_v17 = vpop.f32.mrb[77].mxu1 }
 0x43c   : > { %v2102_v48 = vadd.f32 %v2101_v17, %v1984_v12  ;;  %v5519_v44 = vpop.f32.mrb[78].mxu1 }
 0x43d   : > { %4202 = vst.msk [vmem:[%s7042_s23 + $0x70] sm:$0xff] %vm4187_vm4, %v2110_v35  ;;  %v2113_v49 = vadd.f32 %v5519_v44, %v1984_v12  ;;  %v2104_v50 = vpop.f32.mrb[79].mxu1 }
 0x43e   : > { %4200 = vst.msk [vmem:[%s7042_s23 + $0x60] sm:$0xff] %vm4187_vm4, %v2102_v48  ;;  %v2105_v51 = vadd.f32 %v2104_v50, %v1984_v12 }
 0x43f   : > { %v2123_v53 = vpack.c.bf16 %v2113_v49, %v2110_v35  ;;  %4203 = vst.msk [vmem:[%s7042_s23 + $0x78] sm:$0xff] %vm4187_vm4, %v2113_v49 }
 0x440   : > { %v2122_v56 = vpack.c.bf16 %v2105_v51, %v2102_v48  ;;  %4201 = vst.msk [vmem:[%s7042_s23 + $0x68] sm:$0xff] %vm4187_vm4, %v2105_v51 }
 0x442   : > { %5548 = vmatprep.mubr.bf16.mxu0 %v2122_v56  ;;  %v5712_v56 = vld [vmem:[%s7937_s13 + $0x10] sm:$0xff]  }
 0x443   : > { %5549 = vmatmul.mubr.bf16.gmra.mrb[92].mxu0 %v2123_v53  ;;  %5574 = vmatprep.subr.bf16.mxu0 %v5712_v56 }
 0x444   : > { %5575 = vmatpush3.bf16.msra.mxu0 %v5712_v56 }
 0x445   : > { %5576 = vmatprep.subr.bf16.mxu0 %v5713_v57 }
 0x448   : > { %5577 = vmatpush3.bf16.msra.mxu0 %v5713_v57 }
 0x449   : > { %3192 = vmatprep.subr.bf16.mxu0 %v5719_v32 }
 0x4e6   : > { %v5538_v36 = vpop.f32.mrb[80].mxu0 }
 0x4e7   : > { %v2237_v0 = vadd.f32 %v5538_v36, %v7086_v62  ;;  %v2228_v1 = vpop.f32.mrb[81].mxu0  ;;  %v5720_v36 = vld [vmem:[%s7939_s15 + $0x38] ss:$28 sps:$4 sm:$0xff]  }
 0x4e8   : > { %v2229_v2 = vadd.f32 %v2228_v1, %v7086_v62  ;;  %v5539_v3 = vpop.f32.mrb[82].mxu0  ;;  %v5726_v1 = vld [vmem:[%s7939_s15 + $0x70] ss:$28 sps:$4 sm:$0xff]  }
 0x4e9   : > { %5890 = vtanh.f32 %v2237_v0  ;;  %v2240_v5 = vadd.f32 %v5539_v3, %v7086_v62  ;;  %v2231_v6 = vpop.f32.mrb[83].mxu0  ;;  %v5728_v0 = vld [vmem:[%s7939_s15 + $0x74] ss:$28 sps:$4 sm:$0xff]   ;;  %v5732_v3 = vld [vmem:[%s7939_s15 + $0xa8] ss:$28 sps:$4 sm:$0xff]  }
 0x4ea   : > { %5892 = vtanh.f32 %v2229_v2  ;;  %v2232_v54 = vadd.f32 %v2231_v6, %v7086_v62  ;;  %v5734_v2 = vld [vmem:[%s7939_s15 + $0xac] ss:$28 sps:$4 sm:$0xff]  }
 0x4eb   : > { %5894 = vtanh.f32 %v2240_v5  ;;  %v2317_v5 = vld [vmem:[%s7936_s12] sm:$0x1] }
 0x4ec   : > { %5896 = vtanh.f32 %v2232_v54  ;;  %v2318_v6 = vunpack.c.l.bf16 %v2317_v5 }
 0x4ee   : > { %v7149_v54 = vrot.slane %v2318_v6, %v6853_v37 }
 0x4f3   : > { %v5891_v58 = vpop.eup %5890 }
 0x4f4   : > { %v5893_v59 = vpop.eup %5892 }
 0x4f5   : > { %v5895_v26 = vpop.eup %5894 }
 0x4f6   : > { %v5897_v7 = vpop.eup %5896  ;;  %v2308_v39 = vpack.c.bf16 %v5895_v26, %v5891_v58  ;;  %v5542_v8 = vpop.f32.mrb[84].mxu0 }
 0x4f7   : > { %v2253_v10 = vadd.f32 %v5542_v8, %v7086_v62  ;;  %v2244_v11 = vpop.f32.mrb[85].mxu0  ;;  %v2307_v12 = vpack.c.bf16 %v5897_v7, %v5893_v59 }
 0x4f8   : > { %v2245_v42 = vadd.f32 %v2244_v11, %v7086_v62  ;;  %v5543_v13 = vpop.f32.mrb[86].mxu0 }
 0x4f9   : > { %5898 = vtanh.f32 %v2253_v10  ;;  %v2256_v15 = vadd.f32 %v5543_v13, %v7086_v62  ;;  %v2247_v16 = vpop.f32.mrb[87].mxu0  ;;  %5554 = vmatprep.mubr.msk.bf16.mxu1 %vm1990_vm3, %v2307_v12 }
 0x4fa   : > { %5900 = vtanh.f32 %v2245_v42  ;;  %v2248_v19 = vadd.f32 %v2247_v16, %v7086_v62  ;;  %5555 = vmatmul.mubr.msk.bf16.vlgmr.msra.gmra.mrb[80].mxu1 %vm1990_vm3, %v2308_v39 }
 0x4fb   : > { %5902 = vtanh.f32 %v2256_v15  ;;  %3080 = vmatpush1.bf16.msra.mxu1 %v5714_v23 }
 0x4fc   : > { %5904 = vtanh.f32 %v2248_v19 }
 0x503   : > { %v5899_v18 = vpop.eup %5898 }
 0x504   : > { %v5901_v45 = vpop.eup %5900 }
 0x505   : > { %v5903_v20 = vpop.eup %5902 }
 0x506   : > { %v5905_v21 = vpop.eup %5904  ;;  %v5546_v52 = vpop.f32.mrb[88].mxu0  ;;  %v2310_v22 = vpack.c.bf16 %v5903_v20, %v5899_v18 }
 0x507   : > { %v2269_v24 = vadd.f32 %v5546_v52, %v7086_v62  ;;  %v2260_v25 = vpop.f32.mrb[89].mxu0  ;;  %v2309_v55 = vpack.c.bf16 %v5905_v21, %v5901_v45  ;;  %v5717_v21 = vld [vmem:[%s7939_s15 + $0x8] ss:$28 sps:$4 sm:$0xff]  }
 0x508   : > { %v2261_v27 = vadd.f32 %v2260_v25, %v7086_v62  ;;  %v5547_v28 = vpop.f32.mrb[90].mxu0 }
 0x509   : > { %5906 = vtanh.f32 %v2269_v24  ;;  %v2272_v29 = vadd.f32 %v5547_v28, %v7086_v62  ;;  %v2263_v60 = vpop.f32.mrb[91].mxu0  ;;  %5558 = vmatprep.mubr.msk.bf16.mxu1 %vm1990_vm3, %v2309_v55  ;;  %v5725_v24 = vld [vmem:[%s7939_s15 + $0x44] ss:$28 sps:$4 sm:$0xff]  }
 0x50a   : > { %5908 = vtanh.f32 %v2261_v27  ;;  %v2264_v30 = vadd.f32 %v2263_v60, %v7086_v62  ;;  %5559 = vmatmul.mubr.msk.bf16.gmra.mrb[84].mxu1 %vm1990_vm3, %v2310_v22  ;;  %v5723_v28 = vld [vmem:[%s7939_s15 + $0x40] ss:$28 sps:$4 sm:$0xff]   ;;  %v5729_v60 = vld [vmem:[%s7939_s15 + $0x78] ss:$28 sps:$4 sm:$0xff]  }
 0x50b   : > { %5910 = vtanh.f32 %v2272_v29  ;;  %v5731_v29 = vld [vmem:[%s7939_s15 + $0x7c] ss:$28 sps:$4 sm:$0xff]  }
 0x50c   : > { %5912 = vtanh.f32 %v2264_v30  ;;  %v5737_v30 = vld [vmem:[%s7939_s15 + $0xb4] ss:$28 sps:$4 sm:$0xff]  }
 0x513   : > { %v5907_v63 = vpop.eup %5906 }
 0x514   : > { %v5909_v31 = vpop.eup %5908 }
 0x515   : > { %v5911_v33 = vpop.eup %5910 }
 0x516   : > { %v5913_v38 = vpop.eup %5912  ;;  %v5550_v40 = vpop.f32.mrb[92].mxu0  ;;  %v2312_v4 = vpack.c.bf16 %v5911_v33, %v5907_v63 }
 0x517   : > { %v2285_v41 = vadd.f32 %v5550_v40, %v7086_v62  ;;  %v2276_v43 = vpop.f32.mrb[93].mxu0  ;;  %v2311_v46 = vpack.c.bf16 %v5913_v38, %v5909_v31  ;;  %v5735_v31 = vld [vmem:[%s7939_s15 + $0xb0] ss:$28 sps:$4 sm:$0xff]  }
 0x518   : > { %v2277_v9 = vadd.f32 %v2276_v43, %v7086_v62  ;;  %v5551_v14 = vpop.f32.mrb[94].mxu0 }
 0x519   : > { %5914 = vtanh.f32 %v2285_v41  ;;  %v2288_v47 = vadd.f32 %v5551_v14, %v7086_v62  ;;  %v2279_v35 = vpop.f32.mrb[95].mxu0  ;;  %5562 = vmatprep.mubr.msk.bf16.mxu1 %vm1990_vm3, %v2311_v46 }
 0x51a   : > { %5916 = vtanh.f32 %v2277_v9  ;;  %v2280_v17 = vadd.f32 %v2279_v35, %v7086_v62  ;;  %5563 = vmatmul.mubr.msk.bf16.gmra.mrb[88].mxu1 %vm1990_vm3, %v2312_v4  ;;  %v5722_v62 = vld [vmem:[%s7939_s15 + $0x3c] ss:$28 sps:$4 sm:$0xff]  }
 0x51b   : > { %5918 = vtanh.f32 %v2288_v47  ;;  %3081 = vmatprep.subr.bf16.mxu1 %v5722_v62 }
 0x51c   : > { %5920 = vtanh.f32 %v2280_v17  ;;  %3082 = vmatpush1.bf16.msra.mxu1 %v5720_v36 }
 0x51d   : > { %3083 = vmatprep.subr.bf16.mxu1 %v5728_v0 }
 0x520   : > { %3084 = vmatpush1.bf16.msra.mxu1 %v5726_v1 }
 0x521   : > { %3085 = vmatprep.subr.bf16.mxu1 %v5734_v2 }
 0x523   : > { %v5915_v48 = vpop.eup %5914 }
 0x524   : > { %v5917_v44 = vpop.eup %5916  ;;  %3086 = vmatpush1.bf16.msra.mxu1 %v5732_v3 }
 0x525   : > { %v5919_v49 = vpop.eup %5918 }
 0x526   : > { %v5921_v50 = vpop.eup %5920  ;;  %v2314_v51 = vpack.c.bf16 %v5919_v49, %v5915_v48 }
 0x527   : > { %v2313_v53 = vpack.c.bf16 %v5921_v50, %v5917_v44 }
 0x529   : > { %5566 = vmatprep.mubr.msk.bf16.mxu1 %vm1990_vm3, %v2313_v53 }
 0x52a   : > { %5567 = vmatmul.mubr.msk.bf16.gmra.mrb[92].mxu1 %vm1990_vm3, %v2314_v51 }
 0x5cd   : > { %v5556_v58 = vpop.f32.mrb[80].mxu1 }
 0x5ce   : > { %v2398_v59 = vadd.f32 %v5556_v58, %v7149_v54  ;;  %v2389_v26 = vpop.f32.mrb[81].mxu1 }
 0x5cf   : > { %v2390_v7 = vadd.f32 %v2389_v26, %v7149_v54  ;;  %v5557_v39 = vpop.f32.mrb[82].mxu1  ;;  %v5740_v26 = vld [vmem:[%s7939_s15 + $0xe4] ss:$28 sps:$4 sm:$0xff]  }
 0x5d0   : > { %5922 = vtanh.f32 %v2398_v59  ;;  %v2401_v8 = vadd.f32 %v5557_v39, %v7149_v54  ;;  %v2392_v10 = vpop.f32.mrb[83].mxu1  ;;  %v5741_v39 = vld [vmem:[%s7939_s15 + $0xe8] ss:$28 sps:$4 sm:$0xff]   ;;  %3087 = vmatprep.subr.bf16.mxu1 %v5740_v26 }
 0x5d1   : > { %5924 = vtanh.f32 %v2390_v7  ;;  %v2393_v11 = vadd.f32 %v2392_v10, %v7149_v54  ;;  %v5738_v7 = vld [vmem:[%s7939_s15 + $0xe0] ss:$28 sps:$4 sm:$0xff]  }
 0x5d2   : > { %5926 = vtanh.f32 %v2401_v8  ;;  %3088 = vmatpush1.bf16.msra.mxu1 %v5738_v7  ;;  %v5744_v8 = vld [vmem:[%s7939_s15 + $0x118] ss:$28 sps:$4 sm:$0xff]   ;;  %v5774_v7 = vld [vmem:[%s7939_s15 + $0xf0] ss:$28 sps:$4 sm:$0xff]  }
 0x5d3   : > { %5928 = vtanh.f32 %v2393_v11  ;;  %v5746_v10 = vld [vmem:[%s7939_s15 + $0x11c] ss:$28 sps:$4 sm:$0xff]  }
 0x5d4   : > { %v5747_v11 = vld [vmem:[%s7939_s15 + $0x120] ss:$28 sps:$4 sm:$0xff]   ;;  %3089 = vmatprep.subr.bf16.mxu1 %v5746_v10 }
 0x5d6   : > { %3090 = vmatpush1.bf16.msra.mxu1 %v5744_v8 }
 0x5da   : > { %v5923_v12 = vpop.eup %5922 }
 0x5db   : > { %v5925_v42 = vpop.eup %5924 }
 0x5dc   : > { %v5927_v13 = vpop.eup %5926 }
 0x5dd   : > { %v5929_v15 = vpop.eup %5928  ;;  %v2469_v16 = vpack.c.bf16 %v5927_v13, %v5923_v12  ;;  %v5560_v19 = vpop.f32.mrb[84].mxu1  ;;  %v5749_v12 = vld [vmem:[%s7939_s15 + $0x124] ss:$28 sps:$4 sm:$0xff]   ;;  %v5755_v13 = vld [vmem:[%s7939_s15 + $0x15c] ss:$28 sps:$4 sm:$0xff]  }
 0x5de   : > { %v2414_v18 = vadd.f32 %v5560_v19, %v7149_v54  ;;  %v2405_v45 = vpop.f32.mrb[85].mxu1  ;;  %v2468_v20 = vpack.c.bf16 %v5929_v15, %v5925_v42  ;;  %v5752_v42 = vld [vmem:[%s7939_s15 + $0x154] ss:$28 sps:$4 sm:$0xff]   ;;  %v5758_v19 = vld [vmem:[%s7939_s15 + $0x18c] ss:$28 sps:$4 sm:$0xff]  }
 0x5df   : > { %v2406_v52 = vadd.f32 %v2405_v45, %v7149_v54  ;;  %v5561_v22 = vpop.f32.mrb[86].mxu1  ;;  %v5750_v15 = vld [vmem:[%s7939_s15 + $0x150] ss:$28 sps:$4 sm:$0xff]   ;;  %3091 = vmatprep.subr.bf16.mxu1 %v5752_v42  ;;  %v5756_v45 = vld [vmem:[%s7939_s15 + $0x188] ss:$28 sps:$4 sm:$0xff]  }
 0x5e0   : > { %5930 = vtanh.f32 %v2414_v18  ;;  %v2417_v25 = vadd.f32 %v5561_v22, %v7149_v54  ;;  %v2408_v55 = vpop.f32.mrb[87].mxu1  ;;  %5578 = vmatprep.mubr.msk.bf16.mxu0 %vm1831_vm2, %v2468_v20  ;;  %v5761_v18 = vld [vmem:[%s7939_s15 + $0x194] ss:$28 sps:$4 sm:$0xff]   ;;  %3092 = vmatpush1.bf16.msra.mxu1 %v5750_v15 }
 0x5e1   : > { %5932 = vtanh.f32 %v2406_v52  ;;  %v2409_v27 = vadd.f32 %v2408_v55, %v7149_v54  ;;  %5579 = vmatmul.mubr.msk.bf16.vlgmr.msra.gmra.mrb[96].mxu0 %vm1831_vm2, %v2469_v16  ;;  %v5753_v16 = vld [vmem:[%s7939_s15 + $0x158] ss:$28 sps:$4 sm:$0xff]   ;;  %3093 = vmatprep.subr.bf16.mxu1 %v5758_v19  ;;  %v5759_v20 = vld [vmem:[%s7939_s15 + $0x190] ss:$28 sps:$4 sm:$0xff]   ;;  %v5786_v19 = vld [vmem:[%s7939_s15 + $0x164] ss:$28 sps:$4 sm:$0xff]  }
 0x5e2   : > { %5934 = vtanh.f32 %v2417_v25  ;;  %3193 = vmatpush1.bf16.msra.mxu0 %v5717_v21  ;;  %v6442_v21 = vmov 0   ;;  %v5764_v52 = vld [vmem:[%s7939_s15 + $0x14] ss:$28 sps:$4 sm:$0xff]  }
 0x5e3   : > { %5936 = vtanh.f32 %v2409_v27  ;;  %3194 = vmatprep.subr.bf16.mxu0 %v5725_v24  ;;  %3111 = vmatprep.mubr.bf16.mxu1 %v6442_v21  ;;  %v5777_v22 = vld [vmem:[%s7939_s15 + $0x18] ss:$28 sps:$4 sm:$0xff]   ;;  %v2484_v24 = vld [vmem:[%s7938_s14] sm:$0x1] }
 0x5e4   : > { %3094 = vmatpush1.bf16.msra.mxu1 %v5756_v45  ;;  %v2485_v25 = vunpack.c.l.bf16 %v2484_v24  ;;  %v5792_v45 = vld [vmem:[%s7939_s15 + $0x168] ss:$28 sps:$4 sm:$0xff]   ;;  %v5789_v24 = vld [vmem:[%s7939_s15 + $0x198] ss:$28 sps:$4 sm:$0xff]  }
 0x5e5   : > { %3305 = vmatprep.subr.bf16.mxu1 %v5764_v52  ;;  %v5793_v52 = vld [vmem:[%s7939_s15 + $0x1a0] ss:$28 sps:$4 sm:$0xff]  }
 0x5e6   : > { %3195 = vmatpush1.bf16.msra.mxu0 %v5723_v28  ;;  %v7256_v55 = vrot.slane %v2485_v25, %v6853_v37 }
 0x5e7   : > { %3196 = vmatprep.subr.bf16.mxu0 %v5731_v29 }
 0x5ea   : > { %v5931_v63 = vpop.eup %5930  ;;  %3197 = vmatpush1.bf16.msra.mxu0 %v5729_v60 }
 0x5eb   : > { %v5933_v33 = vpop.eup %5932  ;;  %3198 = vmatprep.subr.bf16.mxu0 %v5737_v30 }
 0x5ec   : > { %v5935_v38 = vpop.eup %5934 }
 0x5ed   : > { %v5937_v40 = vpop.eup %5936  ;;  %v5564_v4 = vpop.f32.mrb[88].mxu1  ;;  %v2471_v41 = vpack.c.bf16 %v5935_v38, %v5931_v63 }
 0x5ee   : > { %v2430_v43 = vadd.f32 %v5564_v4, %v7149_v54  ;;  %v2421_v46 = vpop.f32.mrb[89].mxu1  ;;  %v2470_v9 = vpack.c.bf16 %v5937_v40, %v5933_v33  ;;  %3199 = vmatpush1.bf16.msra.mxu0 %v5735_v31 }
 0x5ef   : > { %v2422_v14 = vadd.f32 %v2421_v46, %v7149_v54  ;;  %v5565_v47 = vpop.f32.mrb[90].mxu1  ;;  %v5762_v46 = vld [vmem:[%s7939_s15 + $0x10] ss:$28 sps:$4 sm:$0xff]  }
 0x5f0   : > { %5938 = vtanh.f32 %v2430_v43  ;;  %v2433_v35 = vadd.f32 %v5565_v47, %v7149_v54  ;;  %v2424_v17 = vpop.f32.mrb[91].mxu1  ;;  %5582 = vmatprep.mubr.msk.bf16.mxu0 %vm1831_vm2, %v2470_v9 }
 0x5f1   : > { %5940 = vtanh.f32 %v2422_v14  ;;  %v2425_v48 = vadd.f32 %v2424_v17, %v7149_v54  ;;  %5583 = vmatmul.mubr.msk.bf16.gmra.mrb[100].mxu0 %vm1831_vm2, %v2471_v41  ;;  %v5767_v17 = vld [vmem:[%s7939_s15 + $0x4c] ss:$28 sps:$4 sm:$0xff]  }
 0x5f2   : > { %5942 = vtanh.f32 %v2433_v35 }
 0x5f3   : > { %5944 = vtanh.f32 %v2425_v48 }
 0x5fa   : > { %v5939_v44 = vpop.eup %5938 }
 0x5fb   : > { %v5941_v49 = vpop.eup %5940 }
 0x5fc   : > { %v5943_v50 = vpop.eup %5942 }
 0x5fd   : > { %v5945_v51 = vpop.eup %5944  ;;  %v5568_v53 = vpop.f32.mrb[92].mxu1  ;;  %v2473_v56 = vpack.c.bf16 %v5943_v50, %v5939_v44 }
 0x5fe   : > { %v2446_v57 = vadd.f32 %v5568_v53, %v7149_v54  ;;  %v2437_v23 = vpop.f32.mrb[93].mxu1  ;;  %v2472_v61 = vpack.c.bf16 %v5945_v51, %v5941_v49  ;;  %v5778_v51 = vld [vmem:[%s7939_s15 + $0x50] ss:$28 sps:$4 sm:$0xff]  }
 0x5ff   : > { %v2438_v32 = vadd.f32 %v2437_v23, %v7149_v54  ;;  %v5569_v62 = vpop.f32.mrb[94].mxu1  ;;  %v5768_v23 = vld [vmem:[%s7939_s15 + $0x80] ss:$28 sps:$4 sm:$0xff]  }
 0x600   : > { %5946 = vtanh.f32 %v2446_v57  ;;  %v2449_v36 = vadd.f32 %v5569_v62, %v7149_v54  ;;  %v2440_v0 = vpop.f32.mrb[95].mxu1  ;;  %5586 = vmatprep.mubr.msk.bf16.mxu0 %vm1831_vm2, %v2472_v61  ;;  %v5770_v57 = vld [vmem:[%s7939_s15 + $0x84] ss:$28 sps:$4 sm:$0xff]  }
 0x601   : > { %5948 = vtanh.f32 %v2438_v32  ;;  %v2441_v1 = vadd.f32 %v2440_v0, %v7149_v54  ;;  %5587 = vmatmul.mubr.msk.bf16.gmra.mrb[104].mxu0 %vm1831_vm2, %v2473_v56  ;;  %v5743_v54 = vld [vmem:[%s7939_s15 + $0xec] ss:$28 sps:$4 sm:$0xff]   ;;  %v5773_v32 = vld [vmem:[%s7939_s15 + $0xbc] ss:$28 sps:$4 sm:$0xff]  }
 0x602   : > { %5950 = vtanh.f32 %v2449_v36  ;;  %3200 = vmatprep.subr.bf16.mxu0 %v5743_v54  ;;  %v5765_v56 = vld [vmem:[%s7939_s15 + $0x48] ss:$28 sps:$4 sm:$0xff]   ;;  %v5783_v62 = vld [vmem:[%s7939_s15 + $0xc0] ss:$28 sps:$4 sm:$0xff]   ;;  %v5771_v0 = vld [vmem:[%s7939_s15 + $0xb8] ss:$28 sps:$4 sm:$0xff]  }
 0x603   : > { %5952 = vtanh.f32 %v2441_v1  ;;  %3201 = vmatpush1.bf16.msra.mxu0 %v5741_v39  ;;  %v5782_v61 = vld [vmem:[%s7939_s15 + $0x88] ss:$28 sps:$4 sm:$0xff]   ;;  %v5787_v39 = vld [vmem:[%s7939_s15 + $0xf8] ss:$28 sps:$4 sm:$0xff]  }
 0x604   : > { %3202 = vmatprep.subr.bf16.mxu0 %v5749_v12 }
 0x607   : > { %3203 = vmatpush1.bf16.msra.mxu0 %v5747_v11  ;;  %v5781_v11 = vld [vmem:[%s7939_s15 + $0x12c] ss:$28 sps:$4 sm:$0xff]  }
 0x608   : > { %3204 = vmatprep.subr.bf16.mxu0 %v5755_v13  ;;  %v5788_v13 = vld [vmem:[%s7939_s15 + $0x130] ss:$28 sps:$4 sm:$0xff]  }
 0x60a   : > { %v5947_v2 = vpop.eup %5946 }
 0x60b   : > { %v5949_v3 = vpop.eup %5948  ;;  %3205 = vmatpush1.bf16.msra.mxu0 %v5753_v16  ;;  %v5779_v16 = vld [vmem:[%s7939_s15 + $0x128] ss:$28 sps:$4 sm:$0xff]  }
 0x60c   : > { %v5951_v5 = vpop.eup %5950  ;;  %3206 = vmatprep.subr.bf16.mxu0 %v5761_v18  ;;  %v5784_v18 = vld [vmem:[%s7939_s15 + $0x160] ss:$28 sps:$4 sm:$0xff]  }
 0x60d   : > { %v5953_v6 = vpop.eup %5952  ;;  %v2475_v58 = vpack.c.bf16 %v5951_v5, %v5947_v2  ;;  %v5776_v2 = vld [vmem:[%s7939_s15 + $0xf4] ss:$28 sps:$4 sm:$0xff]  }
 0x60e   : > { %v2474_v59 = vpack.c.bf16 %v5953_v6, %v5949_v3 }
 0x60f   : > { %3207 = vmatpush1.bf16.msra.mxu0 %v5759_v20  ;;  %v5791_v20 = vld [vmem:[%s7939_s15 + $0x19c] ss:$28 sps:$4 sm:$0xff]  }
 0x610   : > { %5590 = vmatprep.mubr.msk.bf16.mxu0 %vm1831_vm2, %v2474_v59  ;;  %5594 = vmatprep.subr.bf16.mxu0 %v5777_v22 }
 0x611   : > { %5591 = vmatmul.mubr.msk.bf16.gmra.mrb[108].mxu0 %vm1831_vm2, %v2475_v58 }
 0x612   : > { %3224 = vmatprep.mubr.bf16.mxu0 %v6442_v21 }
 0x6b4   : > { %v5580_v27 = vpop.f32.mrb[96].mxu0 }
 0x6b5   : > { %v2581_v28 = vadd.f32 %v5580_v27, %v7256_v55  ;;  %v2572_v29 = vpop.f32.mrb[97].mxu0 }
 0x6b6   : > { %v2573_v60 = vadd.f32 %v2572_v29, %v7256_v55  ;;  %v5581_v30 = vpop.f32.mrb[98].mxu0 }
 0x6b7   : > { %5954 = vtanh.f32 %v2581_v28  ;;  %v2584_v63 = vadd.f32 %v5581_v30, %v7256_v55  ;;  %v2575_v31 = vpop.f32.mrb[99].mxu0 }
 0x6b8   : > { %5956 = vtanh.f32 %v2573_v60  ;;  %v2576_v33 = vadd.f32 %v2575_v31, %v7256_v55 }
 0x6b9   : > { %5958 = vtanh.f32 %v2584_v63 }
 0x6ba   : > { %5960 = vtanh.f32 %v2576_v33 }
 0x6c1   : > { %v5955_v38 = vpop.eup %5954 }
 0x6c2   : > { %v5957_v40 = vpop.eup %5956 }
 0x6c3   : > { %v5959_v4 = vpop.eup %5958 }
 0x6c4   : > { %v5961_v41 = vpop.eup %5960  ;;  %v5584_v43 = vpop.f32.mrb[100].mxu0  ;;  %v7265_v9 = vpack.c.bf16 %v5959_v4, %v5955_v38 }
 0x6c5   : > { %v2597_v14 = vadd.f32 %v5584_v43, %v7256_v55  ;;  %v2588_v47 = vpop.f32.mrb[101].mxu0  ;;  %v7268_v35 = vpack.c.bf16 %v5961_v41, %v5957_v40 }
 0x6c6   : > { %v2589_v48 = vadd.f32 %v2588_v47, %v7256_v55  ;;  %v5585_v44 = vpop.f32.mrb[102].mxu0 }
 0x6c7   : > { %5962 = vtanh.f32 %v2597_v14  ;;  %v2600_v49 = vadd.f32 %v5585_v44, %v7256_v55  ;;  %v2591_v50 = vpop.f32.mrb[103].mxu0  ;;  %3112 = vmatmul.mubr.bf16.vlgmr.msra.gmra.mrb[96].mxu1 %v7268_v35  ;;  %3225 = vmatmul.mubr.bf16.vlgmr.msra.gmra.mrb[112].mxu0 %v7268_v35  ;;  %v7945_v44 = vsub.s32 2, %v6847_v34 }
 0x6c8   : > { %5964 = vtanh.f32 %v2589_v48  ;;  %v2592_v53 = vadd.f32 %v2591_v50, %v7256_v55  ;;  %3306 = vmatpush1.bf16.msra.mxu1 %v5762_v46  ;;  %3121 = vmatprep.mubr.bf16.mxu1 %v6442_v21 }
 0x6c9   : > { %5966 = vtanh.f32 %v2600_v49  ;;  %3234 = vmatprep.mubr.bf16.mxu0 %v6442_v21  ;;  %3307 = vmatprep.subr.bf16.mxu1 %v5767_v17  ;;  %v2742_v49 = vsub.s32 6, %v6847_v34 }
 0x6ca   : > { %5968 = vtanh.f32 %v2592_v53  ;;  %5595 = vmatpush3.bf16.msra.mxu0 %v5777_v22 }
 0x6cb   : > { %5596 = vmatprep.subr.bf16.mxu0 %v5778_v51 }
 0x6cc   : > { %3308 = vmatpush1.bf16.msra.mxu1 %v5765_v56 }
 0x6cd   : > { %3309 = vmatprep.subr.bf16.mxu1 %v5770_v57 }
 0x6ce   : > { %5597 = vmatpush3.bf16.msra.mxu0 %v5778_v51 }
 0x6cf   : > { %3122 = vmatmul.mubr.bf16.gmra.mrb[100].mxu1 %v7265_v9  ;;  %3235 = vmatmul.mubr.bf16.gmra.mrb[116].mxu0 %v7265_v9 }
 0x6d0   : > { %3131 = vmatprep.mubr.bf16.mxu1 %v6442_v21  ;;  %3244 = vmatprep.mubr.bf16.mxu0 %v6442_v21 }
 0x6d1   : > { %v5963_v36 = vpop.eup %5962  ;;  %3310 = vmatpush1.bf16.msra.mxu1 %v5768_v23  ;;  %5598 = vmatprep.subr.bf16.mxu0 %v5782_v61 }
 0x6d2   : > { %v5965_v1 = vpop.eup %5964  ;;  %3311 = vmatprep.subr.bf16.mxu1 %v5773_v32  ;;  %5599 = vmatpush3.bf16.msra.mxu0 %v5782_v61 }
 0x6d3   : > { %v5967_v3 = vpop.eup %5966  ;;  %5600 = vmatprep.subr.bf16.mxu0 %v5783_v62 }
 0x6d4   : > { %v5969_v5 = vpop.eup %5968  ;;  %v5588_v6 = vpop.f32.mrb[104].mxu0  ;;  %v7311_v58 = vpack.c.bf16 %v5967_v3, %v5963_v36 }
 0x6d5   : > { %v2613_v59 = vadd.f32 %v5588_v6, %v7256_v55  ;;  %v2604_v26 = vpop.f32.mrb[105].mxu0  ;;  %v7314_v54 = vpack.c.bf16 %v5969_v5, %v5965_v1  ;;  %3312 = vmatpush1.bf16.msra.mxu1 %v5771_v0 }
 0x6d6   : > { %v2605_v8 = vadd.f32 %v2604_v26, %v7256_v55  ;;  %v5589_v10 = vpop.f32.mrb[106].mxu0  ;;  %3313 = vmatprep.subr.bf16.mxu1 %v5776_v2  ;;  %5601 = vmatpush3.bf16.msra.mxu0 %v5783_v62 }
 0x6d7   : > { %5970 = vtanh.f32 %v2613_v59  ;;  %v2616_v12 = vadd.f32 %v5589_v10, %v7256_v55  ;;  %v2607_v42 = vpop.f32.mrb[107].mxu0  ;;  %3132 = vmatmul.mubr.bf16.gmra.mrb[104].mxu1 %v7314_v54  ;;  %3245 = vmatmul.mubr.bf16.gmra.mrb[120].mxu0 %v7314_v54 }
 0x6d8   : > { %5972 = vtanh.f32 %v2605_v8  ;;  %v2608_v15 = vadd.f32 %v2607_v42, %v7256_v55  ;;  %3141 = vmatprep.mubr.bf16.mxu1 %v6442_v21  ;;  %3254 = vmatprep.mubr.bf16.mxu0 %v6442_v21 }
 0x6d9   : > { %5974 = vtanh.f32 %v2616_v12  ;;  %3314 = vmatpush1.bf16.msra.mxu1 %v5774_v7  ;;  %5602 = vmatprep.subr.bf16.mxu0 %v5787_v39 }
 0x6da   : > { %5976 = vtanh.f32 %v2608_v15  ;;  %3315 = vmatprep.subr.bf16.mxu1 %v5781_v11  ;;  %5603 = vmatpush3.bf16.msra.mxu0 %v5787_v39 }
 0x6db   : > { %5604 = vmatprep.subr.bf16.mxu0 %v5788_v13 }
 0x6dd   : > { %3316 = vmatpush1.bf16.msra.mxu1 %v5779_v16 }
 0x6de   : > { %3317 = vmatprep.subr.bf16.mxu1 %v5786_v19  ;;  %5605 = vmatpush3.bf16.msra.mxu0 %v5788_v13 }
 0x6df   : > { %3142 = vmatmul.mubr.bf16.gmra.mrb[108].mxu1 %v7311_v58  ;;  %3255 = vmatmul.mubr.bf16.gmra.mrb[124].mxu0 %v7311_v58 }
 0x6e0   : > { %3151 = vmatprep.mubr.bf16.mxu1 %v6442_v21  ;;  %3264 = vmatprep.mubr.bf16.mxu0 %v6442_v21 }
 0x6e1   : > { %v5971_v22 = vpop.eup %5970  ;;  %3318 = vmatpush1.bf16.msra.mxu1 %v5784_v18  ;;  %5606 = vmatprep.subr.bf16.mxu0 %v5792_v45 }
 0x6e2   : > { %v5973_v25 = vpop.eup %5972  ;;  %3319 = vmatprep.subr.bf16.mxu1 %v5791_v20  ;;  %5607 = vmatpush3.bf16.msra.mxu0 %v5792_v45 }
 0x6e3   : > { %v5975_v27 = vpop.eup %5974  ;;  %5608 = vmatprep.subr.bf16.mxu0 %v5793_v52 }
 0x6e4   : > { %v5977_v28 = vpop.eup %5976  ;;  %v5592_v29 = vpop.f32.mrb[108].mxu0  ;;  %v2656_v60 = vpack.c.bf16 %v5975_v27, %v5971_v22 }
 0x6e5   : > { %v2629_v30 = vadd.f32 %v5592_v29, %v7256_v55  ;;  %v2620_v63 = vpop.f32.mrb[109].mxu0  ;;  %v2655_v31 = vpack.c.bf16 %v5977_v28, %v5973_v25  ;;  %3320 = vmatpush1.bf16.msra.mxu1 %v5789_v24 }
 0x6e6   : > { %v2621_v33 = vadd.f32 %v2620_v63, %v7256_v55  ;;  %v5593_v38 = vpop.f32.mrb[110].mxu0  ;;  %5609 = vmatpush3.bf16.msra.mxu0 %v5793_v52 }
 0x6e7   : > { %5978 = vtanh.f32 %v2629_v30  ;;  %v2632_v40 = vadd.f32 %v5593_v38, %v7256_v55  ;;  %v2623_v4 = vpop.f32.mrb[111].mxu0  ;;  %3152 = vmatmul.mubr.bf16.gmra.mrb[112].mxu1 %v2655_v31  ;;  %3265 = vmatmul.mubr.bf16.gmra.mrb[128].mxu0 %v2655_v31 }
 0x6e8   : > { %5980 = vtanh.f32 %v2621_v33  ;;  %v2624_v41 = vadd.f32 %v2623_v4, %v7256_v55  ;;  %3161 = vmatprep.mubr.bf16.mxu1 %v6442_v21  ;;  %3274 = vmatprep.mubr.bf16.mxu0 %v6442_v21  ;;  %v7389_v55 = vld [vmem:[%s7940_s16] sm:$0x7f] }
 0x6e9   : > { %5982 = vtanh.f32 %v2632_v40 }
 0x6ea   : > { %5984 = vtanh.f32 %v2624_v41 }
 0x6ef   : > { %3162 = vmatmul.mubr.bf16.gmra.mrb[116].mxu1 %v2656_v60  ;;  %3275 = vmatmul.mubr.bf16.gmra.mrb[132].mxu0 %v2656_v60 }
 0x6f0   : > { %3171 = vmatprep.mubr.bf16.mxu1 %v6442_v21  ;;  %3284 = vmatprep.mubr.bf16.mxu0 %v6442_v21 }
 0x6f1   : > { %v5979_v43 = vpop.eup %5978 }
 0x6f2   : > { %v5981_v46 = vpop.eup %5980 }
 0x6f3   : > { %v5983_v14 = vpop.eup %5982 }
 0x6f4   : > { %v5985_v47 = vpop.eup %5984  ;;  %v2658_v17 = vpack.c.bf16 %v5983_v14, %v5979_v43 }
 0x6f5   : > { %v2657_v48 = vpack.c.bf16 %v5985_v47, %v5981_v46 }
 0x6f7   : > { %3172 = vmatmul.mubr.bf16.gmra.mrb[120].mxu1 %v2657_v48  ;;  %3285 = vmatmul.mubr.bf16.gmra.mrb[136].mxu0 %v2657_v48 }
 0x6f8   : > { %3181 = vmatprep.mubr.bf16.mxu1 %v6442_v21  ;;  %3294 = vmatprep.mubr.bf16.mxu0 %v6442_v21 }
 0x6ff   : > { %3182 = vmatmul.mubr.bf16.gmra.mrb[124].mxu1 %v2658_v17  ;;  %3295 = vmatmul.mubr.bf16.gmra.mrb[140].mxu0 %v2658_v17 }
 0x700   : > { %5610 = vmatprep.mubr.bf16.mxu0 %v7268_v35  ;;  %3337 = vmatprep.mubr.bf16.mxu1 %v6442_v21 }
 0x707   : > { %3338 = vmatmul.mubr.bf16.vlgmr.msra.gmra.mrb[128].mxu1 %v7268_v35  ;;  %5611 = vmatmul.mubr.bf16.vlgmr.msra.gmra.mrb[144].mxu0 %v7265_v9  ;;  %v7944_v35 = vsub.s32 4, %v6847_v34 }
 0x708   : > { %5614 = vmatprep.mubr.bf16.mxu0 %v7314_v54  ;;  %3347 = vmatprep.mubr.bf16.mxu1 %v6442_v21 }
 0x70f   : > { %3348 = vmatmul.mubr.bf16.gmra.mrb[132].mxu1 %v7265_v9  ;;  %5615 = vmatmul.mubr.bf16.gmra.mrb[148].mxu0 %v7311_v58  ;;  %v2724_v9 = vunpack.c.l.bf16 %v7389_v55 }
 0x710   : > { %5618 = vmatprep.mubr.bf16.mxu0 %v2655_v31  ;;  %3357 = vmatprep.mubr.bf16.mxu1 %v6442_v21 }
 0x711   : > { %v2731_v50 = vrot.slane %v2724_v9, %v6853_v37  ;;  %v2739_v51 = vrot.slane %v2724_v9, %v7944_v35  ;;  %v2743_v53 = vrot.slane %v2724_v9, %v2742_v49 }
 0x713   : > { %v7401_v56 = vrot.slane %v2731_v50, %v6853_v37  ;;  %v7404_v57 = vrot.slane %v2739_v51, %v6853_v37  ;;  %v7410_v61 = vrot.slane %v2743_v53, %v6853_v37 }
 0x717   : > { %3358 = vmatmul.mubr.bf16.gmra.mrb[136].mxu1 %v7314_v54  ;;  %5619 = vmatmul.mubr.bf16.gmra.mrb[152].mxu0 %v2656_v60 }
 0x718   : > { %5622 = vmatprep.mubr.bf16.mxu0 %v2657_v48  ;;  %3367 = vmatprep.mubr.bf16.mxu1 %v6442_v21 }
 0x71f   : > { %3368 = vmatmul.mubr.bf16.gmra.mrb[140].mxu1 %v7311_v58  ;;  %5623 = vmatmul.mubr.bf16.gmra.mrb[156].mxu0 %v2658_v17 }
 0x720   : > { %3377 = vmatprep.mubr.bf16.mxu1 %v6442_v21 }
 0x727   : > { %3378 = vmatmul.mubr.bf16.gmra.mrb[144].mxu1 %v2655_v31 }
 0x728   : > { %3387 = vmatprep.mubr.bf16.mxu1 %v6442_v21 }
 0x72f   : > { %3388 = vmatmul.mubr.bf16.gmra.mrb[148].mxu1 %v2656_v60 }
 0x730   : > { %3397 = vmatprep.mubr.bf16.mxu1 %v6442_v21 }
 0x737   : > { %3398 = vmatmul.mubr.bf16.gmra.mrb[152].mxu1 %v2657_v48 }
 0x738   : > { %3407 = vmatprep.mubr.bf16.mxu1 %v6442_v21  ;;  %v2735_v21 = vrot.slane %v2724_v9, %v7945_v44 }
 0x73a   : > { %v7407_v23 = vrot.slane %v2735_v21, %v6853_v37 }
 0x73f   : > { %3408 = vmatmul.mubr.bf16.gmra.mrb[156].mxu1 %v2658_v17 }
 0x79a   : > { %v3113_v32 = vpop.f32.mrb[96].mxu1  ;;  %v3226_v62 = vpop.f32.mrb[112].mxu0 }
 0x79b   : > { %v3114_v36 = vadd.f32 %v3113_v32, %v7401_v56  ;;  %v3227_v0 = vadd.f32 %v3226_v62, %v7404_v57  ;;  %v3115_v1 = vpop.f32.mrb[97].mxu1  ;;  %v3228_v2 = vpop.f32.mrb[113].mxu0 }
 0x79c   : > { %v3116_v3 = vadd.f32 %v3115_v1, %v7407_v23  ;;  %v3229_v5 = vadd.f32 %v3228_v2, %v7410_v61  ;;  %v3117_v6 = vpop.f32.mrb[98].mxu1  ;;  %v3230_v58 = vpop.f32.mrb[114].mxu0 }
 0x79d   : > { %v4895_v59 = vmul.f32 -1.442695, %v3114_v36  ;;  %v4897_v26 = vmul.f32 -1.442695, %v3227_v0  ;;  %v3118_v54 = vadd.f32 %v3117_v6, %v7401_v56  ;;  %v3231_v7 = vadd.f32 %v3230_v58, %v7404_v57  ;;  %v3119_v39 = vpop.f32.mrb[99].mxu1  ;;  %v3232_v8 = vpop.f32.mrb[115].mxu0 }
 0x79e   : > { %v4896_v10 = vmul.f32 -1.442695, %v3116_v3  ;;  %v4898_v11 = vmul.f32 -1.442695, %v3229_v5  ;;  %v3120_v12 = vadd.f32 %v3119_v39, %v7407_v23  ;;  %v3233_v42 = vadd.f32 %v3232_v8, %v7410_v61 }
 0x79f   : > { %5986 = vpow2.f32 %v4895_v59  ;;  %v4902_v13 = vmul.f32 -1.442695, %v3118_v54  ;;  %v4904_v15 = vmul.f32 -1.442695, %v3231_v7 }
 0x7a0   : > { %5988 = vpow2.f32 %v4897_v26  ;;  %v4903_v16 = vmul.f32 -1.442695, %v3120_v12  ;;  %v4905_v19 = vmul.f32 -1.442695, %v3233_v42 }
 0x7a1   : > { %5990 = vpow2.f32 %v4896_v10 }
 0x7a2   : > { %5992 = vpow2.f32 %v4898_v11  ;;  %v3123_v18 = vpop.f32.mrb[100].mxu1  ;;  %v3236_v45 = vpop.f32.mrb[116].mxu0 }
 0x7a3   : > { %5994 = vpow2.f32 %v4902_v13  ;;  %v3124_v20 = vadd.f32 %v3123_v18, %v7401_v56  ;;  %v3237_v52 = vadd.f32 %v3236_v45, %v7404_v57  ;;  %v3125_v22 = vpop.f32.mrb[101].mxu1  ;;  %v3238_v24 = vpop.f32.mrb[117].mxu0 }
 0x7a4   : > { %5996 = vpow2.f32 %v4904_v15  ;;  %v3126_v25 = vadd.f32 %v3125_v22, %v7407_v23  ;;  %v3239_v27 = vadd.f32 %v3238_v24, %v7410_v61  ;;  %v3127_v28 = vpop.f32.mrb[102].mxu1  ;;  %v3240_v29 = vpop.f32.mrb[118].mxu0 }
 0x7a5   : > { %5998 = vpow2.f32 %v4903_v16  ;;  %v4909_v60 = vmul.f32 -1.442695, %v3124_v20  ;;  %v4911_v30 = vmul.f32 -1.442695, %v3237_v52  ;;  %v3128_v63 = vadd.f32 %v3127_v28, %v7401_v56  ;;  %v3129_v31 = vpop.f32.mrb[103].mxu1  ;;  %v3242_v33 = vpop.f32.mrb[119].mxu0 }
 0x7a6   : > { %6000 = vpow2.f32 %v4905_v19  ;;  %v4910_v38 = vmul.f32 -1.442695, %v3126_v25  ;;  %v4912_v40 = vmul.f32 -1.442695, %v3239_v27  ;;  %v3241_v54 = vadd.f32 %v3240_v29, %v7404_v57 }
 0x7a7   : > { %6002 = vpow2.f32 %v4909_v60  ;;  %v4916_v4 = vmul.f32 -1.442695, %v3128_v63  ;;  %v3130_v8 = vadd.f32 %v3129_v31, %v7407_v23  ;;  %v3243_v42 = vadd.f32 %v3242_v33, %v7410_v61 }
 0x7a8   : > { %6004 = vpow2.f32 %v4911_v30  ;;  %v4918_v24 = vmul.f32 -1.442695, %v3241_v54 }
 0x7a9   : > { %v5987_v41 = vpop.eup %5986  ;;  %6006 = vpow2.f32 %v4910_v38  ;;  %v4917_v30 = vmul.f32 -1.442695, %v3130_v8  ;;  %v4919_v38 = vmul.f32 -1.442695, %v3243_v42 }
 0x7aa   : > { %v5989_v43 = vpop.eup %5988  ;;  %v3851_v46 = vadd.f32 1.0, %v5987_v41  ;;  %6008 = vpow2.f32 %v4912_v40  ;;  %v3133_v14 = vpop.f32.mrb[104].mxu1 }
 0x7ab   : > { %v3246_v47 = vpop.f32.mrb[120].mxu0  ;;  %v5991_v17 = vpop.eup %5990  ;;  %v3853_v48 = vadd.f32 1.0, %v5989_v43  ;;  %6010 = vpow2.f32 %v4916_v4  ;;  %v3134_v18 = vadd.f32 %v3133_v14, %v7401_v56 }
 0x7ac   : > { %v3135_v9 = vpop.f32.mrb[105].mxu1  ;;  %v3248_v49 = vpop.f32.mrb[121].mxu0  ;;  %6012 = vrcp.f32 %v3851_v46  ;;  %v3852_v51 = vadd.f32 1.0, %v5991_v17  ;;  %v3247_v25 = vadd.f32 %v3246_v47, %v7404_v57 }
 0x7ad   : > { %v5993_v50 = vpop.eup %5992  ;;  %v3137_v21 = vpop.f32.mrb[106].mxu1  ;;  %6014 = vrcp.f32 %v3853_v48  ;;  %v3136_v63 = vadd.f32 %v3135_v9, %v7407_v23  ;;  %v3249_v40 = vadd.f32 %v3248_v49, %v7410_v61  ;;  %v4923_v41 = vmul.f32 -1.442695, %v3134_v18 }
 0x7ae   : > { %v7425_v53 = vpop.f32.mrb[122].mxu0  ;;  %v5995_v32 = vpop.eup %5994  ;;  %v3854_v62 = vadd.f32 1.0, %v5993_v50  ;;  %6016 = vrcp.f32 %v3852_v51  ;;  %v3138_v43 = vadd.f32 %v3137_v21, %v7401_v56  ;;  %v4925_v47 = vmul.f32 -1.442695, %v3247_v25 }
 0x7af   : > { %v7427_v36 = vpop.f32.mrb[107].mxu1  ;;  %v5997_v0 = vpop.eup %5996  ;;  %v3858_v1 = vadd.f32 1.0, %v5995_v32  ;;  %v3251_v17 = vadd.f32 %v7425_v53, %v7404_v57  ;;  %v4924_v49 = vmul.f32 -1.442695, %v3136_v63 }
 0x7b0   : > { %v7429_v2 = vpop.f32.mrb[123].mxu0  ;;  %v5999_v3 = vpop.eup %5998  ;;  %6018 = vrcp.f32 %v3854_v62  ;;  %v3860_v5 = vadd.f32 1.0, %v5997_v0  ;;  %v3140_v50 = vadd.f32 %v7427_v36, %v7407_v23  ;;  %v4926_v62 = vmul.f32 -1.442695, %v3249_v40 }
 0x7b1   : > { %v6001_v6 = vpop.eup %6000  ;;  %6020 = vrcp.f32 %v3858_v1  ;;  %v3859_v58 = vadd.f32 1.0, %v5999_v3  ;;  %v3253_v0 = vadd.f32 %v7429_v2, %v7410_v61  ;;  %v4932_v54 = vmul.f32 -1.442695, %v3251_v17 }
 0x7b2   : > { %v6003_v59 = vpop.eup %6002  ;;  %6022 = vrcp.f32 %v3860_v5  ;;  %v3861_v26 = vadd.f32 1.0, %v6001_v6  ;;  %v3143_v10 = vpop.f32.mrb[108].mxu1  ;;  %v4930_v5 = vmul.f32 -1.442695, %v3138_v43 }
 0x7b3   : > { %v6005_v7 = vpop.eup %6004  ;;  %6024 = vrcp.f32 %v3859_v58  ;;  %v3865_v39 = vadd.f32 1.0, %v6003_v59  ;;  %v3256_v13 = vpop.f32.mrb[124].mxu0  ;;  %v3144_v36 = vadd.f32 %v3143_v10, %v7401_v56  ;;  %v4933_v10 = vmul.f32 -1.442695, %v3253_v0 }
 0x7b4   : > { %v6007_v11 = vpop.eup %6006  ;;  %6026 = vrcp.f32 %v3861_v26  ;;  %v3867_v12 = vadd.f32 1.0, %v6005_v7  ;;  %v7434_v15 = vpop.f32.mrb[109].mxu1  ;;  %v3257_v2 = vadd.f32 %v3256_v13, %v7404_v57 }
 0x7b5   : > { %v6009_v16 = vpop.eup %6008  ;;  %6028 = vrcp.f32 %v3865_v39  ;;  %v3866_v19 = vadd.f32 1.0, %v6007_v11  ;;  %v7438_v45 = vpop.f32.mrb[125].mxu0  ;;  %v4937_v18 = vmul.f32 -1.442695, %v3144_v36 }
 0x7b6   : > { %v7440_v20 = vpop.f32.mrb[110].mxu1  ;;  %v6011_v52 = vpop.eup %6010  ;;  %6030 = vrcp.f32 %v3867_v12  ;;  %v3868_v22 = vadd.f32 1.0, %v6009_v16  ;;  %v4931_v12 = vmul.f32 -1.442695, %v3140_v50 }
 0x7b7   : > { %v7443_v27 = vpop.f32.mrb[126].mxu0  ;;  %v7445_v28 = vpop.f32.mrb[111].mxu1  ;;  %6032 = vrcp.f32 %v3866_v19  ;;  %v3872_v60 = vadd.f32 1.0, %v6011_v52 }
 0x7b8   : > { %v6013_v29 = vpop.eup %6012  ;;  %v7448_v31 = vpop.f32.mrb[127].mxu0  ;;  %6034 = vrcp.f32 %v3868_v22 }
 0x7b9   : > { %v6015_v33 = vpop.eup %6014  ;;  %6036 = vrcp.f32 %v3872_v60  ;;  %v3146_v60 = vadd.f32 %v7434_v15, %v7407_v23 }
 0x7ba   : > { %v6017_v4 = vpop.eup %6016  ;;  %6038 = vpow2.f32 %v4918_v24  ;;  %v7461_v51 = vpop.f32.mrb[112].mxu1  ;;  %v4939_v24 = vmul.f32 -1.442695, %v3257_v2 }
 0x7bb   : > { %v6019_v46 = vpop.eup %6018  ;;  %v5073_v14 = vpack.c.bf16 %v6017_v4, %v6013_v29  ;;  %6040 = vpow2.f32 %v4917_v30  ;;  %v7463_v32 = vpop.f32.mrb[128].mxu0  ;;  %v7507_v0 = vmul.f32 -1.442695, %v3146_v60 }
 0x7bc   : > { %v6021_v48 = vpop.eup %6020  ;;  %v5074_v9 = vpack.c.bf16 %v6019_v46, %v6015_v33  ;;  %6042 = vpow2.f32 %v4919_v38  ;;  %v7468_v53 = vpop.f32.mrb[113].mxu1 }
 0x7bd   : > { %v6023_v21 = vpop.eup %6022  ;;  %4556 = vst [vmem:[%s7454_s2] sm:$0xff] %v5073_v14  ;;  %v7470_v1 = vpop.f32.mrb[129].mxu0  ;;  %6044 = vpow2.f32 %v4923_v41 }
 0x7be   : > { %v6025_v3 = vpop.eup %6024  ;;  %4557 = vst [vmem:[%s7454_s2 + $0x8] sm:$0xff] %v5074_v9  ;;  %v7474_v6 = vpop.f32.mrb[114].mxu1  ;;  %6046 = vpow2.f32 %v4925_v47 }
 0x7bf   : > { %v3270_v58 = vpop.f32.mrb[130].mxu0  ;;  %v6027_v59 = vpop.eup %6026  ;;  %v5077_v26 = vpack.c.bf16 %v6025_v3, %v6021_v48  ;;  %6048 = vpow2.f32 %v4924_v49  ;;  %v3259_v49 = vadd.f32 %v7438_v45, %v7410_v61 }
 0x7c0   : > { %v7477_v7 = vpop.f32.mrb[115].mxu1  ;;  %v3272_v39 = vpop.f32.mrb[131].mxu0  ;;  %v5078_v11 = vpack.c.bf16 %v6027_v59, %v6023_v21  ;;  %6050 = vpow2.f32 %v4926_v62  ;;  %v7481_v16 = vadd.f32 %v3270_v58, %v7404_v57 }
 0x7c1   : > { %v6029_v8 = vpop.eup %6028  ;;  %4561 = vst [vmem:[%s7454_s2 + $0x1c] sm:$0xff] %v5077_v26  ;;  %6052 = vpow2.f32 %v4930_v5  ;;  %v7485_v13 = vadd.f32 %v3272_v39, %v7410_v61 }
 0x7c2   : > { %v6031_v42 = vpop.eup %6030  ;;  %4562 = vst [vmem:[%s7454_s2 + $0x24] sm:$0xff] %v5078_v11  ;;  %6054 = vpow2.f32 %v4932_v54  ;;  %v3163_v30 = vpop.f32.mrb[116].mxu1  ;;  %v7521_v11 = vmul.f32 -1.442695, %v3259_v49 }
 0x7c3   : > { %v6033_v19 = vpop.eup %6032  ;;  %6056 = vpow2.f32 %v4931_v12  ;;  %v3276_v63 = vpop.f32.mrb[132].mxu0  ;;  %v7493_v38 = vadd.f32 %v3163_v30, %v7401_v56  ;;  %v3148_v12 = vadd.f32 %v7440_v20, %v7401_v56 }
 0x7c4   : > { %v6035_v52 = vpop.eup %6034  ;;  %v5081_v22 = vpack.c.bf16 %v6033_v19, %v6029_v8  ;;  %6058 = vpow2.f32 %v4933_v10  ;;  %v7496_v40 = vadd.f32 %v3276_v63, %v7404_v57  ;;  %v3165_v4 = vpop.f32.mrb[117].mxu1  ;;  %v3261_v19 = vadd.f32 %v7443_v27, %v7404_v57 }
 0x7c5   : > { %v7487_v25 = vpop.eup %6036  ;;  %v5082_v29 = vpack.c.bf16 %v6035_v52, %v6031_v42  ;;  %v3278_v41 = vpop.f32.mrb[133].mxu0  ;;  %6060 = vpow2.f32 %v4937_v18  ;;  %v7500_v14 = vadd.f32 %v3165_v4, %v7407_v23  ;;  %v3150_v18 = vadd.f32 %v7445_v28, %v7407_v23 }
 0x7c6   : > { %v6039_v33 = vpop.eup %6038  ;;  %4565 = vst [vmem:[%s7454_s2 + $0x38] sm:$0xff] %v5081_v22  ;;  %v7503_v15 = vadd.f32 %v3278_v41, %v7410_v61  ;;  %v3167_v47 = vpop.f32.mrb[118].mxu1  ;;  %6062 = vpow2.f32 %v4939_v24 }
 0x7c7   : > { %v6041_v43 = vpop.eup %6040  ;;  %4566 = vst [vmem:[%s7454_s2 + $0x40] sm:$0xff] %v5082_v29  ;;  %v3874_v46 = vadd.f32 1.0, %v6039_v33  ;;  %v3280_v17 = vpop.f32.mrb[134].mxu0  ;;  %v7510_v58 = vadd.f32 %v3167_v47, %v7401_v56  ;;  %v3263_v29 = vadd.f32 %v7448_v31, %v7410_v61  ;;  %v4944_v31 = vmul.f32 -1.442695, %v3148_v12 }
 0x7c8   : > { %v6043_v48 = vpop.eup %6042  ;;  %v3873_v9 = vadd.f32 1.0, %v6041_v43  ;;  %v3169_v50 = vpop.f32.mrb[119].mxu1  ;;  %v7513_v59 = vadd.f32 %v3280_v17, %v7404_v57 }
 0x7c9   : > { %v6045_v21 = vpop.eup %6044  ;;  %6064 = vrcp.f32 %v3874_v46  ;;  %v3875_v62 = vadd.f32 1.0, %v6043_v48  ;;  %v3282_v3 = vpop.f32.mrb[135].mxu0  ;;  %v7516_v45 = vadd.f32 %v3169_v50, %v7407_v23  ;;  %v4946_v50 = vmul.f32 -1.442695, %v3261_v19 }
 0x7ca   : > { %v6047_v5 = vpop.eup %6046  ;;  %6066 = vrcp.f32 %v3873_v9  ;;  %v3879_v36 = vadd.f32 1.0, %v6045_v21  ;;  %v7519_v2 = vadd.f32 %v3282_v3, %v7410_v61  ;;  %v3173_v52 = vpop.f32.mrb[120].mxu1  ;;  %v4945_v21 = vmul.f32 -1.442695, %v3150_v18 }
 0x7cb   : > { %v6049_v26 = vpop.eup %6048  ;;  %6068 = vrcp.f32 %v3875_v62  ;;  %v3881_v54 = vadd.f32 1.0, %v6047_v5  ;;  %v7532_v60 = vadd.f32 %v3173_v52, %v7401_v56  ;;  %v3286_v20 = vpop.f32.mrb[136].mxu0  ;;  %v3267_v19 = vadd.f32 %v7463_v32, %v7404_v57 }
 0x7cc   : > { %v6051_v39 = vpop.eup %6050  ;;  %6070 = vrcp.f32 %v3879_v36  ;;  %v3880_v8 = vadd.f32 1.0, %v6049_v26  ;;  %v3175_v30 = vpop.f32.mrb[121].mxu1  ;;  %v7535_v27 = vadd.f32 %v3286_v20, %v7404_v57  ;;  %v3154_v36 = vadd.f32 %v7461_v51, %v7401_v56 }
 0x7cd   : > { %v6053_v42 = vpop.eup %6052  ;;  %6072 = vrcp.f32 %v3881_v54  ;;  %v3882_v10 = vadd.f32 1.0, %v6051_v39  ;;  %v7538_v28 = vadd.f32 %v3175_v30, %v7407_v23  ;;  %v3288_v4 = vpop.f32.mrb[137].mxu0 }
 0x7ce   : > { %v6055_v22 = vpop.eup %6054  ;;  %6074 = vrcp.f32 %v3880_v8  ;;  %v3886_v24 = vadd.f32 1.0, %v6053_v42  ;;  %v3177_v41 = vpop.f32.mrb[122].mxu1  ;;  %v7541_v47 = vadd.f32 %v3288_v4, %v7410_v61  ;;  %v4951_v32 = vmul.f32 -1.442695, %v3154_v36 }
 0x7cf   : > { %v6057_v63 = vpop.eup %6056  ;;  %6076 = vrcp.f32 %v3882_v10  ;;  %v3888_v33 = vadd.f32 1.0, %v6055_v22  ;;  %v3290_v17 = vpop.f32.mrb[138].mxu0  ;;  %v7546_v26 = vadd.f32 %v3177_v41, %v7401_v56  ;;  %v4947_v10 = vmul.f32 -1.442695, %v3263_v29 }
 0x7d0   : > { %v6059_v43 = vpop.eup %6058  ;;  %6078 = vrcp.f32 %v3886_v24  ;;  %v3887_v46 = vadd.f32 1.0, %v6057_v63  ;;  %v3179_v48 = vpop.f32.mrb[123].mxu1  ;;  %v7549_v8 = vadd.f32 %v3290_v17, %v7404_v57  ;;  %v3156_v22 = vadd.f32 %v7468_v53, %v7407_v23 }
 0x7d1   : > { %v6061_v9 = vpop.eup %6060  ;;  %6080 = vrcp.f32 %v3888_v33  ;;  %v3889_v49 = vadd.f32 1.0, %v6059_v43  ;;  %v3292_v62 = vpop.f32.mrb[139].mxu0  ;;  %v7552_v12 = vadd.f32 %v3179_v48, %v7407_v23  ;;  %v3269_v24 = vadd.f32 %v7470_v1, %v7410_v61 }
 0x7d2   : > { %v6063_v3 = vpop.eup %6062  ;;  %6082 = vrcp.f32 %v3887_v46  ;;  %v3893_v5 = vadd.f32 1.0, %v6061_v9  ;;  %v7557_v51 = vadd.f32 %v3292_v62, %v7410_v61  ;;  %v3183_v20 = vpop.f32.mrb[124].mxu1  ;;  %v3158_v48 = vadd.f32 %v7474_v6, %v7401_v56 }
 0x7d3   : > { %v6065_v54 = vpop.eup %6064  ;;  %6084 = vrcp.f32 %v3889_v49  ;;  %v3895_v39 = vadd.f32 1.0, %v6063_v3  ;;  %v3296_v30 = vpop.f32.mrb[140].mxu0  ;;  %v7566_v33 = vadd.f32 %v3183_v20, %v7401_v56  ;;  %v4953_v36 = vmul.f32 -1.442695, %v3267_v19 }
 0x7d4   : > { %v6067_v42 = vpop.eup %6066  ;;  %6086 = vrcp.f32 %v3893_v5  ;;  %v3185_v4 = vpop.f32.mrb[125].mxu1  ;;  %v7571_v53 = vadd.f32 %v3296_v30, %v7404_v57  ;;  %v3160_v6 = vadd.f32 %v7477_v7, %v7407_v23  ;;  %v4960_v7 = vmul.f32 -1.442695, %v7481_v16 }
 0x7d5   : > { %v6069_v18 = vpop.eup %6068  ;;  %v5085_v52 = vpack.c.bf16 %v6067_v42, %v7487_v25  ;;  %6088 = vrcp.f32 %v3895_v39  ;;  %v3298_v25 = vpop.f32.mrb[141].mxu0  ;;  %v7574_v1 = vadd.f32 %v3185_v4, %v7407_v23 }
 0x7d6   : > { %v6071_v29 = vpop.eup %6070  ;;  %v5086_v63 = vpack.c.bf16 %v6069_v18, %v6065_v54  ;;  %6090 = vpow2.f32 %v7507_v0  ;;  %v7577_v43 = vadd.f32 %v3298_v25, %v7410_v61  ;;  %v3187_v0 = vpop.f32.mrb[126].mxu1 }
 0x7d7   : > { %v6073_v41 = vpop.eup %6072  ;;  %4569 = vst [vmem:[%s7454_s2 + $0x54] sm:$0xff] %v5085_v52  ;;  %6092 = vpow2.f32 %v7521_v11  ;;  %v3300_v46 = vpop.f32.mrb[142].mxu0  ;;  %v7583_v11 = vadd.f32 %v3187_v0, %v7401_v56  ;;  %v4954_v56 = vmul.f32 -1.442695, %v3269_v24 }
 0x7d8   : > { %v6075_v17 = vpop.eup %6074  ;;  %4570 = vst [vmem:[%s7454_s2 + $0x5c] sm:$0xff] %v5086_v63  ;;  %6094 = vpow2.f32 %v4944_v31  ;;  %v7586_v9 = vadd.f32 %v3300_v46, %v7404_v57  ;;  %v3189_v49 = vpop.f32.mrb[127].mxu1  ;;  %v4952_v31 = vmul.f32 -1.442695, %v3156_v22 }
 0x7d9   : > { %v3302_v62 = vpop.f32.mrb[143].mxu0  ;;  %v6077_v3 = vpop.eup %6076  ;;  %v5089_v5 = vpack.c.bf16 %v6075_v17, %v6071_v29  ;;  %6096 = vpow2.f32 %v4946_v50  ;;  %v7592_v57 = vadd.f32 %v3189_v49, %v7407_v23  ;;  %v4958_v50 = vmul.f32 -1.442695, %v3158_v48 }
 0x7da   : > { %v6079_v54 = vpop.eup %6078  ;;  %v5090_v39 = vpack.c.bf16 %v6077_v3, %v6073_v41  ;;  %6098 = vpow2.f32 %v4945_v21  ;;  %v7595_v18 = vadd.f32 %v3302_v62, %v7410_v61  ;;  %v7599_v22 = vpop.f32.mrb[128].mxu1  ;;  %v4959_v61 = vmul.f32 -1.442695, %v3160_v6 }
 0x7db   : > { %v6081_v42 = vpop.eup %6080  ;;  %4573 = vst [vmem:[%s7454_s2 + $0x70] sm:$0xff] %v5089_v5  ;;  %6100 = vpow2.f32 %v4947_v10  ;;  %v7601_v10 = vpop.f32.mrb[144].mxu0 }
 0x7dc   : > { %v6083_v52 = vpop.eup %6082  ;;  %4574 = vst [vmem:[%s7454_s2 + $0x78] sm:$0xff] %v5090_v39  ;;  %6102 = vpow2.f32 %v4951_v32  ;;  %v7605_v20 = vpop.f32.mrb[129].mxu1 }
 0x7dd   : > { %v6085_v21 = vpop.eup %6084  ;;  %v5093_v19 = vpack.c.bf16 %v6083_v52, %v6079_v54  ;;  %6104 = vpow2.f32 %v4953_v36  ;;  %v7607_v30 = vpop.f32.mrb[145].mxu0 }
 0x7de   : > { %v7603_v23 = vpop.eup %6086  ;;  %v5094_v24 = vpack.c.bf16 %v6085_v21, %v6081_v42  ;;  %6106 = vpow2.f32 %v4952_v31  ;;  %v7612_v63 = vpop.f32.mrb[130].mxu1 }
 0x7df   : > { %v7609_v29 = vpop.eup %6088  ;;  %4577 = vst [vmem:[%s7454_s2 + $0x8c] sm:$0xff] %v5093_v19  ;;  %6108 = vpow2.f32 %v4954_v56  ;;  %v7614_v16 = vpop.f32.mrb[146].mxu0 }
 0x7e0   : > { %v6091_v32 = vpop.eup %6090  ;;  %4578 = vst [vmem:[%s7454_s2 + $0x94] sm:$0xff] %v5094_v24  ;;  %6110 = vpow2.f32 %v4958_v50  ;;  %v7617_v4 = vpop.f32.mrb[131].mxu1 }
 0x7e1   : > { %v7619_v25 = vpop.f32.mrb[147].mxu0  ;;  %v6093_v41 = vpop.eup %6092  ;;  %v3894_v0 = vadd.f32 1.0, %v6091_v32  ;;  %6112 = vpow2.f32 %v4960_v7 }
 0x7e2   : > { %v6095_v46 = vpop.eup %6094  ;;  %v3896_v17 = vadd.f32 1.0, %v6093_v41  ;;  %6114 = vpow2.f32 %v4959_v61  ;;  %v7621_v54 = vpop.f32.mrb[132].mxu1 }
 0x7e3   : > { %v6097_v48 = vpop.eup %6096  ;;  %6116 = vrcp.f32 %v3894_v0  ;;  %v3900_v49 = vadd.f32 1.0, %v6095_v46  ;;  %v7623_v6 = vpop.f32.mrb[148].mxu0 }
 0x7e4   : > { %v6099_v62 = vpop.eup %6098  ;;  %6118 = vrcp.f32 %v3896_v17  ;;  %v3902_v3 = vadd.f32 1.0, %v6097_v48  ;;  %v7625_v42 = vpop.f32.mrb[133].mxu1 }
 0x7e5   : > { %v6101_v5 = vpop.eup %6100  ;;  %6120 = vrcp.f32 %v3900_v49  ;;  %v3901_v36 = vadd.f32 1.0, %v6099_v62  ;;  %v7627_v50 = vpop.f32.mrb[149].mxu0 }
 0x7e6   : > { %v6103_v39 = vpop.eup %6102  ;;  %6122 = vrcp.f32 %v3902_v3  ;;  %v3903_v31 = vadd.f32 1.0, %v6101_v5  ;;  %v7629_v21 = vpop.f32.mrb[134].mxu1  ;;  %v4961_v5 = vmul.f32 -1.442695, %v7485_v13 }
 0x7e7   : > { %v6105_v56 = vpop.eup %6104  ;;  %6124 = vrcp.f32 %v3901_v36  ;;  %v3907_v52 = vadd.f32 1.0, %v6103_v39  ;;  %v7631_v24 = vpop.f32.mrb[150].mxu0 }
 0x7e8   : > { %v6107_v19 = vpop.eup %6106  ;;  %6126 = vrcp.f32 %v3903_v31  ;;  %v3909_v7 = vadd.f32 1.0, %v6105_v56  ;;  %v7633_v61 = vpop.f32.mrb[135].mxu1  ;;  %v4965_v31 = vmul.f32 -1.442695, %v7493_v38 }
 0x7e9   : > { %v6109_v32 = vpop.eup %6108  ;;  %6128 = vrcp.f32 %v3907_v52  ;;  %v3908_v41 = vadd.f32 1.0, %v6107_v19  ;;  %v7635_v0 = vpop.f32.mrb[151].mxu0 }
 0x7ea   : > { %v6111_v46 = vpop.eup %6110  ;;  %6130 = vrcp.f32 %v3909_v7  ;;  %v3910_v17 = vadd.f32 1.0, %v6109_v32  ;;  %v7639_v56 = vpop.f32.mrb[136].mxu1  ;;  %v4967_v7 = vmul.f32 -1.442695, %v7496_v40  ;;  %v4968_v40 = vmul.f32 -1.442695, %v7503_v15 }
 0x7eb   : > { %v6113_v48 = vpop.eup %6112  ;;  %6132 = vrcp.f32 %v3908_v41  ;;  %v3914_v49 = vadd.f32 1.0, %v6111_v46  ;;  %v7643_v32 = vpop.f32.mrb[152].mxu0 }
 0x7ec   : > { %v6115_v62 = vpop.eup %6114  ;;  %6134 = vrcp.f32 %v3910_v17  ;;  %v3916_v3 = vadd.f32 1.0, %v6113_v48  ;;  %v7645_v41 = vpop.f32.mrb[137].mxu1  ;;  %v4966_v17 = vmul.f32 -1.442695, %v7500_v14  ;;  %v4972_v14 = vmul.f32 -1.442695, %v7510_v58 }
 0x7ed   : > { %v6117_v36 = vpop.eup %6116  ;;  %6136 = vrcp.f32 %v3914_v49  ;;  %v3915_v39 = vadd.f32 1.0, %v6115_v62  ;;  %v7649_v38 = vpop.f32.mrb[153].mxu0  ;;  %v4979_v58 = vmul.f32 -1.442695, %v7532_v60  ;;  %v4980_v60 = vmul.f32 -1.442695, %v7538_v28 }
 0x7ee   : > { %v6119_v52 = vpop.eup %6118  ;;  %v5097_v19 = vpack.c.bf16 %v6117_v36, %v7603_v23  ;;  %6138 = vrcp.f32 %v3916_v3  ;;  %v7651_v48 = vpop.f32.mrb[138].mxu1 }
 0x7ef   : > { %v6121_v13 = vpop.eup %6120  ;;  %v5098_v46 = vpack.c.bf16 %v6119_v52, %v7609_v29  ;;  %6140 = vrcp.f32 %v3915_v39  ;;  %v7655_v23 = vpop.f32.mrb[154].mxu0 }
 0x7f0   : > { %v6123_v49 = vpop.eup %6122  ;;  %4581 = vst [vmem:[%s7454_s2 + $0xa8] sm:$0xff] %v5097_v19  ;;  %6142 = vpow2.f32 %v4961_v5  ;;  %v7657_v62 = vpop.f32.mrb[139].mxu1  ;;  %v4974_v5 = vmul.f32 -1.442695, %v7513_v59  ;;  %v4973_v19 = vmul.f32 -1.442695, %v7516_v45 }
 0x7f1   : > { %v6125_v3 = vpop.eup %6124  ;;  %4582 = vst [vmem:[%s7454_s2 + $0xb0] sm:$0xff] %v5098_v46  ;;  %6144 = vpow2.f32 %v4965_v31  ;;  %v7661_v29 = vpop.f32.mrb[155].mxu0  ;;  %v4975_v31 = vmul.f32 -1.442695, %v7519_v2  ;;  %v4981_v45 = vmul.f32 -1.442695, %v7535_v27 }
 0x7f2   : > { %v6127_v36 = vpop.eup %6126  ;;  %v5101_v39 = vpack.c.bf16 %v6125_v3, %v6121_v13  ;;  %6146 = vpow2.f32 %v4967_v7  ;;  %v7669_v13 = vpop.f32.mrb[140].mxu1  ;;  %v4982_v27 = vmul.f32 -1.442695, %v7541_v47 }
 0x7f3   : > { %v6129_v52 = vpop.eup %6128  ;;  %v5102_v15 = vpack.c.bf16 %v6127_v36, %v6123_v49  ;;  %6148 = vpow2.f32 %v4966_v17  ;;  %v7671_v7 = vpop.f32.mrb[156].mxu0 }
 0x7f4   : > { %v6131_v35 = vpop.eup %6130  ;;  %4585 = vst [vmem:[%s7454_s2 + $0xc4] sm:$0xff] %v5101_v39  ;;  %6150 = vpow2.f32 %v4968_v40  ;;  %v7674_v17 = vpop.f32.mrb[141].mxu1 }
 0x7f5   : > { %v6133_v46 = vpop.eup %6132  ;;  %4586 = vst [vmem:[%s7454_s2 + $0xcc] sm:$0xff] %v5102_v15  ;;  %6152 = vpow2.f32 %v4972_v14  ;;  %v7676_v40 = vpop.f32.mrb[157].mxu0 }
 0x7f6   : > { %v6135_v59 = vpop.eup %6134  ;;  %v5105_v49 = vpack.c.bf16 %v6133_v46, %v6129_v52  ;;  %6154 = vpow2.f32 %v4974_v5  ;;  %v7679_v14 = vpop.f32.mrb[142].mxu1 }
 0x7f7   : > { %v6137_v2 = vpop.eup %6136  ;;  %v5106_v3 = vpack.c.bf16 %v6135_v59, %v6131_v35  ;;  %6156 = vpow2.f32 %v4973_v19  ;;  %v7681_v36 = vpop.f32.mrb[158].mxu0 }
 0x7f8   : > { %v7683_v39 = vpop.eup %6138  ;;  %4589 = vst [vmem:[%s7454_s2 + $0xe0] sm:$0xff] %v5105_v49  ;;  %6158 = vpow2.f32 %v4975_v31  ;;  %v7687_v5 = vpop.f32.mrb[143].mxu1 }
 0x7f9   : > { %7952 = vst [vmem:[#allocation2_spill] sm:$0xff] %v7687_v5  ;;  %v7689_v52 = vpop.f32.mrb[159].mxu0  ;;  %v6141_v15 = vpop.eup %6140  ;;  %4590 = vst [vmem:[%s7454_s2 + $0xe8] sm:$0xff] %v5106_v3  ;;  %6160 = vpow2.f32 %v4979_v58  ;;  %v7696_v58 = vunpack.c.h.bf16 %v7389_v55 }
 0x7fa   : > { %7953 = vst [vmem:[#allocation3_spill] sm:$0xff] %v7689_v52  ;;  %v6143_v35 = vpop.eup %6142  ;;  %v5109_v28 = vpack.c.bf16 %v6141_v15, %v6137_v2  ;;  %6162 = vpow2.f32 %v4981_v45  ;;  %v7693_v49 = vpop.f32.mrb[144].mxu1 }
 0x7fb   : > { %v6145_v19 = vpop.eup %6144  ;;  %v3917_v46 = vadd.f32 1.0, %v6143_v35  ;;  %6164 = vpow2.f32 %v4980_v60  ;;  %v7698_v2 = vpop.f32.mrb[145].mxu1  ;;  %v2747_v55 = vrot.slane %v7696_v58, %v6853_v37 }
 0x7fc   : > { %v6147_v59 = vpop.eup %6146  ;;  %4593 = vst [vmem:[%s7454_s2 + $0xfc] sm:$0xff] %v5109_v28  ;;  %v3921_v44 = vadd.f32 1.0, %v6145_v19  ;;  %6166 = vpow2.f32 %v4982_v27  ;;  %7954 = vst [vmem:[#allocation4_spill] sm:$0xff] %v7698_v2  ;;  %v7700_v60 = vpop.f32.mrb[146].mxu1 }
 0x7fd   : > { %v6149_v31 = vpop.eup %6148  ;;  %6168 = vrcp.f32 %v3917_v46  ;;  %v3923_v47 = vadd.f32 1.0, %v6147_v59  ;;  %7955 = vst [vmem:[#allocation5_spill] sm:$0xff] %v7700_v60  ;;  %v7702_v35 = vpop.f32.mrb[147].mxu1  ;;  %v4986_v60 = vmul.f32 -1.442695, %v7546_v26 }
 0x7fe   : > { %v6151_v5 = vpop.eup %6150  ;;  %6170 = vrcp.f32 %v3921_v44  ;;  %v3922_v52 = vadd.f32 1.0, %v6149_v31  ;;  %7956 = vst [vmem:[#allocation6_spill] sm:$0xff] %v7702_v35  ;;  %v4987_v26 = vmul.f32 -1.442695, %v7552_v12 }
 0x7ff   : > { %v6153_v45 = vpop.eup %6152  ;;  %6172 = vrcp.f32 %v3923_v47  ;;  %v3924_v3 = vadd.f32 1.0, %v6151_v5  ;;  %v7957_v5 = vsub.s32 2, %v6847_v34 }
 0x800   : > { %v6155_v15 = vpop.eup %6154  ;;  %6174 = vrcp.f32 %v3922_v52  ;;  %v3928_v27 = vadd.f32 1.0, %v6153_v45 }
 0x801   : > { %v6157_v28 = vpop.eup %6156  ;;  %6176 = vrcp.f32 %v3924_v3  ;;  %v3930_v19 = vadd.f32 1.0, %v6155_v15  ;;  %v2751_v47 = vrot.slane %v7696_v58, %v7957_v5 }
 0x802   : > { %v6159_v44 = vpop.eup %6158  ;;  %6178 = vrcp.f32 %v3928_v27  ;;  %v3929_v46 = vadd.f32 1.0, %v6157_v28  ;;  %v7709_v15 = vpop.f32.mrb[148].mxu1 }
 0x803   : > { %v6161_v59 = vpop.eup %6160  ;;  %6180 = vrcp.f32 %v3930_v19  ;;  %v3931_v31 = vadd.f32 1.0, %v6159_v44  ;;  %v7713_v19 = vrot.slane %v2747_v55, %v6853_v37  ;;  %v7715_v44 = vpop.f32.mrb[149].mxu1 }
 0x804   : > { %v6163_v52 = vpop.eup %6162  ;;  %6182 = vrcp.f32 %v3929_v46  ;;  %v3935_v45 = vadd.f32 1.0, %v6161_v59  ;;  %7958 = vst [vmem:[#allocation7_spill] sm:$0xff] %v7715_v44  ;;  %v4988_v59 = vmul.f32 -1.442695, %v7549_v8  ;;  %v3393_v5 = vpop.f32.mrb[150].mxu1 }
 0x805   : > { %v6165_v35 = vpop.eup %6164  ;;  %6184 = vrcp.f32 %v3931_v31  ;;  %v3937_v3 = vadd.f32 1.0, %v6163_v52  ;;  %v7719_v31 = vrot.slane %v2751_v47, %v6853_v37  ;;  %v7724_v55 = vadd.f32 %v3393_v5, %v7713_v19 }
 0x806   : > { %v6167_v27 = vpop.eup %6166  ;;  %6186 = vrcp.f32 %v3935_v45  ;;  %v3936_v28 = vadd.f32 1.0, %v6165_v35  ;;  %v3395_v45 = vpop.f32.mrb[151].mxu1 }
 0x807   : > { %v6169_v2 = vpop.eup %6168  ;;  %6188 = vrcp.f32 %v3937_v3  ;;  %v3938_v46 = vadd.f32 1.0, %v6167_v27  ;;  %v4989_v3 = vmul.f32 -1.442695, %v7557_v51  ;;  %v7728_v8 = vadd.f32 %v3395_v45, %v7719_v31 }
 0x808   : > { %v6171_v52 = vpop.eup %6170  ;;  %v5110_v35 = vpack.c.bf16 %v6169_v2, %v7683_v39  ;;  %6190 = vrcp.f32 %v3936_v28  ;;  %v4993_v39 = vmul.f32 -1.442695, %v7566_v33  ;;  %v4995_v27 = vmul.f32 -1.442695, %v7571_v53 }
 0x809   : > { %v6173_v44 = vpop.eup %6172  ;;  %6192 = vrcp.f32 %v3938_v46  ;;  %v4994_v46 = vmul.f32 -1.442695, %v7574_v1  ;;  %v4996_v45 = vmul.f32 -1.442695, %v7577_v43  ;;  %v5000_v33 = vmul.f32 -1.442695, %v7583_v11 }
 0x80a   : > { %v6175_v47 = vpop.eup %6174  ;;  %4594 = vst [vmem:[%s7454_s2 + $0x104] sm:$0xff] %v5110_v35  ;;  %6194 = vpow2.f32 %v4986_v60  ;;  %v3399_v35 = vpop.f32.mrb[152].mxu1  ;;  %v5002_v43 = vmul.f32 -1.442695, %v7586_v9 }
 0x80b   : > { %v6177_v2 = vpop.eup %6176  ;;  %v5113_v12 = vpack.c.bf16 %v6175_v47, %v6171_v52  ;;  %6196 = vpow2.f32 %v4988_v59  ;;  %v3340_v59 = vadd.f32 %v7599_v22, %v7713_v19  ;;  %v7741_v53 = vadd.f32 %v3399_v35, %v7713_v19 }
 0x80c   : > { %v6179_v28 = vpop.eup %6178  ;;  %v5114_v5 = vpack.c.bf16 %v6177_v2, %v6173_v44  ;;  %6198 = vpow2.f32 %v4987_v26  ;;  %v3401_v44 = vpop.f32.mrb[153].mxu1  ;;  %v5001_v22 = vmul.f32 -1.442695, %v7592_v57 }
 0x80d   : > { %v6181_v51 = vpop.eup %6180  ;;  %4597 = vst [vmem:[%s7454_s2 + $0x118] sm:$0xff] %v5113_v12  ;;  %6200 = vpow2.f32 %v4989_v3  ;;  %v7745_v26 = vadd.f32 %v3401_v44, %v7719_v31  ;;  %v3403_v3 = vpop.f32.mrb[154].mxu1 }
 0x80e   : > { %v6183_v60 = vpop.eup %6182  ;;  %4598 = vst [vmem:[%s7454_s2 + $0x120] sm:$0xff] %v5114_v5  ;;  %6202 = vpow2.f32 %v4993_v39  ;;  %v7749_v39 = vadd.f32 %v3403_v3, %v7713_v19  ;;  %v3405_v2 = vpop.f32.mrb[155].mxu1  ;;  %v4899_v5 = vmul.f32 -1.442695, %v3340_v59 }
 0x80f   : > { %v6185_v1 = vpop.eup %6184  ;;  %v5117_v52 = vpack.c.bf16 %v6183_v60, %v6179_v28  ;;  %6204 = vpow2.f32 %v4995_v27  ;;  %v5003_v27 = vmul.f32 -1.442695, %v7595_v18  ;;  %v7754_v9 = vadd.f32 %v3405_v2, %v7719_v31 }
 0x810   : > { %v6187_v47 = vpop.eup %6186  ;;  %v5118_v11 = vpack.c.bf16 %v6185_v1, %v6181_v51  ;;  %6206 = vpow2.f32 %v4994_v46  ;;  %v7959_v60 = vsub.s32 4, %v6847_v34 }
 0x811   : > { %v6189_v12 = vpop.eup %6188  ;;  %4601 = vst [vmem:[%s7454_s2 + $0x134] sm:$0xff] %v5117_v52  ;;  %6208 = vpow2.f32 %v4996_v45 }
 0x812   : > { %v6191_v28 = vpop.eup %6190  ;;  %4602 = vst [vmem:[%s7454_s2 + $0x13c] sm:$0xff] %v5118_v11  ;;  %6210 = vpow2.f32 %v5000_v33  ;;  %v2755_v45 = vrot.slane %v7696_v58, %v7959_v60  ;;  %v3409_v1 = vpop.f32.mrb[156].mxu1 }
 0x813   : > { %v6193_v46 = vpop.eup %6192  ;;  %v5121_v57 = vpack.c.bf16 %v6191_v28, %v6187_v47  ;;  %6212 = vpow2.f32 %v5002_v43  ;;  %v7763_v33 = vadd.f32 %v3409_v1, %v7713_v19  ;;  %v3411_v59 = vpop.f32.mrb[157].mxu1 }
 0x814   : > { %v6195_v51 = vpop.eup %6194  ;;  %v5122_v35 = vpack.c.bf16 %v6193_v46, %v6189_v12  ;;  %6214 = vpow2.f32 %v5001_v22  ;;  %v7766_v34 = vadd.f32 %v3411_v59, %v7719_v31  ;;  %v3413_v58 = vpop.f32.mrb[158].mxu1  ;;  %v7769_v2 = vrot.slane %v2755_v45, %v6853_v37 }
 0x815   : > { %v6197_v44 = vpop.eup %6196  ;;  %4605 = vst [vmem:[%s7454_s2 + $0x150] sm:$0xff] %v5121_v57  ;;  %v3942_v18 = vadd.f32 1.0, %v6195_v51  ;;  %6216 = vpow2.f32 %v5003_v27  ;;  %v7772_v12 = vadd.f32 %v3413_v58, %v7713_v19  ;;  %v3415_v27 = vpop.f32.mrb[159].mxu1 }
 0x816   : > { %v6199_v52 = vpop.eup %6198  ;;  %4606 = vst [vmem:[%s7454_s2 + $0x158] sm:$0xff] %v5122_v35  ;;  %v3944_v3 = vadd.f32 1.0, %v6197_v44  ;;  %6218 = vpow2.f32 %v4899_v5  ;;  %v7775_v46 = vadd.f32 %v3415_v27, %v7719_v31  ;;  %v3461_v45 = vadd.f32 %v7601_v10, %v7769_v2 }
 0x817   : > { %v6201_v43 = vpop.eup %6200  ;;  %6220 = vrcp.f32 %v3942_v18  ;;  %v3943_v47 = vadd.f32 1.0, %v6199_v52  ;;  %v3342_v52 = vadd.f32 %v7605_v20, %v7719_v31 }
 0x818   : > { %v6203_v11 = vpop.eup %6202  ;;  %6222 = vrcp.f32 %v3944_v3  ;;  %v3945_v22 = vadd.f32 1.0, %v6201_v43  ;;  %v3453_v43 = vadd.f32 %v7607_v30, %v7769_v2  ;;  %v4915_v27 = vmul.f32 -1.442695, %v3461_v45 }
 0x819   : > { %v6205_v28 = vpop.eup %6204  ;;  %6224 = vrcp.f32 %v3943_v47  ;;  %v3949_v5 = vadd.f32 1.0, %v6203_v11  ;;  %v3344_v11 = vadd.f32 %v7612_v63, %v7713_v19  ;;  %v3346_v30 = vadd.f32 %v7617_v4, %v7719_v31 }
 0x81a   : > { %v6207_v57 = vpop.eup %6206  ;;  %6226 = vrcp.f32 %v3945_v22  ;;  %v3951_v51 = vadd.f32 1.0, %v6205_v28  ;;  %v3464_v28 = vadd.f32 %v7614_v16, %v7769_v2  ;;  %v3456_v63 = vadd.f32 %v7619_v25, %v7769_v2 }
 0x81b   : > { %v6209_v35 = vpop.eup %6208  ;;  %6228 = vrcp.f32 %v3949_v5  ;;  %v3950_v60 = vadd.f32 1.0, %v6207_v57  ;;  %v4900_v57 = vmul.f32 -1.442695, %v3342_v52  ;;  %v3350_v16 = vadd.f32 %v7621_v54, %v7713_v19 }
 0x81c   : > { %v6211_v44 = vpop.eup %6210  ;;  %6230 = vrcp.f32 %v3951_v51  ;;  %v3952_v37 = vadd.f32 1.0, %v6209_v35  ;;  %v4901_v35 = vmul.f32 -1.442695, %v3453_v43  ;;  %v3477_v4 = vadd.f32 %v7623_v6, %v7769_v2 }
 0x81d   : > { %v6213_v18 = vpop.eup %6212  ;;  %6232 = vrcp.f32 %v3950_v60  ;;  %v3956_v1 = vadd.f32 1.0, %v6211_v44  ;;  %v4906_v44 = vmul.f32 -1.442695, %v3344_v11  ;;  %v3352_v25 = vadd.f32 %v7625_v42, %v7719_v31 }
 0x81e   : > { %v6215_v3 = vpop.eup %6214  ;;  %6234 = vrcp.f32 %v3952_v37  ;;  %v3958_v59 = vadd.f32 1.0, %v6213_v18  ;;  %v4922_v18 = vmul.f32 -1.442695, %v3464_v28  ;;  %v4908_v43 = vmul.f32 -1.442695, %v3456_v63 }
 0x81f   : > { %v6217_v47 = vpop.eup %6216  ;;  %6236 = vrcp.f32 %v3956_v1  ;;  %v3957_v58 = vadd.f32 1.0, %v6215_v3  ;;  %v4907_v3 = vmul.f32 -1.442695, %v3346_v30  ;;  %v3469_v54 = vadd.f32 %v7627_v50, %v7769_v2 }
 0x820   : > { %v6219_v22 = vpop.eup %6218  ;;  %6238 = vrcp.f32 %v3958_v59  ;;  %v3959_v10 = vadd.f32 1.0, %v6217_v47  ;;  %v3354_v6 = vadd.f32 %v7629_v21, %v7713_v19  ;;  %v4943_v42 = vmul.f32 -1.442695, %v3477_v4 }
 0x821   : > { %v6221_v20 = vpop.eup %6220  ;;  %6240 = vrcp.f32 %v3957_v58  ;;  %v3855_v5 = vadd.f32 1.0, %v6219_v22  ;;  %v4913_v58 = vmul.f32 -1.442695, %v3350_v16  ;;  %v4914_v50 = vmul.f32 -1.442695, %v3352_v25 }
 0x822   : > { %v6223_v51 = vpop.eup %6222  ;;  %6242 = vrcp.f32 %v3959_v10  ;;  %v3480_v10 = vadd.f32 %v7631_v24, %v7769_v2  ;;  %v4920_v21 = vmul.f32 -1.442695, %v3354_v6 }
 0x823   : > { %v6225_v60 = vpop.eup %6224  ;;  %6244 = vrcp.f32 %v3855_v5  ;;  %v4929_v5 = vmul.f32 -1.442695, %v3469_v54 }
 0x824   : > { %v6227_v37 = vpop.eup %6226  ;;  %v5125_v45 = vpack.c.bf16 %v6225_v60, %v6221_v20  ;;  %6246 = vpow2.f32 %v4915_v27 }
 0x825   : > { %v6229_v1 = vpop.eup %6228  ;;  %v5126_v52 = vpack.c.bf16 %v6227_v37, %v6223_v51  ;;  %6248 = vpow2.f32 %v4900_v57 }
 0x826   : > { %v6231_v59 = vpop.eup %6230  ;;  %4609 = vst [vmem:[%s7454_s2 + $0x16c] sm:$0xff] %v5125_v45  ;;  %6250 = vpow2.f32 %v4901_v35  ;;  %v4950_v35 = vmul.f32 -1.442695, %v3480_v10  ;;  %v3472_v10 = vadd.f32 %v7635_v0, %v7769_v2  ;;  %v3362_v0 = vadd.f32 %v7645_v41, %v7719_v31 }
 0x827   : > { %v6233_v47 = vpop.eup %6232  ;;  %4610 = vst [vmem:[%s7454_s2 + $0x174] sm:$0xff] %v5126_v52  ;;  %6252 = vpow2.f32 %v4906_v44 }
 0x828   : > { %v6235_v11 = vpop.eup %6234  ;;  %v5129_v22 = vpack.c.bf16 %v6233_v47, %v6229_v1  ;;  %6254 = vpow2.f32 %v4922_v18 }
 0x829   : > { %v6237_v27 = vpop.eup %6236  ;;  %v5130_v28 = vpack.c.bf16 %v6235_v11, %v6231_v59  ;;  %6256 = vpow2.f32 %v4907_v3  ;;  %v3356_v11 = vadd.f32 %v7633_v61, %v7719_v31 }
 0x82a   : > { %v6239_v20 = vpop.eup %6238  ;;  %4613 = vst [vmem:[%s7454_s2 + $0x188] sm:$0xff] %v5129_v22  ;;  %6258 = vpow2.f32 %v4908_v43 }
 0x82b   : > { %v6241_v57 = vpop.eup %6240  ;;  %4614 = vst [vmem:[%s7454_s2 + $0x190] sm:$0xff] %v5130_v28  ;;  %6260 = vpow2.f32 %v4913_v58 }
 0x82c   : > { %v6243_v30 = vpop.eup %6242  ;;  %v5133_v51 = vpack.c.bf16 %v6241_v57, %v6237_v27  ;;  %6262 = vpow2.f32 %v4943_v42  ;;  %v3493_v57 = vadd.f32 %v7643_v32, %v7769_v2 }
 0x82d   : > { %v7807_v63 = vpop.eup %6244  ;;  %v5134_v24 = vpack.c.bf16 %v6243_v30, %v6239_v20  ;;  %6264 = vpow2.f32 %v4914_v50  ;;  %v3360_v50 = vadd.f32 %v7639_v56, %v7713_v19  ;;  %v4921_v30 = vmul.f32 -1.442695, %v3356_v11 }
 0x82e   : > { %v6247_v60 = vpop.eup %6246  ;;  %4617 = vst [vmem:[%s7454_s2 + $0x1a4] sm:$0xff] %v5133_v51  ;;  %6266 = vpow2.f32 %v4929_v5  ;;  %v3485_v56 = vadd.f32 %v7649_v38, %v7769_v2  ;;  %v4971_v41 = vmul.f32 -1.442695, %v3493_v57 }
 0x82f   : > { %v6249_v44 = vpop.eup %6248  ;;  %4618 = vst [vmem:[%s7454_s2 + $0x1ac] sm:$0xff] %v5134_v24  ;;  %v3871_v16 = vadd.f32 1.0, %v6247_v60  ;;  %6268 = vpow2.f32 %v4920_v21  ;;  %v4936_v24 = vmul.f32 -1.442695, %v3472_v10  ;;  %v4927_v32 = vmul.f32 -1.442695, %v3360_v50 }
 0x830   : > { %v6251_v37 = vpop.eup %6250  ;;  %v3856_v45 = vadd.f32 1.0, %v6249_v44  ;;  %6270 = vpow2.f32 %v4950_v35 }
 0x831   : > { %v6253_v18 = vpop.eup %6252  ;;  %6272 = vrcp.f32 %v3871_v16  ;;  %v3857_v4 = vadd.f32 1.0, %v6251_v37  ;;  %v3364_v16 = vadd.f32 %v7651_v48, %v7713_v19  ;;  %v4957_v48 = vmul.f32 -1.442695, %v3485_v56 }
 0x832   : > { %v6255_v1 = vpop.eup %6254  ;;  %6274 = vrcp.f32 %v3856_v45  ;;  %v3862_v52 = vadd.f32 1.0, %v6253_v18  ;;  %v3496_v18 = vadd.f32 %v7655_v23, %v7769_v2 }
 0x833   : > { %v6257_v3 = vpop.eup %6256  ;;  %6276 = vrcp.f32 %v3857_v4  ;;  %v3878_v25 = vadd.f32 1.0, %v6255_v1  ;;  %v4928_v1 = vmul.f32 -1.442695, %v3362_v0 }
 0x834   : > { %v6259_v59 = vpop.eup %6258  ;;  %6278 = vrcp.f32 %v3862_v52  ;;  %v3863_v43 = vadd.f32 1.0, %v6257_v3  ;;  %v3366_v52 = vadd.f32 %v7657_v62, %v7719_v31 }
 0x835   : > { %v6261_v54 = vpop.eup %6260  ;;  %6280 = vrcp.f32 %v3878_v25  ;;  %v3864_v47 = vadd.f32 1.0, %v6259_v59  ;;  %v4934_v59 = vmul.f32 -1.442695, %v3364_v16 }
 0x836   : > { %v6263_v58 = vpop.eup %6262  ;;  %6282 = vrcp.f32 %v3863_v43  ;;  %v3869_v6 = vadd.f32 1.0, %v6261_v54  ;;  %v3370_v43 = vadd.f32 %v7669_v13, %v7713_v19  ;;  %v4935_v11 = vmul.f32 -1.442695, %v3366_v52 }
 0x837   : > { %v6265_v22 = vpop.eup %6264  ;;  %6284 = vrcp.f32 %v3864_v47  ;;  %v3899_v42 = vadd.f32 1.0, %v6263_v58  ;;  %v4978_v47 = vmul.f32 -1.442695, %v3496_v18  ;;  %v3509_v58 = vadd.f32 %v7671_v7, %v7769_v2 }
 0x838   : > { %v6267_v27 = vpop.eup %6266  ;;  %6286 = vrcp.f32 %v3869_v6  ;;  %v3870_v28 = vadd.f32 1.0, %v6265_v22  ;;  %v3372_v22 = vadd.f32 %v7674_v17, %v7719_v31  ;;  %v4941_v7 = vmul.f32 -1.442695, %v3370_v43 }
 0x839   : > { %v6269_v20 = vpop.eup %6268  ;;  %6288 = vrcp.f32 %v3899_v42  ;;  %v3885_v5 = vadd.f32 1.0, %v6267_v27  ;;  %v3501_v52 = vadd.f32 %v7676_v40, %v7769_v2 }
 0x83a   : > { %v6271_v61 = vpop.eup %6270  ;;  %6290 = vrcp.f32 %v3870_v28  ;;  %v3876_v21 = vadd.f32 1.0, %v6269_v20  ;;  %v4999_v20 = vmul.f32 -1.442695, %v3509_v58  ;;  %v4942_v57 = vmul.f32 -1.442695, %v3372_v22 }
 0x83b   : > { %v6273_v51 = vpop.eup %6272  ;;  %6292 = vrcp.f32 %v3885_v5  ;;  %v3906_v35 = vadd.f32 1.0, %v6271_v61 }
 0x83c   : > { %v6275_v60 = vpop.eup %6274  ;;  %v5084_v44 = vpack.c.bf16 %v6273_v51, %v6273_v51  ;;  %6294 = vrcp.f32 %v3876_v21 }
 0x83d   : > { %v6277_v37 = vpop.eup %6276  ;;  %v5075_v45 = vpack.c.bf16 %v6275_v60, %v7807_v63  ;;  %6296 = vrcp.f32 %v3906_v35  ;;  %v3488_v63 = vadd.f32 %v7661_v29, %v7769_v2 }
 0x83e   : > { %v6279_v4 = vpop.eup %6278  ;;  %4568 = vst.msk [vmem:[%s7454_s2 + $0x50] sm:$0xf] %vm4559_vm5, %v5084_v44  ;;  %v5076_v38 = vpack.c.bf16 %v6277_v37, %v6277_v37  ;;  %6298 = vpow2.f32 %v4921_v30 }
 0x83f   : > { %v6281_v3 = vpop.eup %6280  ;;  %4558 = vst [vmem:[%s7454_s2 + $0x10] sm:$0xff] %v5075_v45  ;;  %6300 = vpow2.f32 %v4936_v24  ;;  %v4964_v13 = vmul.f32 -1.442695, %v3488_v63  ;;  %v3374_v63 = vadd.f32 %v7679_v14, %v7713_v19 }
 0x840   : > { %v6283_v25 = vpop.eup %6282  ;;  %4560 = vst.msk [vmem:[%s7454_s2 + $0x18] sm:$0xf] %vm4559_vm5, %v5076_v38  ;;  %v5088_v23 = vpack.c.bf16 %v6281_v3, %v6281_v3  ;;  %6302 = vpow2.f32 %v4927_v32 }
 0x841   : > { %v6285_v54 = vpop.eup %6284  ;;  %v5079_v62 = vpack.c.bf16 %v6283_v25, %v6279_v4  ;;  %6304 = vpow2.f32 %v4971_v41 }
 0x842   : > { %v6287_v6 = vpop.eup %6286  ;;  %4572 = vst.msk [vmem:[%s7454_s2 + $0x6c] sm:$0xf] %vm4559_vm5, %v5088_v23  ;;  %v5080_v29 = vpack.c.bf16 %v6285_v54, %v6285_v54  ;;  %6306 = vpow2.f32 %v4928_v1 }
 0x843   : > { %v6289_v42 = vpop.eup %6288  ;;  %4563 = vst [vmem:[%s7454_s2 + $0x2c] sm:$0xff] %v5079_v62  ;;  %6308 = vpow2.f32 %v4957_v48  ;;  %v7960_v62 = vld [vmem:[#allocation2_spill] sm:$0xff] }
 0x844   : > { %v6291_v10 = vpop.eup %6290  ;;  %4564 = vst.msk [vmem:[%s7454_s2 + $0x34] sm:$0xf] %vm4559_vm5, %v5080_v29  ;;  %v5100_v27 = vpack.c.bf16 %v6289_v42, %v6289_v42  ;;  %6310 = vpow2.f32 %v4934_v59  ;;  %v3512_v59 = vadd.f32 %v7681_v36, %v7769_v2  ;;  %v7961_v29 = vld [vmem:[#allocation3_spill] sm:$0xff]  ;;  %v4948_v42 = vmul.f32 -1.442695, %v3374_v63 }
 0x845   : > { %v6293_v28 = vpop.eup %6292  ;;  %v5083_v50 = vpack.c.bf16 %v6291_v10, %v6287_v6  ;;  %6312 = vpow2.f32 %v4978_v47  ;;  %v3376_v47 = vadd.f32 %v7960_v62, %v7719_v31  ;;  %v4985_v6 = vmul.f32 -1.442695, %v3501_v52 }
 0x846   : > { %v7848_v5 = vpop.eup %6294  ;;  %4584 = vst.msk [vmem:[%s7454_s2 + $0xc0] sm:$0xf] %vm4559_vm5, %v5100_v27  ;;  %v5092_v17 = vpack.c.bf16 %v6293_v28, %v6293_v28  ;;  %6314 = vpow2.f32 %v4935_v11  ;;  %v3504_v11 = vadd.f32 %v7961_v29, %v7769_v2  ;;  %v3380_v36 = vadd.f32 %v7693_v49, %v7713_v19 }
 0x847   : > { %v6297_v61 = vpop.eup %6296  ;;  %4567 = vst [vmem:[%s7454_s2 + $0x48] sm:$0xff] %v5083_v50  ;;  %6316 = vpow2.f32 %v4964_v13  ;;  %v5006_v27 = vmul.f32 -1.442695, %v3512_v59  ;;  %v4949_v2 = vmul.f32 -1.442695, %v3376_v47 }
 0x848   : > { %v6299_v21 = vpop.eup %6298  ;;  %4576 = vst.msk [vmem:[%s7454_s2 + $0x88] sm:$0xf] %vm4559_vm5, %v5092_v17  ;;  %v5104_v30 = vpack.c.bf16 %v6297_v61, %v6297_v61  ;;  %6318 = vpow2.f32 %v4941_v7  ;;  %v7962_v7 = vld [vmem:[#allocation4_spill] sm:$0xff]  ;;  %v7963_v17 = vld [vmem:[#allocation5_spill] sm:$0xff]  ;;  %v4992_v49 = vmul.f32 -1.442695, %v3504_v11 }
 0x849   : > { %v6301_v0 = vpop.eup %6300  ;;  %v3877_v51 = vadd.f32 1.0, %v6299_v21  ;;  %6320 = vpow2.f32 %v4999_v20  ;;  %v3382_v28 = vadd.f32 %v7962_v7, %v7719_v31  ;;  %v7964_v21 = vld [vmem:[#allocation6_spill] sm:$0xff] }
 0x84a   : > { %v6303_v35 = vpop.eup %6302  ;;  %4588 = vst.msk [vmem:[%s7454_s2 + $0xdc] sm:$0xf] %vm4559_vm5, %v5104_v30  ;;  %v3892_v24 = vadd.f32 1.0, %v6301_v0  ;;  %6322 = vpow2.f32 %v4942_v57  ;;  %v3384_v57 = vadd.f32 %v7963_v17, %v7713_v19 }
 0x84b   : > { %v6305_v56 = vpop.eup %6304  ;;  %6324 = vrcp.f32 %v3877_v51  ;;  %v3883_v60 = vadd.f32 1.0, %v6303_v35  ;;  %v4955_v51 = vmul.f32 -1.442695, %v3380_v36  ;;  %v3390_v35 = vadd.f32 %v7709_v15, %v7713_v19 }
 0x84c   : > { %v6307_v44 = vpop.eup %6306  ;;  %6326 = vrcp.f32 %v3892_v24  ;;  %v3927_v32 = vadd.f32 1.0, %v6305_v56 }
 0x84d   : > { %v6309_v16 = vpop.eup %6308  ;;  %6328 = vrcp.f32 %v3883_v60  ;;  %v3884_v37 = vadd.f32 1.0, %v6307_v44  ;;  %v4956_v60 = vmul.f32 -1.442695, %v3382_v28  ;;  %v7965_v44 = vld [vmem:[#allocation7_spill] sm:$0xff] }
 0x84e   : > { %v6311_v45 = vpop.eup %6310  ;;  %6330 = vrcp.f32 %v3927_v32  ;;  %v3913_v41 = vadd.f32 1.0, %v6309_v16  ;;  %v3392_v32 = vadd.f32 %v7965_v44, %v7719_v31  ;;  %v4997_v44 = vmul.f32 -1.442695, %v7763_v33 }
 0x84f   : > { %v6313_v18 = vpop.eup %6312  ;;  %6332 = vrcp.f32 %v3884_v37  ;;  %v3890_v4 = vadd.f32 1.0, %v6311_v45  ;;  %v4962_v45 = vmul.f32 -1.442695, %v3384_v57 }
 0x850   : > { %v6315_v38 = vpop.eup %6314  ;;  %6334 = vrcp.f32 %v3913_v41  ;;  %v3934_v1 = vadd.f32 1.0, %v6313_v18 }
 0x851   : > { %v6317_v3 = vpop.eup %6316  ;;  %6336 = vrcp.f32 %v3890_v4  ;;  %v3891_v48 = vadd.f32 1.0, %v6315_v38  ;;  %v4969_v4 = vmul.f32 -1.442695, %v3390_v35  ;;  %v4990_v35 = vmul.f32 -1.442695, %v7749_v39 }
 0x852   : > { %v6319_v25 = vpop.eup %6318  ;;  %6338 = vrcp.f32 %v3934_v1  ;;  %v3920_v23 = vadd.f32 1.0, %v6317_v3  ;;  %v4970_v1 = vmul.f32 -1.442695, %v3392_v32 }
 0x853   : > { %v6321_v43 = vpop.eup %6320  ;;  %6340 = vrcp.f32 %v3891_v48  ;;  %v3897_v54 = vadd.f32 1.0, %v6319_v25  ;;  %v4976_v48 = vmul.f32 -1.442695, %v7724_v55  ;;  %v4977_v25 = vmul.f32 -1.442695, %v7728_v8 }
 0x854   : > { %v6323_v58 = vpop.eup %6322  ;;  %6342 = vrcp.f32 %v3920_v23  ;;  %v3955_v40 = vadd.f32 1.0, %v6321_v43 }
 0x855   : > { %v6325_v14 = vpop.eup %6324  ;;  %6344 = vrcp.f32 %v3897_v54  ;;  %v3898_v22 = vadd.f32 1.0, %v6323_v58 }
 0x856   : > { %v6327_v13 = vpop.eup %6326  ;;  %v5087_v10 = vpack.c.bf16 %v6325_v14, %v7848_v5  ;;  %6346 = vrcp.f32 %v3955_v40  ;;  %v3386_v5 = vadd.f32 %v7964_v21, %v7719_v31 }
 0x857   : > { %v6329_v50 = vpop.eup %6328  ;;  %v5096_v20 = vpack.c.bf16 %v6327_v13, %v6327_v13  ;;  %6348 = vrcp.f32 %v3898_v22 }
 0x858   : > { %v6331_v61 = vpop.eup %6330  ;;  %4571 = vst [vmem:[%s7454_s2 + $0x64] sm:$0xff] %v5087_v10  ;;  %6350 = vpow2.f32 %v4985_v6  ;;  %v4963_v18 = vmul.f32 -1.442695, %v3386_v5 }
 0x859   : > { %v6333_v30 = vpop.eup %6332  ;;  %4580 = vst.msk [vmem:[%s7454_s2 + $0xa4] sm:$0xf] %vm4559_vm5, %v5096_v20  ;;  %v5116_v0 = vpack.c.bf16 %v6331_v61, %v6331_v61  ;;  %6352 = vpow2.f32 %v4948_v42 }
 0x85a   : > { %v6335_v24 = vpop.eup %6334  ;;  %v5091_v56 = vpack.c.bf16 %v6333_v30, %v6329_v50  ;;  %6354 = vpow2.f32 %v5006_v27  ;;  %v4984_v30 = vmul.f32 -1.442695, %v7745_v26 }
 0x85b   : > { %v6337_v16 = vpop.eup %6336  ;;  %4600 = vst.msk [vmem:[%s7454_s2 + $0x130] sm:$0xf] %vm4559_vm5, %v5116_v0  ;;  %v5108_v37 = vpack.c.bf16 %v6335_v24, %v6335_v24  ;;  %6356 = vpow2.f32 %v4949_v2 }
 0x85c   : > { %v6339_v41 = vpop.eup %6338  ;;  %4575 = vst [vmem:[%s7454_s2 + $0x80] sm:$0xff] %v5091_v56  ;;  %6358 = vpow2.f32 %v4992_v49  ;;  %v4983_v49 = vmul.f32 -1.442695, %v7741_v53  ;;  %v4991_v56 = vmul.f32 -1.442695, %v7754_v9 }
 0x85d   : > { %v6341_v15 = vpop.eup %6340  ;;  %4592 = vst.msk [vmem:[%s7454_s2 + $0xf8] sm:$0xf] %vm4559_vm5, %v5108_v37  ;;  %v5120_v19 = vpack.c.bf16 %v6339_v41, %v6339_v41  ;;  %6360 = vpow2.f32 %v4955_v51  ;;  %v5004_v9 = vmul.f32 -1.442695, %v7772_v12  ;;  %v5005_v41 = vmul.f32 -1.442695, %v7775_v46 }
 0x85e   : > { %v6343_v31 = vpop.eup %6342  ;;  %v5095_v38 = vpack.c.bf16 %v6341_v15, %v6337_v16  ;;  %6362 = vpow2.f32 %v4956_v60  ;;  %v4998_v16 = vmul.f32 -1.442695, %v7766_v34 }
 0x85f   : > { %v6345_v52 = vpop.eup %6344  ;;  %4604 = vst.msk [vmem:[%s7454_s2 + $0x14c] sm:$0xf] %vm4559_vm5, %v5120_v19  ;;  %v5112_v3 = vpack.c.bf16 %v6343_v31, %v6343_v31  ;;  %6364 = vpow2.f32 %v4962_v45 }
 0x860   : > { %v6347_v63 = vpop.eup %6346  ;;  %4579 = vst [vmem:[%s7454_s2 + $0x9c] sm:$0xff] %v5095_v38  ;;  %6366 = vpow2.f32 %v4963_v18 }
 0x861   : > { %v6349_v23 = vpop.eup %6348  ;;  %4596 = vst.msk [vmem:[%s7454_s2 + $0x114] sm:$0xf] %vm4559_vm5, %v5112_v3  ;;  %v5132_v59 = vpack.c.bf16 %v6347_v63, %v6347_v63  ;;  %6368 = vpow2.f32 %v4969_v4 }
 0x862   : > { %v6351_v43 = vpop.eup %6350  ;;  %v5099_v54 = vpack.c.bf16 %v6349_v23, %v6345_v52  ;;  %6370 = vpow2.f32 %v4970_v1 }
 0x863   : > { %v6353_v62 = vpop.eup %6352  ;;  %4616 = vst.msk [vmem:[%s7454_s2 + $0x1a0] sm:$0xf] %vm4559_vm5, %v5132_v59  ;;  %v3941_v47 = vadd.f32 1.0, %v6351_v43  ;;  %6372 = vpow2.f32 %v4976_v48 }
 0x864   : > { %v6355_v55 = vpop.eup %6354  ;;  %4583 = vst [vmem:[%s7454_s2 + $0xb8] sm:$0xff] %v5099_v54  ;;  %v3904_v58 = vadd.f32 1.0, %v6353_v62  ;;  %6374 = vpow2.f32 %v4977_v25 }
 0x865   : > { %v6357_v40 = vpop.eup %6356  ;;  %6376 = vrcp.f32 %v3941_v47  ;;  %v3962_v8 = vadd.f32 1.0, %v6355_v55 }
 0x866   : > { %v6359_v6 = vpop.eup %6358  ;;  %6378 = vrcp.f32 %v3904_v58  ;;  %v3905_v29 = vadd.f32 1.0, %v6357_v40 }
 0x867   : > { %v6361_v11 = vpop.eup %6360  ;;  %6380 = vrcp.f32 %v3962_v8  ;;  %v3948_v14 = vadd.f32 1.0, %v6359_v6 }
 0x868   : > { %v6363_v22 = vpop.eup %6362  ;;  %6382 = vrcp.f32 %v3905_v29  ;;  %v3911_v42 = vadd.f32 1.0, %v6361_v11 }
 0x869   : > { %v6365_v36 = vpop.eup %6364  ;;  %6384 = vrcp.f32 %v3948_v14  ;;  %v3912_v13 = vadd.f32 1.0, %v6363_v22 }
 0x86a   : > { %v6367_v10 = vpop.eup %6366  ;;  %6386 = vrcp.f32 %v3911_v42  ;;  %v3918_v27 = vadd.f32 1.0, %v6365_v36 }
 0x86b   : > { %v6369_v7 = vpop.eup %6368  ;;  %6388 = vrcp.f32 %v3912_v13  ;;  %v3919_v28 = vadd.f32 1.0, %v6367_v10 }
 0x86c   : > { %v6371_v50 = vpop.eup %6370  ;;  %6390 = vrcp.f32 %v3918_v27  ;;  %v3925_v20 = vadd.f32 1.0, %v6369_v7 }
 0x86d   : > { %v6373_v2 = vpop.eup %6372  ;;  %6392 = vrcp.f32 %v3919_v28  ;;  %v3926_v17 = vadd.f32 1.0, %v6371_v50 }
 0x86e   : > { %v6375_v57 = vpop.eup %6374  ;;  %6394 = vrcp.f32 %v3925_v20  ;;  %v3932_v61 = vadd.f32 1.0, %v6373_v2 }
 0x86f   : > { %v6377_v21 = vpop.eup %6376  ;;  %6396 = vrcp.f32 %v3926_v17  ;;  %v3933_v5 = vadd.f32 1.0, %v6375_v57 }
 0x870   : > { %v6379_v0 = vpop.eup %6378  ;;  %v5124_v51 = vpack.c.bf16 %v6377_v21, %v6377_v21  ;;  %6398 = vrcp.f32 %v3932_v61 }
 0x871   : > { %v6381_v24 = vpop.eup %6380  ;;  %6400 = vrcp.f32 %v3933_v5 }
 0x872   : > { %v6383_v60 = vpop.eup %6382  ;;  %4608 = vst.msk [vmem:[%s7454_s2 + $0x168] sm:$0xf] %vm4559_vm5, %v5124_v51  ;;  %v5136_v53 = vpack.c.bf16 %v6381_v24, %v6381_v24  ;;  %6402 = vpow2.f32 %v4983_v49 }
 0x873   : > { %v6385_v26 = vpop.eup %6384  ;;  %v5103_v32 = vpack.c.bf16 %v6383_v60, %v6379_v0  ;;  %6404 = vpow2.f32 %v4984_v30 }
 0x874   : > { %v6387_v37 = vpop.eup %6386  ;;  %4620 = vst.msk [vmem:[%s7454_s2 + $0x1bc] sm:$0xf] %vm4559_vm5, %v5136_v53  ;;  %v5128_v39 = vpack.c.bf16 %v6385_v26, %v6385_v26  ;;  %6406 = vpow2.f32 %v4990_v35 }
 0x875   : > { %v6389_v45 = vpop.eup %6388  ;;  %4587 = vst [vmem:[%s7454_s2 + $0xd4] sm:$0xff] %v5103_v32  ;;  %6408 = vpow2.f32 %v4991_v56 }
 0x876   : > { %v6391_v33 = vpop.eup %6390  ;;  %4612 = vst.msk [vmem:[%s7454_s2 + $0x184] sm:$0xf] %vm4559_vm5, %v5128_v39  ;;  %v5107_v18 = vpack.c.bf16 %v6389_v45, %v6387_v37  ;;  %6410 = vpow2.f32 %v4997_v44 }
 0x877   : > { %v6393_v34 = vpop.eup %6392  ;;  %6412 = vpow2.f32 %v4998_v16 }
 0x878   : > { %v6395_v15 = vpop.eup %6394  ;;  %4591 = vst [vmem:[%s7454_s2 + $0xf0] sm:$0xff] %v5107_v18  ;;  %v5111_v19 = vpack.c.bf16 %v6393_v34, %v6391_v33  ;;  %6414 = vpow2.f32 %v5004_v9 }
 0x879   : > { %v6397_v12 = vpop.eup %6396  ;;  %6416 = vpow2.f32 %v5005_v41 }
 0x87a   : > { %v6399_v4 = vpop.eup %6398  ;;  %4595 = vst [vmem:[%s7454_s2 + $0x10c] sm:$0xff] %v5111_v19  ;;  %v5115_v31 = vpack.c.bf16 %v6397_v12, %v6395_v15 }
 0x87b   : > { %v6401_v38 = vpop.eup %6400 }
 0x87c   : > { %v6403_v46 = vpop.eup %6402  ;;  %4599 = vst [vmem:[%s7454_s2 + $0x128] sm:$0xff] %v5115_v31  ;;  %v5119_v1 = vpack.c.bf16 %v6401_v38, %v6399_v4 }
 0x87d   : > { %v6405_v52 = vpop.eup %6404  ;;  %v3939_v3 = vadd.f32 1.0, %v6403_v46 }
 0x87e   : > { %v6407_v48 = vpop.eup %6406  ;;  %4603 = vst [vmem:[%s7454_s2 + $0x144] sm:$0xff] %v5119_v1  ;;  %v3940_v63 = vadd.f32 1.0, %v6405_v52 }
 0x87f   : > { %v6409_v25 = vpop.eup %6408  ;;  %6418 = vrcp.f32 %v3939_v3  ;;  %v3946_v23 = vadd.f32 1.0, %v6407_v48 }
 0x880   : > { %v6411_v59 = vpop.eup %6410  ;;  %6420 = vrcp.f32 %v3940_v63  ;;  %v3947_v43 = vadd.f32 1.0, %v6409_v25 }
 0x881   : > { %v6413_v54 = vpop.eup %6412  ;;  %6422 = vrcp.f32 %v3946_v23  ;;  %v3953_v62 = vadd.f32 1.0, %v6411_v59 }
 0x882   : > { %v6415_v47 = vpop.eup %6414  ;;  %6424 = vrcp.f32 %v3947_v43  ;;  %v3954_v55 = vadd.f32 1.0, %v6413_v54 }
 0x883   : > { %v6417_v58 = vpop.eup %6416  ;;  %6426 = vrcp.f32 %v3953_v62  ;;  %v3960_v40 = vadd.f32 1.0, %v6415_v47 }
 0x884   : > { %6428 = vrcp.f32 %v3954_v55  ;;  %v3961_v8 = vadd.f32 1.0, %v6417_v58 }
 0x885   : > { %6430 = vrcp.f32 %v3960_v40 }
 0x886   : > { %6432 = vrcp.f32 %v3961_v8 }
 0x889   : > { %v6419_v6 = vpop.eup %6418 }
 0x88a   : > { %v6421_v29 = vpop.eup %6420 }
 0x88b   : > { %v6423_v11 = vpop.eup %6422  ;;  %v5123_v14 = vpack.c.bf16 %v6421_v29, %v6419_v6 }
 0x88c   : > { %v6425_v22 = vpop.eup %6424 }
 0x88d   : > { %v6427_v42 = vpop.eup %6426  ;;  %4607 = vst [vmem:[%s7454_s2 + $0x160] sm:$0xff] %v5123_v14  ;;  %v5127_v36 = vpack.c.bf16 %v6425_v22, %v6423_v11 }
 0x88e   : > { %v6429_v13 = vpop.eup %6428 }
 0x88f   : > { %v6431_v10 = vpop.eup %6430  ;;  %4611 = vst [vmem:[%s7454_s2 + $0x17c] sm:$0xff] %v5127_v36  ;;  %v5131_v27 = vpack.c.bf16 %v6429_v13, %v6427_v42 }
 0x890   : > { %v6433_v7 = vpop.eup %6432 }
 0x891   : > { %4615 = vst [vmem:[%s7454_s2 + $0x198] sm:$0xff] %v5131_v27  ;;  %v5135_v28 = vpack.c.bf16 %v6433_v7, %v6431_v10 }
 0x893   : > { %4619 = vst [vmem:[%s7454_s2 + $0x1b4] sm:$0xff] %v5135_v28 }
 0x894 PF: > { %s29_s27 = sadd.s32 1, %s6440_s27  }
 0x895   : > { %p26_p4 = scmp.ge.s32.totalorder %s29_s27, 6  }
 0x897   :  { %28 = sbr.rel (!%p26_p4) target bundleno = 4 (0x4), region = 130 }

</bundles_post_ra>
